<compile_context>
chip_gen: v7x
topology: tpu7x:2x2x1
jax: 0.10.0
libtpu: 0.0.40
codegen_flags: <defaults>
</compile_context>

<pallas_src>
import functools

import jax
import jax.numpy as jnp
import numpy as np
from jax.experimental import pallas as pl
from jax.experimental.pallas import tpu as pltpu


def _sigmoid(v):
    # exp and the approximate reciprocal both run on the EUP slot (f32 math),
    # keeping the VALU free for the gating multiplies.
    return pl.reciprocal(1.0 + jnp.exp(-v), approx=True)


def _unflatten_hw(flat, H, W):
    # (1, H*W) -> (H, W) via static slices + concat (avoids a lane-dim reshape).
    return jnp.concatenate([flat[:, h * W:(h + 1) * W] for h in range(H)], axis=0)


def _flatten_hw(mat, H, W):
    # (H, W) -> (1, H*W) via static slices + concat.
    return jnp.concatenate([mat[h:h + 1, :] for h in range(H)], axis=1)


def _cbam_kernel(saw_ref, x_ref, fcw_ref, fcb_ref, o_ref, y_ref, *, ksize, pad, H, W):
    """Fused CBAM for one batch element, lane-dense (C, H*W) layout.

    saw_ref : SMEM (2*k*k,) f32     spatial-attention conv taps (scalar prefetch)
    x_ref   : VMEM (1, C, H*W)      input block (native dtype)
    fcw_ref : VMEM (C, C)           channel-attention 1x1 weight (original dtype)
    fcb_ref : VMEM (C, 1) f32       channel-attention bias
    o_ref   : VMEM (1, C, H*W)      output block
    y_ref   : VMEM (C, H*W) f32     scratch for the channel-gated activation
    """
    _, C, HW = x_ref.shape
    x = x_ref[0]                                             # (C, HW), native dtype

    # ---------------- Channel attention ----------------
    # Global average pool over H*W: one dense lane reduction.
    ch_mean = jnp.sum(x.astype(jnp.float32), axis=1, keepdims=True) * (1.0 / float(HW))

    # 1x1 conv == dense C->C: MXU matmul, weights stay in their original dtype,
    # f32 accumulation.  (Bias add kept separate; it is negligible.)
    z = jnp.dot(fcw_ref[...], ch_mean.astype(fcw_ref.dtype),
                preferred_element_type=jnp.float32) + fcb_ref[...]
    gate_c = _sigmoid(z)                                     # (C, 1) f32

    # Channel-gated activation -> VMEM scratch (bounds the live range across
    # the spatial-conv tap loop; reloaded for the final dense store).
    y = x.astype(jnp.float32) * gate_c                       # (C, HW) f32
    y_ref[...] = y

    # ---------------- Spatial attention ----------------
    sp_mean = jnp.mean(y, axis=0, keepdims=True)             # (1, HW)
    sp_max = jnp.max(y, axis=0, keepdims=True)               # (1, HW)

    # Only the tiny per-pixel maps are brought to 2-D for the k x k conv.
    zr = jnp.zeros((pad, W), jnp.float32)
    zc = jnp.zeros((H + 2 * pad, pad), jnp.float32)

    def pad2d(flat):
        m = _unflatten_hw(flat, H, W)                        # (H, W)
        m = jnp.concatenate([zr, m, zr], axis=0)
        return jnp.concatenate([zc, m, zc], axis=1)          # (H+2p, W+2p)

    planes = (pad2d(sp_mean), pad2d(sp_max))

    # k x k conv over the 2-channel map.  The lane (dw) shift is hoisted out of
    # the dh loop: only 2*k lane slices total, sublane slices inside; scalar
    # taps come from SMEM; f32 accumulator.
    acc = jnp.zeros((H, W), jnp.float32)
    for c in range(2):
        base = c * ksize * ksize
        plane = planes[c]
        for dw in range(ksize):
            col = plane[:, dw:dw + W]                        # (H+2p, W) lane shift
            for dh in range(ksize):
                acc = acc + saw_ref[base + dh * ksize + dw] * col[dh:dh + H, :]

    gate_s = _flatten_hw(_sigmoid(acc), H, W)                # (1, HW) f32

    # Final gated output: one lane-dense store of the whole (C, HW) block.
    o_ref[0] = (y_ref[...] * gate_s).astype(o_ref.dtype)


@jax.jit
def cbam_forward(x, fc_w, fc_b, sa_w):
    """CBAM forward.

    x    : (N, C, H, W) activations (NCHW, like PyTorch)
    fc_w : (C, C, 1, 1) ChannelAttention.fc weight
    fc_b : (C,)         ChannelAttention.fc bias
    sa_w : (1, 2, k, k) SpatialAttention.cv1 weight (k in {3, 7}, no bias)
    """
    N, C, H, W = x.shape
    ksize = sa_w.shape[-1]
    if ksize not in (3, 7):
        raise ValueError("kernel size must be 3 or 7")
    pad = ksize // 2
    HW = H * W

    x_flat = x.reshape(N, C, HW)                 # free for contiguous NCHW
    fcw = fc_w.reshape(C, C)                     # keep original dtype (bf16 OK on MXU)
    fcb = fc_b.reshape(C, 1).astype(jnp.float32)
    saw = sa_w.reshape(2 * ksize * ksize).astype(jnp.float32)

    kernel = functools.partial(_cbam_kernel, ksize=ksize, pad=pad, H=H, W=W)

    # VMEM budget: double-buffered in/out blocks + f32 scratch + resident weights.
    blk = C * HW * x.dtype.itemsize
    needed = 4 * blk + C * HW * 4 + fcw.size * fcw.dtype.itemsize + 4 * C + (2 << 20)
    vmem_limit = int(min(max(needed, 32 * 1024 * 1024), 128 * 1024 * 1024))

    # TODO(synk): for production-size feature maps (whole-image f32 block beyond
    # a few MiB, esp. v7x's 64 MiB VMEM) add H-band spatial tiling with a
    # `pad`-row halo and a second "parallel" grid axis (also fixes 2-TC load
    # balance when N == 1 or N is odd).
    out_flat = pl.pallas_call(
        kernel,
        out_shape=jax.ShapeDtypeStruct((N, C, HW), x.dtype),
        grid_spec=pltpu.PrefetchScalarGridSpec(
            num_scalar_prefetch=1,                       # saw -> SMEM
            grid=(N,),
            in_specs=[
                pl.BlockSpec((1, C, HW), lambda n, _saw: (n, 0, 0)),
                pl.BlockSpec((C, C), lambda n, _saw: (0, 0)),    # resident weight
                pl.BlockSpec((C, 1), lambda n, _saw: (0, 0)),    # resident bias
            ],
            out_specs=pl.BlockSpec((1, C, HW), lambda n, _saw: (n, 0, 0)),
            scratch_shapes=[pltpu.VMEM((C, HW), jnp.float32)],
        ),
        compiler_params=pltpu.CompilerParams(
            dimension_semantics=("parallel",),
            vmem_limit_bytes=vmem_limit,
        ),
    )(saw, x_flat, fcw, fcb)

    return out_flat.reshape(N, C, H, W)


def _cbam_reference_numpy(x, fc_w, fc_b, sa_w):
    """Pure-numpy mirror of the PyTorch CBAM forward pass."""
    x = np.asarray(x, np.float32)
    N, C, H, W = x.shape
    k = sa_w.shape[-1]
    p = k // 2
    wn = np.asarray(fc_w, np.float32).reshape(C, C)
    bn = np.asarray(fc_b, np.float32)
    sn = np.asarray(sa_w, np.float32)

    pooled = x.mean(axis=(2, 3))                          # (N, C)
    z = pooled @ wn.T + bn
    s = 1.0 / (1.0 + np.exp(-z))
    y = x * s[:, :, None, None]

    sp = np.concatenate([y.mean(axis=1, keepdims=True),
                         y.max(axis=1, keepdims=True)], axis=1)   # (N, 2, H, W)
    spp = np.pad(sp, ((0, 0), (0, 0), (p, p), (p, p)))
    conv = np.zeros((N, H, W), np.float32)
    for c in range(2):
        for dh in range(k):
            for dw in range(k):
                conv += sn[0, c, dh, dw] * spp[:, c, dh:dh + H, dw:dw + W]
    att = 1.0 / (1.0 + np.exp(-conv))
    return y * att[:, None]


if __name__ == "__main__":
    key = jax.random.PRNGKey(0)
    k_x, k_w, k_b, k_s = jax.random.split(key, 4)

    N, C, H, W = 2, 4, 16, 16
    ksize = 7

    x = jax.random.normal(k_x, (N, C, H, W), jnp.float32)
    fc_w = jax.random.normal(k_w, (C, C, 1, 1), jnp.float32) * 0.3
    fc_b = jax.random.normal(k_b, (C,), jnp.float32) * 0.1
    sa_w = jax.random.normal(k_s, (1, 2, ksize, ksize), jnp.float32) * 0.2

    out = cbam_forward(x, fc_w, fc_b, sa_w)
    out = jax.block_until_ready(out)

    ref = _cbam_reference_numpy(x, fc_w, fc_b, sa_w)
    np.testing.assert_allclose(np.asarray(out), ref, rtol=2e-2, atol=2e-2)

    print("KERNEL_OK")
</pallas_src>

<mosaic_0001>
module attributes {stable_mosaic.version = 11 : i64} {
  func.func @_cbam_kernel(%arg0: i32, %arg1: memref<98xf32, #tpu.memory_space<smem>>, %arg2: memref<1x4x256xf32, #tpu.memory_space<vmem>>, %arg3: memref<4x4xf32, #tpu.memory_space<vmem>>, %arg4: memref<4x1xf32, #tpu.memory_space<vmem>>, %arg5: memref<1x4x256xf32, #tpu.memory_space<vmem>>, %arg6: memref<4x256xf32, #tpu.memory_space<vmem>>) attributes {dimension_semantics = [#tpu.dimension_semantics<parallel>], iteration_bounds = array<i64: 2>, scalar_prefetch = 1 : i64, scratch_operands = 1 : i64, tpu.core_type = #tpu.core_type<tc>, window_params = [{transform_indices = @transform_0, window_bounds = array<i64: 1, 4, 256>}, {pipeline_mode = #tpu.pipeline_mode<synchronous>, transform_indices = @transform_1, window_bounds = array<i64: 4, 4>}, {pipeline_mode = #tpu.pipeline_mode<synchronous>, transform_indices = @transform_2, window_bounds = array<i64: 4, 1>}, {transform_indices = @transform_3, window_bounds = array<i64: 1, 4, 256>}]} {
    %c0 = arith.constant 0 : index
    %c0_0 = arith.constant 0 : index
    %c0_1 = arith.constant 0 : index
    %0 = vector.load %arg2[%c0, %c0_0, %c0_1] : memref<1x4x256xf32, #tpu.memory_space<vmem>>, vector<1x4x256xf32>
    %1 = vector.shape_cast %0 : vector<1x4x256xf32> to vector<4x256xf32>
    %cst = arith.constant dense<0.000000e+00> : vector<4xf32>
    %2 = vector.multi_reduction <add>, %1, %cst [1] : vector<4x256xf32> to vector<4xf32>
    %3 = vector.shape_cast %2 : vector<4xf32> to vector<4x1xf32>
    %cst_2 = arith.constant 3.906250e-03 : f32
    %4 = vector.broadcast %cst_2 : f32 to vector<4x1xf32>
    %5 = arith.mulf %3, %4 : vector<4x1xf32>
    %c0_3 = arith.constant 0 : index
    %c0_4 = arith.constant 0 : index
    %6 = vector.load %arg3[%c0_3, %c0_4] : memref<4x4xf32, #tpu.memory_space<vmem>>, vector<4x4xf32>
    %cst_5 = arith.constant dense<0.000000e+00> : vector<4x1xf32>
    %7 = tpu.matmul %6, %5, %cst_5 {dimension_numbers = #tpu.dot_dimension_numbers<[1], [0], [0], [1], [0, 0, 1, 1], [], []>} : vector<4x4xf32>, vector<4x1xf32>, vector<4x1xf32> -> vector<4x1xf32>
    %c0_6 = arith.constant 0 : index
    %c0_7 = arith.constant 0 : index
    %8 = vector.load %arg4[%c0_6, %c0_7] : memref<4x1xf32, #tpu.memory_space<vmem>>, vector<4x1xf32>
    %9 = arith.addf %7, %8 : vector<4x1xf32>
    %cst_8 = arith.constant 0.000000e+00 : f32
    %10 = vector.broadcast %cst_8 : f32 to vector<4x1xf32>
    %11 = arith.subf %10, %9 : vector<4x1xf32>
    %12 = math.exp %11 : vector<4x1xf32>
    %cst_9 = arith.constant 1.000000e+00 : f32
    %13 = vector.broadcast %cst_9 : f32 to vector<4x1xf32>
    %14 = arith.addf %13, %12 : vector<4x1xf32>
    %15 = tpu.reciprocal %14 {approx = true} : vector<4x1xf32> -> vector<4x1xf32>
    %16 = vector.broadcast %15 : vector<4x1xf32> to vector<4x256xf32>
    %17 = arith.mulf %1, %16 : vector<4x256xf32>
    %c0_10 = arith.constant 0 : index
    %c0_11 = arith.constant 0 : index
    %18 = vector.load %arg6[%c0_10, %c0_11] : memref<4x256xf32, #tpu.memory_space<vmem>>, vector<4x256xf32>
    tpu.vector_store %arg6[%c0_10, %c0_11], %17 {strides = array<i32>} : memref<4x256xf32, #tpu.memory_space<vmem>>, vector<4x256xf32>,
    %cst_12 = arith.constant dense<0.000000e+00> : vector<256xf32>
    %19 = vector.multi_reduction <add>, %17, %cst_12 [0] : vector<4x256xf32> to vector<256xf32>
    %20 = vector.shape_cast %19 : vector<256xf32> to vector<1x256xf32>
    %cst_13 = arith.constant 4.000000e+00 : f32
    %21 = vector.broadcast %cst_13 : f32 to vector<1x256xf32>
    %22 = arith.divf %20, %21 : vector<1x256xf32>
    %cst_14 = arith.constant dense<0xFF800000> : vector<256xf32>
    %23 = vector.multi_reduction <maximumf>, %17, %cst_14 [0] : vector<4x256xf32> to vector<256xf32>
    %24 = vector.shape_cast %23 : vector<256xf32> to vector<1x256xf32>
    %cst_15 = arith.constant 0.000000e+00 : f32
    %25 = vector.broadcast %cst_15 : f32 to vector<3x16xf32>
    %cst_16 = arith.constant 0.000000e+00 : f32
    %26 = vector.broadcast %cst_16 : f32 to vector<22x3xf32>
    %27 = vector.extract_strided_slice %22 {offsets = [0, 0], sizes = [1, 16], strides = [1, 1]} : vector<1x256xf32> to vector<1x16xf32>
    %28 = vector.extract_strided_slice %22 {offsets = [0, 16], sizes = [1, 16], strides = [1, 1]} : vector<1x256xf32> to vector<1x16xf32>
    %29 = vector.extract_strided_slice %22 {offsets = [0, 32], sizes = [1, 16], strides = [1, 1]} : vector<1x256xf32> to vector<1x16xf32>
    %30 = vector.extract_strided_slice %22 {offsets = [0, 48], sizes = [1, 16], strides = [1, 1]} : vector<1x256xf32> to vector<1x16xf32>
    %31 = vector.extract_strided_slice %22 {offsets = [0, 64], sizes = [1, 16], strides = [1, 1]} : vector<1x256xf32> to vector<1x16xf32>
    %32 = vector.extract_strided_slice %22 {offsets = [0, 80], sizes = [1, 16], strides = [1, 1]} : vector<1x256xf32> to vector<1x16xf32>
    %33 = vector.extract_strided_slice %22 {offsets = [0, 96], sizes = [1, 16], strides = [1, 1]} : vector<1x256xf32> to vector<1x16xf32>
    %34 = vector.extract_strided_slice %22 {offsets = [0, 112], sizes = [1, 16], strides = [1, 1]} : vector<1x256xf32> to vector<1x16xf32>
    %35 = vector.extract_strided_slice %22 {offsets = [0, 128], sizes = [1, 16], strides = [1, 1]} : vector<1x256xf32> to vector<1x16xf32>
    %36 = vector.extract_strided_slice %22 {offsets = [0, 144], sizes = [1, 16], strides = [1, 1]} : vector<1x256xf32> to vector<1x16xf32>
    %37 = vector.extract_strided_slice %22 {offsets = [0, 160], sizes = [1, 16], strides = [1, 1]} : vector<1x256xf32> to vector<1x16xf32>
    %38 = vector.extract_strided_slice %22 {offsets = [0, 176], sizes = [1, 16], strides = [1, 1]} : vector<1x256xf32> to vector<1x16xf32>
    %39 = vector.extract_strided_slice %22 {offsets = [0, 192], sizes = [1, 16], strides = [1, 1]} : vector<1x256xf32> to vector<1x16xf32>
    %40 = vector.extract_strided_slice %22 {offsets = [0, 208], sizes = [1, 16], strides = [1, 1]} : vector<1x256xf32> to vector<1x16xf32>
    %41 = vector.extract_strided_slice %22 {offsets = [0, 224], sizes = [1, 16], strides = [1, 1]} : vector<1x256xf32> to vector<1x16xf32>
    %42 = vector.extract_strided_slice %22 {offsets = [0, 240], sizes = [1, 16], strides = [1, 1]} : vector<1x256xf32> to vector<1x16xf32>
    %43 = tpu.concatenate %27, %28, %29, %30, %31, %32, %33, %34, %35, %36, %37, %38, %39, %40, %41, %42 in 0 : vector<1x16xf32>, vector<1x16xf32>, vector<1x16xf32>, vector<1x16xf32>, vector<1x16xf32>, vector<1x16xf32>, vector<1x16xf32>, vector<1x16xf32>, vector<1x16xf32>, vector<1x16xf32>, vector<1x16xf32>, vector<1x16xf32>, vector<1x16xf32>, vector<1x16xf32>, vector<1x16xf32>, vector<1x16xf32> -> vector<16x16xf32>
    %44 = tpu.concatenate %25, %43, %25 in 0 : vector<3x16xf32>, vector<16x16xf32>, vector<3x16xf32> -> vector<22x16xf32>
    %45 = tpu.concatenate %26, %44, %26 in 1 : vector<22x3xf32>, vector<22x16xf32>, vector<22x3xf32> -> vector<22x22xf32>
    %46 = vector.extract_strided_slice %24 {offsets = [0, 0], sizes = [1, 16], strides = [1, 1]} : vector<1x256xf32> to vector<1x16xf32>
    %47 = vector.extract_strided_slice %24 {offsets = [0, 16], sizes = [1, 16], strides = [1, 1]} : vector<1x256xf32> to vector<1x16xf32>
    %48 = vector.extract_strided_slice %24 {offsets = [0, 32], sizes = [1, 16], strides = [1, 1]} : vector<1x256xf32> to vector<1x16xf32>
    %49 = vector.extract_strided_slice %24 {offsets = [0, 48], sizes = [1, 16], strides = [1, 1]} : vector<1x256xf32> to vector<1x16xf32>
    %50 = vector.extract_strided_slice %24 {offsets = [0, 64], sizes = [1, 16], strides = [1, 1]} : vector<1x256xf32> to vector<1x16xf32>
    %51 = vector.extract_strided_slice %24 {offsets = [0, 80], sizes = [1, 16], strides = [1, 1]} : vector<1x256xf32> to vector<1x16xf32>
    %52 = vector.extract_strided_slice %24 {offsets = [0, 96], sizes = [1, 16], strides = [1, 1]} : vector<1x256xf32> to vector<1x16xf32>
    %53 = vector.extract_strided_slice %24 {offsets = [0, 112], sizes = [1, 16], strides = [1, 1]} : vector<1x256xf32> to vector<1x16xf32>
    %54 = vector.extract_strided_slice %24 {offsets = [0, 128], sizes = [1, 16], strides = [1, 1]} : vector<1x256xf32> to vector<1x16xf32>
    %55 = vector.extract_strided_slice %24 {offsets = [0, 144], sizes = [1, 16], strides = [1, 1]} : vector<1x256xf32> to vector<1x16xf32>
    %56 = vector.extract_strided_slice %24 {offsets = [0, 160], sizes = [1, 16], strides = [1, 1]} : vector<1x256xf32> to vector<1x16xf32>
    %57 = vector.extract_strided_slice %24 {offsets = [0, 176], sizes = [1, 16], strides = [1, 1]} : vector<1x256xf32> to vector<1x16xf32>
    %58 = vector.extract_strided_slice %24 {offsets = [0, 192], sizes = [1, 16], strides = [1, 1]} : vector<1x256xf32> to vector<1x16xf32>
    %59 = vector.extract_strided_slice %24 {offsets = [0, 208], sizes = [1, 16], strides = [1, 1]} : vector<1x256xf32> to vector<1x16xf32>
    %60 = vector.extract_strided_slice %24 {offsets = [0, 224], sizes = [1, 16], strides = [1, 1]} : vector<1x256xf32> to vector<1x16xf32>
    %61 = vector.extract_strided_slice %24 {offsets = [0, 240], sizes = [1, 16], strides = [1, 1]} : vector<1x256xf32> to vector<1x16xf32>
    %62 = tpu.concatenate %46, %47, %48, %49, %50, %51, %52, %53, %54, %55, %56, %57, %58, %59, %60, %61 in 0 : vector<1x16xf32>, vector<1x16xf32>, vector<1x16xf32>, vector<1x16xf32>, vector<1x16xf32>, vector<1x16xf32>, vector<1x16xf32>, vector<1x16xf32>, vector<1x16xf32>, vector<1x16xf32>, vector<1x16xf32>, vector<1x16xf32>, vector<1x16xf32>, vector<1x16xf32>, vector<1x16xf32>, vector<1x16xf32> -> vector<16x16xf32>
    %63 = tpu.concatenate %25, %62, %25 in 0 : vector<3x16xf32>, vector<16x16xf32>, vector<3x16xf32> -> vector<22x16xf32>
    %64 = tpu.concatenate %26, %63, %26 in 1 : vector<22x3xf32>, vector<22x16xf32>, vector<22x3xf32> -> vector<22x22xf32>
    %cst_17 = arith.constant 0.000000e+00 : f32
    %65 = vector.broadcast %cst_17 : f32 to vector<16x16xf32>
    %66 = vector.extract_strided_slice %45 {offsets = [0, 0], sizes = [22, 16], strides = [1, 1]} : vector<22x22xf32> to vector<22x16xf32>
    %c0_18 = arith.constant 0 : index
    %67 = memref.load %arg1[%c0_18] : memref<98xf32, #tpu.memory_space<smem>>
    %68 = vector.extract_strided_slice %66 {offsets = [0, 0], sizes = [16, 16], strides = [1, 1]} : vector<22x16xf32> to vector<16x16xf32>
    %69 = vector.broadcast %67 : f32 to vector<16x16xf32>
    %70 = arith.mulf %69, %68 : vector<16x16xf32>
    %71 = arith.addf %65, %70 : vector<16x16xf32>
    %c7 = arith.constant 7 : index
    %72 = memref.load %arg1[%c7] : memref<98xf32, #tpu.memory_space<smem>>
    %73 = vector.extract_strided_slice %66 {offsets = [1, 0], sizes = [16, 16], strides = [1, 1]} : vector<22x16xf32> to vector<16x16xf32>
    %74 = vector.broadcast %72 : f32 to vector<16x16xf32>
    %75 = arith.mulf %74, %73 : vector<16x16xf32>
    %76 = arith.addf %71, %75 : vector<16x16xf32>
    %c14 = arith.constant 14 : index
    %77 = memref.load %arg1[%c14] : memref<98xf32, #tpu.memory_space<smem>>
    %78 = vector.extract_strided_slice %66 {offsets = [2, 0], sizes = [16, 16], strides = [1, 1]} : vector<22x16xf32> to vector<16x16xf32>
    %79 = vector.broadcast %77 : f32 to vector<16x16xf32>
    %80 = arith.mulf %79, %78 : vector<16x16xf32>
    %81 = arith.addf %76, %80 : vector<16x16xf32>
    %c21 = arith.constant 21 : index
    %82 = memref.load %arg1[%c21] : memref<98xf32, #tpu.memory_space<smem>>
    %83 = vector.extract_strided_slice %66 {offsets = [3, 0], sizes = [16, 16], strides = [1, 1]} : vector<22x16xf32> to vector<16x16xf32>
    %84 = vector.broadcast %82 : f32 to vector<16x16xf32>
    %85 = arith.mulf %84, %83 : vector<16x16xf32>
    %86 = arith.addf %81, %85 : vector<16x16xf32>
    %c28 = arith.constant 28 : index
    %87 = memref.load %arg1[%c28] : memref<98xf32, #tpu.memory_space<smem>>
    %88 = vector.extract_strided_slice %66 {offsets = [4, 0], sizes = [16, 16], strides = [1, 1]} : vector<22x16xf32> to vector<16x16xf32>
    %89 = vector.broadcast %87 : f32 to vector<16x16xf32>
    %90 = arith.mulf %89, %88 : vector<16x16xf32>
    %91 = arith.addf %86, %90 : vector<16x16xf32>
    %c35 = arith.constant 35 : index
    %92 = memref.load %arg1[%c35] : memref<98xf32, #tpu.memory_space<smem>>
    %93 = vector.extract_strided_slice %66 {offsets = [5, 0], sizes = [16, 16], strides = [1, 1]} : vector<22x16xf32> to vector<16x16xf32>
    %94 = vector.broadcast %92 : f32 to vector<16x16xf32>
    %95 = arith.mulf %94, %93 : vector<16x16xf32>
    %96 = arith.addf %91, %95 : vector<16x16xf32>
    %c42 = arith.constant 42 : index
    %97 = memref.load %arg1[%c42] : memref<98xf32, #tpu.memory_space<smem>>
    %98 = vector.extract_strided_slice %66 {offsets = [6, 0], sizes = [16, 16], strides = [1, 1]} : vector<22x16xf32> to vector<16x16xf32>
    %99 = vector.broadcast %97 : f32 to vector<16x16xf32>
    %100 = arith.mulf %99, %98 : vector<16x16xf32>
    %101 = arith.addf %96, %100 : vector<16x16xf32>
    %102 = vector.extract_strided_slice %45 {offsets = [0, 1], sizes = [22, 16], strides = [1, 1]} : vector<22x22xf32> to vector<22x16xf32>
    %c1 = arith.constant 1 : index
    %103 = memref.load %arg1[%c1] : memref<98xf32, #tpu.memory_space<smem>>
    %104 = vector.extract_strided_slice %102 {offsets = [0, 0], sizes = [16, 16], strides = [1, 1]} : vector<22x16xf32> to vector<16x16xf32>
    %105 = vector.broadcast %103 : f32 to vector<16x16xf32>
    %106 = arith.mulf %105, %104 : vector<16x16xf32>
    %107 = arith.addf %101, %106 : vector<16x16xf32>
    %c8 = arith.constant 8 : index
    %108 = memref.load %arg1[%c8] : memref<98xf32, #tpu.memory_space<smem>>
    %109 = vector.extract_strided_slice %102 {offsets = [1, 0], sizes = [16, 16], strides = [1, 1]} : vector<22x16xf32> to vector<16x16xf32>
    %110 = vector.broadcast %108 : f32 to vector<16x16xf32>
    %111 = arith.mulf %110, %109 : vector<16x16xf32>
    %112 = arith.addf %107, %111 : vector<16x16xf32>
    %c15 = arith.constant 15 : index
    %113 = memref.load %arg1[%c15] : memref<98xf32, #tpu.memory_space<smem>>
    %114 = vector.extract_strided_slice %102 {offsets = [2, 0], sizes = [16, 16], strides = [1, 1]} : vector<22x16xf32> to vector<16x16xf32>
    %115 = vector.broadcast %113 : f32 to vector<16x16xf32>
    %116 = arith.mulf %115, %114 : vector<16x16xf32>
    %117 = arith.addf %112, %116 : vector<16x16xf32>
    %c22 = arith.constant 22 : index
    %118 = memref.load %arg1[%c22] : memref<98xf32, #tpu.memory_space<smem>>
    %119 = vector.extract_strided_slice %102 {offsets = [3, 0], sizes = [16, 16], strides = [1, 1]} : vector<22x16xf32> to vector<16x16xf32>
    %120 = vector.broadcast %118 : f32 to vector<16x16xf32>
    %121 = arith.mulf %120, %119 : vector<16x16xf32>
    %122 = arith.addf %117, %121 : vector<16x16xf32>
    %c29 = arith.constant 29 : index
    %123 = memref.load %arg1[%c29] : memref<98xf32, #tpu.memory_space<smem>>
    %124 = vector.extract_strided_slice %102 {offsets = [4, 0], sizes = [16, 16], strides = [1, 1]} : vector<22x16xf32> to vector<16x16xf32>
    %125 = vector.broadcast %123 : f32 to vector<16x16xf32>
    %126 = arith.mulf %125, %124 : vector<16x16xf32>
    %127 = arith.addf %122, %126 : vector<16x16xf32>
    %c36 = arith.constant 36 : index
    %128 = memref.load %arg1[%c36] : memref<98xf32, #tpu.memory_space<smem>>
    %129 = vector.extract_strided_slice %102 {offsets = [5, 0], sizes = [16, 16], strides = [1, 1]} : vector<22x16xf32> to vector<16x16xf32>
    %130 = vector.broadcast %128 : f32 to vector<16x16xf32>
    %131 = arith.mulf %130, %129 : vector<16x16xf32>
    %132 = arith.addf %127, %131 : vector<16x16xf32>
    %c43 = arith.constant 43 : index
    %133 = memref.load %arg1[%c43] : memref<98xf32, #tpu.memory_space<smem>>
    %134 = vector.extract_strided_slice %102 {offsets = [6, 0], sizes = [16, 16], strides = [1, 1]} : vector<22x16xf32> to vector<16x16xf32>
    %135 = vector.broadcast %133 : f32 to vector<16x16xf32>
    %136 = arith.mulf %135, %134 : vector<16x16xf32>
    %137 = arith.addf %132, %136 : vector<16x16xf32>
    %138 = vector.extract_strided_slice %45 {offsets = [0, 2], sizes = [22, 16], strides = [1, 1]} : vector<22x22xf32> to vector<22x16xf32>
    %c2 = arith.constant 2 : index
    %139 = memref.load %arg1[%c2] : memref<98xf32, #tpu.memory_space<smem>>
    %140 = vector.extract_strided_slice %138 {offsets = [0, 0], sizes = [16, 16], strides = [1, 1]} : vector<22x16xf32> to vector<16x16xf32>
    %141 = vector.broadcast %139 : f32 to vector<16x16xf32>
    %142 = arith.mulf %141, %140 : vector<16x16xf32>
    %143 = arith.addf %137, %142 : vector<16x16xf32>
    %c9 = arith.constant 9 : index
    %144 = memref.load %arg1[%c9] : memref<98xf32, #tpu.memory_space<smem>>
    %145 = vector.extract_strided_slice %138 {offsets = [1, 0], sizes = [16, 16], strides = [1, 1]} : vector<22x16xf32> to vector<16x16xf32>
    %146 = vector.broadcast %144 : f32 to vector<16x16xf32>
    %147 = arith.mulf %146, %145 : vector<16x16xf32>
    %148 = arith.addf %143, %147 : vector<16x16xf32>
    %c16 = arith.constant 16 : index
    %149 = memref.load %arg1[%c16] : memref<98xf32, #tpu.memory_space<smem>>
    %150 = vector.extract_strided_slice %138 {offsets = [2, 0], sizes = [16, 16], strides = [1, 1]} : vector<22x16xf32> to vector<16x16xf32>
    %151 = vector.broadcast %149 : f32 to vector<16x16xf32>
    %152 = arith.mulf %151, %150 : vector<16x16xf32>
    %153 = arith.addf %148, %152 : vector<16x16xf32>
    %c23 = arith.constant 23 : index
    %154 = memref.load %arg1[%c23] : memref<98xf32, #tpu.memory_space<smem>>
    %155 = vector.extract_strided_slice %138 {offsets = [3, 0], sizes = [16, 16], strides = [1, 1]} : vector<22x16xf32> to vector<16x16xf32>
    %156 = vector.broadcast %154 : f32 to vector<16x16xf32>
    %157 = arith.mulf %156, %155 : vector<16x16xf32>
    %158 = arith.addf %153, %157 : vector<16x16xf32>
    %c30 = arith.constant 30 : index
    %159 = memref.load %arg1[%c30] : memref<98xf32, #tpu.memory_space<smem>>
    %160 = vector.extract_strided_slice %138 {offsets = [4, 0], sizes = [16, 16], strides = [1, 1]} : vector<22x16xf32> to vector<16x16xf32>
    %161 = vector.broadcast %159 : f32 to vector<16x16xf32>
    %162 = arith.mulf %161, %160 : vector<16x16xf32>
    %163 = arith.addf %158, %162 : vector<16x16xf32>
    %c37 = arith.constant 37 : index
    %164 = memref.load %arg1[%c37] : memref<98xf32, #tpu.memory_space<smem>>
    %165 = vector.extract_strided_slice %138 {offsets = [5, 0], sizes = [16, 16], strides = [1, 1]} : vector<22x16xf32> to vector<16x16xf32>
    %166 = vector.broadcast %164 : f32 to vector<16x16xf32>
    %167 = arith.mulf %166, %165 : vector<16x16xf32>
    %168 = arith.addf %163, %167 : vector<16x16xf32>
    %c44 = arith.constant 44 : index
    %169 = memref.load %arg1[%c44] : memref<98xf32, #tpu.memory_space<smem>>
    %170 = vector.extract_strided_slice %138 {offsets = [6, 0], sizes = [16, 16], strides = [1, 1]} : vector<22x16xf32> to vector<16x16xf32>
    %171 = vector.broadcast %169 : f32 to vector<16x16xf32>
    %172 = arith.mulf %171, %170 : vector<16x16xf32>
    %173 = arith.addf %168, %172 : vector<16x16xf32>
    %174 = vector.extract_strided_slice %45 {offsets = [0, 3], sizes = [22, 16], strides = [1, 1]} : vector<22x22xf32> to vector<22x16xf32>
    %c3 = arith.constant 3 : index
    %175 = memref.load %arg1[%c3] : memref<98xf32, #tpu.memory_space<smem>>
    %176 = vector.extract_strided_slice %174 {offsets = [0, 0], sizes = [16, 16], strides = [1, 1]} : vector<22x16xf32> to vector<16x16xf32>
    %177 = vector.broadcast %175 : f32 to vector<16x16xf32>
    %178 = arith.mulf %177, %176 : vector<16x16xf32>
    %179 = arith.addf %173, %178 : vector<16x16xf32>
    %c10 = arith.constant 10 : index
    %180 = memref.load %arg1[%c10] : memref<98xf32, #tpu.memory_space<smem>>
    %181 = vector.extract_strided_slice %174 {offsets = [1, 0], sizes = [16, 16], strides = [1, 1]} : vector<22x16xf32> to vector<16x16xf32>
    %182 = vector.broadcast %180 : f32 to vector<16x16xf32>
    %183 = arith.mulf %182, %181 : vector<16x16xf32>
    %184 = arith.addf %179, %183 : vector<16x16xf32>
    %c17 = arith.constant 17 : index
    %185 = memref.load %arg1[%c17] : memref<98xf32, #tpu.memory_space<smem>>
    %186 = vector.extract_strided_slice %174 {offsets = [2, 0], sizes = [16, 16], strides = [1, 1]} : vector<22x16xf32> to vector<16x16xf32>
    %187 = vector.broadcast %185 : f32 to vector<16x16xf32>
    %188 = arith.mulf %187, %186 : vector<16x16xf32>
    %189 = arith.addf %184, %188 : vector<16x16xf32>
    %c24 = arith.constant 24 : index
    %190 = memref.load %arg1[%c24] : memref<98xf32, #tpu.memory_space<smem>>
    %191 = vector.extract_strided_slice %174 {offsets = [3, 0], sizes = [16, 16], strides = [1, 1]} : vector<22x16xf32> to vector<16x16xf32>
    %192 = vector.broadcast %190 : f32 to vector<16x16xf32>
    %193 = arith.mulf %192, %191 : vector<16x16xf32>
    %194 = arith.addf %189, %193 : vector<16x16xf32>
    %c31 = arith.constant 31 : index
    %195 = memref.load %arg1[%c31] : memref<98xf32, #tpu.memory_space<smem>>
    %196 = vector.extract_strided_slice %174 {offsets = [4, 0], sizes = [16, 16], strides = [1, 1]} : vector<22x16xf32> to vector<16x16xf32>
    %197 = vector.broadcast %195 : f32 to vector<16x16xf32>
    %198 = arith.mulf %197, %196 : vector<16x16xf32>
    %199 = arith.addf %194, %198 : vector<16x16xf32>
    %c38 = arith.constant 38 : index
    %200 = memref.load %arg1[%c38] : memref<98xf32, #tpu.memory_space<smem>>
    %201 = vector.extract_strided_slice %174 {offsets = [5, 0], sizes = [16, 16], strides = [1, 1]} : vector<22x16xf32> to vector<16x16xf32>
    %202 = vector.broadcast %200 : f32 to vector<16x16xf32>
    %203 = arith.mulf %202, %201 : vector<16x16xf32>
    %204 = arith.addf %199, %203 : vector<16x16xf32>
    %c45 = arith.constant 45 : index
    %205 = memref.load %arg1[%c45] : memref<98xf32, #tpu.memory_space<smem>>
    %206 = vector.extract_strided_slice %174 {offsets = [6, 0], sizes = [16, 16], strides = [1, 1]} : vector<22x16xf32> to vector<16x16xf32>
    %207 = vector.broadcast %205 : f32 to vector<16x16xf32>
    %208 = arith.mulf %207, %206 : vector<16x16xf32>
    %209 = arith.addf %204, %208 : vector<16x16xf32>
    %210 = vector.extract_strided_slice %45 {offsets = [0, 4], sizes = [22, 16], strides = [1, 1]} : vector<22x22xf32> to vector<22x16xf32>
    %c4 = arith.constant 4 : index
    %211 = memref.load %arg1[%c4] : memref<98xf32, #tpu.memory_space<smem>>
    %212 = vector.extract_strided_slice %210 {offsets = [0, 0], sizes = [16, 16], strides = [1, 1]} : vector<22x16xf32> to vector<16x16xf32>
    %213 = vector.broadcast %211 : f32 to vector<16x16xf32>
    %214 = arith.mulf %213, %212 : vector<16x16xf32>
    %215 = arith.addf %209, %214 : vector<16x16xf32>
    %c11 = arith.constant 11 : index
    %216 = memref.load %arg1[%c11] : memref<98xf32, #tpu.memory_space<smem>>
    %217 = vector.extract_strided_slice %210 {offsets = [1, 0], sizes = [16, 16], strides = [1, 1]} : vector<22x16xf32> to vector<16x16xf32>
    %218 = vector.broadcast %216 : f32 to vector<16x16xf32>
    %219 = arith.mulf %218, %217 : vector<16x16xf32>
    %220 = arith.addf %215, %219 : vector<16x16xf32>
    %c18 = arith.constant 18 : index
    %221 = memref.load %arg1[%c18] : memref<98xf32, #tpu.memory_space<smem>>
    %222 = vector.extract_strided_slice %210 {offsets = [2, 0], sizes = [16, 16], strides = [1, 1]} : vector<22x16xf32> to vector<16x16xf32>
    %223 = vector.broadcast %221 : f32 to vector<16x16xf32>
    %224 = arith.mulf %223, %222 : vector<16x16xf32>
    %225 = arith.addf %220, %224 : vector<16x16xf32>
    %c25 = arith.constant 25 : index
    %226 = memref.load %arg1[%c25] : memref<98xf32, #tpu.memory_space<smem>>
    %227 = vector.extract_strided_slice %210 {offsets = [3, 0], sizes = [16, 16], strides = [1, 1]} : vector<22x16xf32> to vector<16x16xf32>
    %228 = vector.broadcast %226 : f32 to vector<16x16xf32>
    %229 = arith.mulf %228, %227 : vector<16x16xf32>
    %230 = arith.addf %225, %229 : vector<16x16xf32>
    %c32 = arith.constant 32 : index
    %231 = memref.load %arg1[%c32] : memref<98xf32, #tpu.memory_space<smem>>
    %232 = vector.extract_strided_slice %210 {offsets = [4, 0], sizes = [16, 16], strides = [1, 1]} : vector<22x16xf32> to vector<16x16xf32>
    %233 = vector.broadcast %231 : f32 to vector<16x16xf32>
    %234 = arith.mulf %233, %232 : vector<16x16xf32>
    %235 = arith.addf %230, %234 : vector<16x16xf32>
    %c39 = arith.constant 39 : index
    %236 = memref.load %arg1[%c39] : memref<98xf32, #tpu.memory_space<smem>>
    %237 = vector.extract_strided_slice %210 {offsets = [5, 0], sizes = [16, 16], strides = [1, 1]} : vector<22x16xf32> to vector<16x16xf32>
    %238 = vector.broadcast %236 : f32 to vector<16x16xf32>
    %239 = arith.mulf %238, %237 : vector<16x16xf32>
    %240 = arith.addf %235, %239 : vector<16x16xf32>
    %c46 = arith.constant 46 : index
    %241 = memref.load %arg1[%c46] : memref<98xf32, #tpu.memory_space<smem>>
    %242 = vector.extract_strided_slice %210 {offsets = [6, 0], sizes = [16, 16], strides = [1, 1]} : vector<22x16xf32> to vector<16x16xf32>
    %243 = vector.broadcast %241 : f32 to vector<16x16xf32>
    %244 = arith.mulf %243, %242 : vector<16x16xf32>
    %245 = arith.addf %240, %244 : vector<16x16xf32>
    %246 = vector.extract_strided_slice %45 {offsets = [0, 5], sizes = [22, 16], strides = [1, 1]} : vector<22x22xf32> to vector<22x16xf32>
    %c5 = arith.constant 5 : index
    %247 = memref.load %arg1[%c5] : memref<98xf32, #tpu.memory_space<smem>>
    %248 = vector.extract_strided_slice %246 {offsets = [0, 0], sizes = [16, 16], strides = [1, 1]} : vector<22x16xf32> to vector<16x16xf32>
    %249 = vector.broadcast %247 : f32 to vector<16x16xf32>
    %250 = arith.mulf %249, %248 : vector<16x16xf32>
    %251 = arith.addf %245, %250 : vector<16x16xf32>
    %c12 = arith.constant 12 : index
    %252 = memref.load %arg1[%c12] : memref<98xf32, #tpu.memory_space<smem>>
    %253 = vector.extract_strided_slice %246 {offsets = [1, 0], sizes = [16, 16], strides = [1, 1]} : vector<22x16xf32> to vector<16x16xf32>
    %254 = vector.broadcast %252 : f32 to vector<16x16xf32>
    %255 = arith.mulf %254, %253 : vector<16x16xf32>
    %256 = arith.addf %251, %255 : vector<16x16xf32>
    %c19 = arith.constant 19 : index
    %257 = memref.load %arg1[%c19] : memref<98xf32, #tpu.memory_space<smem>>
    %258 = vector.extract_strided_slice %246 {offsets = [2, 0], sizes = [16, 16], strides = [1, 1]} : vector<22x16xf32> to vector<16x16xf32>
    %259 = vector.broadcast %257 : f32 to vector<16x16xf32>
    %260 = arith.mulf %259, %258 : vector<16x16xf32>
    %261 = arith.addf %256, %260 : vector<16x16xf32>
    %c26 = arith.constant 26 : index
    %262 = memref.load %arg1[%c26] : memref<98xf32, #tpu.memory_space<smem>>
    %263 = vector.extract_strided_slice %246 {offsets = [3, 0], sizes = [16, 16], strides = [1, 1]} : vector<22x16xf32> to vector<16x16xf32>
    %264 = vector.broadcast %262 : f32 to vector<16x16xf32>
    %265 = arith.mulf %264, %263 : vector<16x16xf32>
    %266 = arith.addf %261, %265 : vector<16x16xf32>
    %c33 = arith.constant 33 : index
    %267 = memref.load %arg1[%c33] : memref<98xf32, #tpu.memory_space<smem>>
    %268 = vector.extract_strided_slice %246 {offsets = [4, 0], sizes = [16, 16], strides = [1, 1]} : vector<22x16xf32> to vector<16x16xf32>
    %269 = vector.broadcast %267 : f32 to vector<16x16xf32>
    %270 = arith.mulf %269, %268 : vector<16x16xf32>
    %271 = arith.addf %266, %270 : vector<16x16xf32>
    %c40 = arith.constant 40 : index
    %272 = memref.load %arg1[%c40] : memref<98xf32, #tpu.memory_space<smem>>
    %273 = vector.extract_strided_slice %246 {offsets = [5, 0], sizes = [16, 16], strides = [1, 1]} : vector<22x16xf32> to vector<16x16xf32>
    %274 = vector.broadcast %272 : f32 to vector<16x16xf32>
    %275 = arith.mulf %274, %273 : vector<16x16xf32>
    %276 = arith.addf %271, %275 : vector<16x16xf32>
    %c47 = arith.constant 47 : index
    %277 = memref.load %arg1[%c47] : memref<98xf32, #tpu.memory_space<smem>>
    %278 = vector.extract_strided_slice %246 {offsets = [6, 0], sizes = [16, 16], strides = [1, 1]} : vector<22x16xf32> to vector<16x16xf32>
    %279 = vector.broadcast %277 : f32 to vector<16x16xf32>
    %280 = arith.mulf %279, %278 : vector<16x16xf32>
    %281 = arith.addf %276, %280 : vector<16x16xf32>
    %282 = vector.extract_strided_slice %45 {offsets = [0, 6], sizes = [22, 16], strides = [1, 1]} : vector<22x22xf32> to vector<22x16xf32>
    %c6 = arith.constant 6 : index
    %283 = memref.load %arg1[%c6] : memref<98xf32, #tpu.memory_space<smem>>
    %284 = vector.extract_strided_slice %282 {offsets = [0, 0], sizes = [16, 16], strides = [1, 1]} : vector<22x16xf32> to vector<16x16xf32>
    %285 = vector.broadcast %283 : f32 to vector<16x16xf32>
    %286 = arith.mulf %285, %284 : vector<16x16xf32>
    %287 = arith.addf %281, %286 : vector<16x16xf32>
    %c13 = arith.constant 13 : index
    %288 = memref.load %arg1[%c13] : memref<98xf32, #tpu.memory_space<smem>>
    %289 = vector.extract_strided_slice %282 {offsets = [1, 0], sizes = [16, 16], strides = [1, 1]} : vector<22x16xf32> to vector<16x16xf32>
    %290 = vector.broadcast %288 : f32 to vector<16x16xf32>
    %291 = arith.mulf %290, %289 : vector<16x16xf32>
    %292 = arith.addf %287, %291 : vector<16x16xf32>
    %c20 = arith.constant 20 : index
    %293 = memref.load %arg1[%c20] : memref<98xf32, #tpu.memory_space<smem>>
    %294 = vector.extract_strided_slice %282 {offsets = [2, 0], sizes = [16, 16], strides = [1, 1]} : vector<22x16xf32> to vector<16x16xf32>
    %295 = vector.broadcast %293 : f32 to vector<16x16xf32>
    %296 = arith.mulf %295, %294 : vector<16x16xf32>
    %297 = arith.addf %292, %296 : vector<16x16xf32>
    %c27 = arith.constant 27 : index
    %298 = memref.load %arg1[%c27] : memref<98xf32, #tpu.memory_space<smem>>
    %299 = vector.extract_strided_slice %282 {offsets = [3, 0], sizes = [16, 16], strides = [1, 1]} : vector<22x16xf32> to vector<16x16xf32>
    %300 = vector.broadcast %298 : f32 to vector<16x16xf32>
    %301 = arith.mulf %300, %299 : vector<16x16xf32>
    %302 = arith.addf %297, %301 : vector<16x16xf32>
    %c34 = arith.constant 34 : index
    %303 = memref.load %arg1[%c34] : memref<98xf32, #tpu.memory_space<smem>>
    %304 = vector.extract_strided_slice %282 {offsets = [4, 0], sizes = [16, 16], strides = [1, 1]} : vector<22x16xf32> to vector<16x16xf32>
    %305 = vector.broadcast %303 : f32 to vector<16x16xf32>
    %306 = arith.mulf %305, %304 : vector<16x16xf32>
    %307 = arith.addf %302, %306 : vector<16x16xf32>
    %c41 = arith.constant 41 : index
    %308 = memref.load %arg1[%c41] : memref<98xf32, #tpu.memory_space<smem>>
    %309 = vector.extract_strided_slice %282 {offsets = [5, 0], sizes = [16, 16], strides = [1, 1]} : vector<22x16xf32> to vector<16x16xf32>
    %310 = vector.broadcast %308 : f32 to vector<16x16xf32>
    %311 = arith.mulf %310, %309 : vector<16x16xf32>
    %312 = arith.addf %307, %311 : vector<16x16xf32>
    %c48 = arith.constant 48 : index
    %313 = memref.load %arg1[%c48] : memref<98xf32, #tpu.memory_space<smem>>
    %314 = vector.extract_strided_slice %282 {offsets = [6, 0], sizes = [16, 16], strides = [1, 1]} : vector<22x16xf32> to vector<16x16xf32>
    %315 = vector.broadcast %313 : f32 to vector<16x16xf32>
    %316 = arith.mulf %315, %314 : vector<16x16xf32>
    %317 = arith.addf %312, %316 : vector<16x16xf32>
    %318 = vector.extract_strided_slice %64 {offsets = [0, 0], sizes = [22, 16], strides = [1, 1]} : vector<22x22xf32> to vector<22x16xf32>
    %c49 = arith.constant 49 : index
    %319 = memref.load %arg1[%c49] : memref<98xf32, #tpu.memory_space<smem>>
    %320 = vector.extract_strided_slice %318 {offsets = [0, 0], sizes = [16, 16], strides = [1, 1]} : vector<22x16xf32> to vector<16x16xf32>
    %321 = vector.broadcast %319 : f32 to vector<16x16xf32>
    %322 = arith.mulf %321, %320 : vector<16x16xf32>
    %323 = arith.addf %317, %322 : vector<16x16xf32>
    %c56 = arith.constant 56 : index
    %324 = memref.load %arg1[%c56] : memref<98xf32, #tpu.memory_space<smem>>
    %325 = vector.extract_strided_slice %318 {offsets = [1, 0], sizes = [16, 16], strides = [1, 1]} : vector<22x16xf32> to vector<16x16xf32>
    %326 = vector.broadcast %324 : f32 to vector<16x16xf32>
    %327 = arith.mulf %326, %325 : vector<16x16xf32>
    %328 = arith.addf %323, %327 : vector<16x16xf32>
    %c63 = arith.constant 63 : index
    %329 = memref.load %arg1[%c63] : memref<98xf32, #tpu.memory_space<smem>>
    %330 = vector.extract_strided_slice %318 {offsets = [2, 0], sizes = [16, 16], strides = [1, 1]} : vector<22x16xf32> to vector<16x16xf32>
    %331 = vector.broadcast %329 : f32 to vector<16x16xf32>
    %332 = arith.mulf %331, %330 : vector<16x16xf32>
    %333 = arith.addf %328, %332 : vector<16x16xf32>
    %c70 = arith.constant 70 : index
    %334 = memref.load %arg1[%c70] : memref<98xf32, #tpu.memory_space<smem>>
    %335 = vector.extract_strided_slice %318 {offsets = [3, 0], sizes = [16, 16], strides = [1, 1]} : vector<22x16xf32> to vector<16x16xf32>
    %336 = vector.broadcast %334 : f32 to vector<16x16xf32>
    %337 = arith.mulf %336, %335 : vector<16x16xf32>
    %338 = arith.addf %333, %337 : vector<16x16xf32>
    %c77 = arith.constant 77 : index
    %339 = memref.load %arg1[%c77] : memref<98xf32, #tpu.memory_space<smem>>
    %340 = vector.extract_strided_slice %318 {offsets = [4, 0], sizes = [16, 16], strides = [1, 1]} : vector<22x16xf32> to vector<16x16xf32>
    %341 = vector.broadcast %339 : f32 to vector<16x16xf32>
    %342 = arith.mulf %341, %340 : vector<16x16xf32>
    %343 = arith.addf %338, %342 : vector<16x16xf32>
    %c84 = arith.constant 84 : index
    %344 = memref.load %arg1[%c84] : memref<98xf32, #tpu.memory_space<smem>>
    %345 = vector.extract_strided_slice %318 {offsets = [5, 0], sizes = [16, 16], strides = [1, 1]} : vector<22x16xf32> to vector<16x16xf32>
    %346 = vector.broadcast %344 : f32 to vector<16x16xf32>
    %347 = arith.mulf %346, %345 : vector<16x16xf32>
    %348 = arith.addf %343, %347 : vector<16x16xf32>
    %c91 = arith.constant 91 : index
    %349 = memref.load %arg1[%c91] : memref<98xf32, #tpu.memory_space<smem>>
    %350 = vector.extract_strided_slice %318 {offsets = [6, 0], sizes = [16, 16], strides = [1, 1]} : vector<22x16xf32> to vector<16x16xf32>
    %351 = vector.broadcast %349 : f32 to vector<16x16xf32>
    %352 = arith.mulf %351, %350 : vector<16x16xf32>
    %353 = arith.addf %348, %352 : vector<16x16xf32>
    %354 = vector.extract_strided_slice %64 {offsets = [0, 1], sizes = [22, 16], strides = [1, 1]} : vector<22x22xf32> to vector<22x16xf32>
    %c50 = arith.constant 50 : index
    %355 = memref.load %arg1[%c50] : memref<98xf32, #tpu.memory_space<smem>>
    %356 = vector.extract_strided_slice %354 {offsets = [0, 0], sizes = [16, 16], strides = [1, 1]} : vector<22x16xf32> to vector<16x16xf32>
    %357 = vector.broadcast %355 : f32 to vector<16x16xf32>
    %358 = arith.mulf %357, %356 : vector<16x16xf32>
    %359 = arith.addf %353, %358 : vector<16x16xf32>
    %c57 = arith.constant 57 : index
    %360 = memref.load %arg1[%c57] : memref<98xf32, #tpu.memory_space<smem>>
    %361 = vector.extract_strided_slice %354 {offsets = [1, 0], sizes = [16, 16], strides = [1, 1]} : vector<22x16xf32> to vector<16x16xf32>
    %362 = vector.broadcast %360 : f32 to vector<16x16xf32>
    %363 = arith.mulf %362, %361 : vector<16x16xf32>
    %364 = arith.addf %359, %363 : vector<16x16xf32>
    %c64 = arith.constant 64 : index
    %365 = memref.load %arg1[%c64] : memref<98xf32, #tpu.memory_space<smem>>
    %366 = vector.extract_strided_slice %354 {offsets = [2, 0], sizes = [16, 16], strides = [1, 1]} : vector<22x16xf32> to vector<16x16xf32>
    %367 = vector.broadcast %365 : f32 to vector<16x16xf32>
    %368 = arith.mulf %367, %366 : vector<16x16xf32>
    %369 = arith.addf %364, %368 : vector<16x16xf32>
    %c71 = arith.constant 71 : index
    %370 = memref.load %arg1[%c71] : memref<98xf32, #tpu.memory_space<smem>>
    %371 = vector.extract_strided_slice %354 {offsets = [3, 0], sizes = [16, 16], strides = [1, 1]} : vector<22x16xf32> to vector<16x16xf32>
    %372 = vector.broadcast %370 : f32 to vector<16x16xf32>
    %373 = arith.mulf %372, %371 : vector<16x16xf32>
    %374 = arith.addf %369, %373 : vector<16x16xf32>
    %c78 = arith.constant 78 : index
    %375 = memref.load %arg1[%c78] : memref<98xf32, #tpu.memory_space<smem>>
    %376 = vector.extract_strided_slice %354 {offsets = [4, 0], sizes = [16, 16], strides = [1, 1]} : vector<22x16xf32> to vector<16x16xf32>
    %377 = vector.broadcast %375 : f32 to vector<16x16xf32>
    %378 = arith.mulf %377, %376 : vector<16x16xf32>
    %379 = arith.addf %374, %378 : vector<16x16xf32>
    %c85 = arith.constant 85 : index
    %380 = memref.load %arg1[%c85] : memref<98xf32, #tpu.memory_space<smem>>
    %381 = vector.extract_strided_slice %354 {offsets = [5, 0], sizes = [16, 16], strides = [1, 1]} : vector<22x16xf32> to vector<16x16xf32>
    %382 = vector.broadcast %380 : f32 to vector<16x16xf32>
    %383 = arith.mulf %382, %381 : vector<16x16xf32>
    %384 = arith.addf %379, %383 : vector<16x16xf32>
    %c92 = arith.constant 92 : index
    %385 = memref.load %arg1[%c92] : memref<98xf32, #tpu.memory_space<smem>>
    %386 = vector.extract_strided_slice %354 {offsets = [6, 0], sizes = [16, 16], strides = [1, 1]} : vector<22x16xf32> to vector<16x16xf32>
    %387 = vector.broadcast %385 : f32 to vector<16x16xf32>
    %388 = arith.mulf %387, %386 : vector<16x16xf32>
    %389 = arith.addf %384, %388 : vector<16x16xf32>
    %390 = vector.extract_strided_slice %64 {offsets = [0, 2], sizes = [22, 16], strides = [1, 1]} : vector<22x22xf32> to vector<22x16xf32>
    %c51 = arith.constant 51 : index
    %391 = memref.load %arg1[%c51] : memref<98xf32, #tpu.memory_space<smem>>
    %392 = vector.extract_strided_slice %390 {offsets = [0, 0], sizes = [16, 16], strides = [1, 1]} : vector<22x16xf32> to vector<16x16xf32>
    %393 = vector.broadcast %391 : f32 to vector<16x16xf32>
    %394 = arith.mulf %393, %392 : vector<16x16xf32>
    %395 = arith.addf %389, %394 : vector<16x16xf32>
    %c58 = arith.constant 58 : index
    %396 = memref.load %arg1[%c58] : memref<98xf32, #tpu.memory_space<smem>>
    %397 = vector.extract_strided_slice %390 {offsets = [1, 0], sizes = [16, 16], strides = [1, 1]} : vector<22x16xf32> to vector<16x16xf32>
    %398 = vector.broadcast %396 : f32 to vector<16x16xf32>
    %399 = arith.mulf %398, %397 : vector<16x16xf32>
    %400 = arith.addf %395, %399 : vector<16x16xf32>
    %c65 = arith.constant 65 : index
    %401 = memref.load %arg1[%c65] : memref<98xf32, #tpu.memory_space<smem>>
    %402 = vector.extract_strided_slice %390 {offsets = [2, 0], sizes = [16, 16], strides = [1, 1]} : vector<22x16xf32> to vector<16x16xf32>
    %403 = vector.broadcast %401 : f32 to vector<16x16xf32>
    %404 = arith.mulf %403, %402 : vector<16x16xf32>
    %405 = arith.addf %400, %404 : vector<16x16xf32>
    %c72 = arith.constant 72 : index
    %406 = memref.load %arg1[%c72] : memref<98xf32, #tpu.memory_space<smem>>
    %407 = vector.extract_strided_slice %390 {offsets = [3, 0], sizes = [16, 16], strides = [1, 1]} : vector<22x16xf32> to vector<16x16xf32>
    %408 = vector.broadcast %406 : f32 to vector<16x16xf32>
    %409 = arith.mulf %408, %407 : vector<16x16xf32>
    %410 = arith.addf %405, %409 : vector<16x16xf32>
    %c79 = arith.constant 79 : index
    %411 = memref.load %arg1[%c79] : memref<98xf32, #tpu.memory_space<smem>>
    %412 = vector.extract_strided_slice %390 {offsets = [4, 0], sizes = [16, 16], strides = [1, 1]} : vector<22x16xf32> to vector<16x16xf32>
    %413 = vector.broadcast %411 : f32 to vector<16x16xf32>
    %414 = arith.mulf %413, %412 : vector<16x16xf32>
    %415 = arith.addf %410, %414 : vector<16x16xf32>
    %c86 = arith.constant 86 : index
    %416 = memref.load %arg1[%c86] : memref<98xf32, #tpu.memory_space<smem>>
    %417 = vector.extract_strided_slice %390 {offsets = [5, 0], sizes = [16, 16], strides = [1, 1]} : vector<22x16xf32> to vector<16x16xf32>
    %418 = vector.broadcast %416 : f32 to vector<16x16xf32>
    %419 = arith.mulf %418, %417 : vector<16x16xf32>
    %420 = arith.addf %415, %419 : vector<16x16xf32>
    %c93 = arith.constant 93 : index
    %421 = memref.load %arg1[%c93] : memref<98xf32, #tpu.memory_space<smem>>
    %422 = vector.extract_strided_slice %390 {offsets = [6, 0], sizes = [16, 16], strides = [1, 1]} : vector<22x16xf32> to vector<16x16xf32>
    %423 = vector.broadcast %421 : f32 to vector<16x16xf32>
    %424 = arith.mulf %423, %422 : vector<16x16xf32>
    %425 = arith.addf %420, %424 : vector<16x16xf32>
    %426 = vector.extract_strided_slice %64 {offsets = [0, 3], sizes = [22, 16], strides = [1, 1]} : vector<22x22xf32> to vector<22x16xf32>
    %c52 = arith.constant 52 : index
    %427 = memref.load %arg1[%c52] : memref<98xf32, #tpu.memory_space<smem>>
    %428 = vector.extract_strided_slice %426 {offsets = [0, 0], sizes = [16, 16], strides = [1, 1]} : vector<22x16xf32> to vector<16x16xf32>
    %429 = vector.broadcast %427 : f32 to vector<16x16xf32>
    %430 = arith.mulf %429, %428 : vector<16x16xf32>
    %431 = arith.addf %425, %430 : vector<16x16xf32>
    %c59 = arith.constant 59 : index
    %432 = memref.load %arg1[%c59] : memref<98xf32, #tpu.memory_space<smem>>
    %433 = vector.extract_strided_slice %426 {offsets = [1, 0], sizes = [16, 16], strides = [1, 1]} : vector<22x16xf32> to vector<16x16xf32>
    %434 = vector.broadcast %432 : f32 to vector<16x16xf32>
    %435 = arith.mulf %434, %433 : vector<16x16xf32>
    %436 = arith.addf %431, %435 : vector<16x16xf32>
    %c66 = arith.constant 66 : index
    %437 = memref.load %arg1[%c66] : memref<98xf32, #tpu.memory_space<smem>>
    %438 = vector.extract_strided_slice %426 {offsets = [2, 0], sizes = [16, 16], strides = [1, 1]} : vector<22x16xf32> to vector<16x16xf32>
    %439 = vector.broadcast %437 : f32 to vector<16x16xf32>
    %440 = arith.mulf %439, %438 : vector<16x16xf32>
    %441 = arith.addf %436, %440 : vector<16x16xf32>
    %c73 = arith.constant 73 : index
    %442 = memref.load %arg1[%c73] : memref<98xf32, #tpu.memory_space<smem>>
    %443 = vector.extract_strided_slice %426 {offsets = [3, 0], sizes = [16, 16], strides = [1, 1]} : vector<22x16xf32> to vector<16x16xf32>
    %444 = vector.broadcast %442 : f32 to vector<16x16xf32>
    %445 = arith.mulf %444, %443 : vector<16x16xf32>
    %446 = arith.addf %441, %445 : vector<16x16xf32>
    %c80 = arith.constant 80 : index
    %447 = memref.load %arg1[%c80] : memref<98xf32, #tpu.memory_space<smem>>
    %448 = vector.extract_strided_slice %426 {offsets = [4, 0], sizes = [16, 16], strides = [1, 1]} : vector<22x16xf32> to vector<16x16xf32>
    %449 = vector.broadcast %447 : f32 to vector<16x16xf32>
    %450 = arith.mulf %449, %448 : vector<16x16xf32>
    %451 = arith.addf %446, %450 : vector<16x16xf32>
    %c87 = arith.constant 87 : index
    %452 = memref.load %arg1[%c87] : memref<98xf32, #tpu.memory_space<smem>>
    %453 = vector.extract_strided_slice %426 {offsets = [5, 0], sizes = [16, 16], strides = [1, 1]} : vector<22x16xf32> to vector<16x16xf32>
    %454 = vector.broadcast %452 : f32 to vector<16x16xf32>
    %455 = arith.mulf %454, %453 : vector<16x16xf32>
    %456 = arith.addf %451, %455 : vector<16x16xf32>
    %c94 = arith.constant 94 : index
    %457 = memref.load %arg1[%c94] : memref<98xf32, #tpu.memory_space<smem>>
    %458 = vector.extract_strided_slice %426 {offsets = [6, 0], sizes = [16, 16], strides = [1, 1]} : vector<22x16xf32> to vector<16x16xf32>
    %459 = vector.broadcast %457 : f32 to vector<16x16xf32>
    %460 = arith.mulf %459, %458 : vector<16x16xf32>
    %461 = arith.addf %456, %460 : vector<16x16xf32>
    %462 = vector.extract_strided_slice %64 {offsets = [0, 4], sizes = [22, 16], strides = [1, 1]} : vector<22x22xf32> to vector<22x16xf32>
    %c53 = arith.constant 53 : index
    %463 = memref.load %arg1[%c53] : memref<98xf32, #tpu.memory_space<smem>>
    %464 = vector.extract_strided_slice %462 {offsets = [0, 0], sizes = [16, 16], strides = [1, 1]} : vector<22x16xf32> to vector<16x16xf32>
    %465 = vector.broadcast %463 : f32 to vector<16x16xf32>
    %466 = arith.mulf %465, %464 : vector<16x16xf32>
    %467 = arith.addf %461, %466 : vector<16x16xf32>
    %c60 = arith.constant 60 : index
    %468 = memref.load %arg1[%c60] : memref<98xf32, #tpu.memory_space<smem>>
    %469 = vector.extract_strided_slice %462 {offsets = [1, 0], sizes = [16, 16], strides = [1, 1]} : vector<22x16xf32> to vector<16x16xf32>
    %470 = vector.broadcast %468 : f32 to vector<16x16xf32>
    %471 = arith.mulf %470, %469 : vector<16x16xf32>
    %472 = arith.addf %467, %471 : vector<16x16xf32>
    %c67 = arith.constant 67 : index
    %473 = memref.load %arg1[%c67] : memref<98xf32, #tpu.memory_space<smem>>
    %474 = vector.extract_strided_slice %462 {offsets = [2, 0], sizes = [16, 16], strides = [1, 1]} : vector<22x16xf32> to vector<16x16xf32>
    %475 = vector.broadcast %473 : f32 to vector<16x16xf32>
    %476 = arith.mulf %475, %474 : vector<16x16xf32>
    %477 = arith.addf %472, %476 : vector<16x16xf32>
    %c74 = arith.constant 74 : index
    %478 = memref.load %arg1[%c74] : memref<98xf32, #tpu.memory_space<smem>>
    %479 = vector.extract_strided_slice %462 {offsets = [3, 0], sizes = [16, 16], strides = [1, 1]} : vector<22x16xf32> to vector<16x16xf32>
    %480 = vector.broadcast %478 : f32 to vector<16x16xf32>
    %481 = arith.mulf %480, %479 : vector<16x16xf32>
    %482 = arith.addf %477, %481 : vector<16x16xf32>
    %c81 = arith.constant 81 : index
    %483 = memref.load %arg1[%c81] : memref<98xf32, #tpu.memory_space<smem>>
    %484 = vector.extract_strided_slice %462 {offsets = [4, 0], sizes = [16, 16], strides = [1, 1]} : vector<22x16xf32> to vector<16x16xf32>
    %485 = vector.broadcast %483 : f32 to vector<16x16xf32>
    %486 = arith.mulf %485, %484 : vector<16x16xf32>
    %487 = arith.addf %482, %486 : vector<16x16xf32>
    %c88 = arith.constant 88 : index
    %488 = memref.load %arg1[%c88] : memref<98xf32, #tpu.memory_space<smem>>
    %489 = vector.extract_strided_slice %462 {offsets = [5, 0], sizes = [16, 16], strides = [1, 1]} : vector<22x16xf32> to vector<16x16xf32>
    %490 = vector.broadcast %488 : f32 to vector<16x16xf32>
    %491 = arith.mulf %490, %489 : vector<16x16xf32>
    %492 = arith.addf %487, %491 : vector<16x16xf32>
    %c95 = arith.constant 95 : index
    %493 = memref.load %arg1[%c95] : memref<98xf32, #tpu.memory_space<smem>>
    %494 = vector.extract_strided_slice %462 {offsets = [6, 0], sizes = [16, 16], strides = [1, 1]} : vector<22x16xf32> to vector<16x16xf32>
    %495 = vector.broadcast %493 : f32 to vector<16x16xf32>
    %496 = arith.mulf %495, %494 : vector<16x16xf32>
    %497 = arith.addf %492, %496 : vector<16x16xf32>
    %498 = vector.extract_strided_slice %64 {offsets = [0, 5], sizes = [22, 16], strides = [1, 1]} : vector<22x22xf32> to vector<22x16xf32>
    %c54 = arith.constant 54 : index
    %499 = memref.load %arg1[%c54] : memref<98xf32, #tpu.memory_space<smem>>
    %500 = vector.extract_strided_slice %498 {offsets = [0, 0], sizes = [16, 16], strides = [1, 1]} : vector<22x16xf32> to vector<16x16xf32>
    %501 = vector.broadcast %499 : f32 to vector<16x16xf32>
    %502 = arith.mulf %501, %500 : vector<16x16xf32>
    %503 = arith.addf %497, %502 : vector<16x16xf32>
    %c61 = arith.constant 61 : index
    %504 = memref.load %arg1[%c61] : memref<98xf32, #tpu.memory_space<smem>>
    %505 = vector.extract_strided_slice %498 {offsets = [1, 0], sizes = [16, 16], strides = [1, 1]} : vector<22x16xf32> to vector<16x16xf32>
    %506 = vector.broadcast %504 : f32 to vector<16x16xf32>
    %507 = arith.mulf %506, %505 : vector<16x16xf32>
    %508 = arith.addf %503, %507 : vector<16x16xf32>
    %c68 = arith.constant 68 : index
    %509 = memref.load %arg1[%c68] : memref<98xf32, #tpu.memory_space<smem>>
    %510 = vector.extract_strided_slice %498 {offsets = [2, 0], sizes = [16, 16], strides = [1, 1]} : vector<22x16xf32> to vector<16x16xf32>
    %511 = vector.broadcast %509 : f32 to vector<16x16xf32>
    %512 = arith.mulf %511, %510 : vector<16x16xf32>
    %513 = arith.addf %508, %512 : vector<16x16xf32>
    %c75 = arith.constant 75 : index
    %514 = memref.load %arg1[%c75] : memref<98xf32, #tpu.memory_space<smem>>
    %515 = vector.extract_strided_slice %498 {offsets = [3, 0], sizes = [16, 16], strides = [1, 1]} : vector<22x16xf32> to vector<16x16xf32>
    %516 = vector.broadcast %514 : f32 to vector<16x16xf32>
    %517 = arith.mulf %516, %515 : vector<16x16xf32>
    %518 = arith.addf %513, %517 : vector<16x16xf32>
    %c82 = arith.constant 82 : index
    %519 = memref.load %arg1[%c82] : memref<98xf32, #tpu.memory_space<smem>>
    %520 = vector.extract_strided_slice %498 {offsets = [4, 0], sizes = [16, 16], strides = [1, 1]} : vector<22x16xf32> to vector<16x16xf32>
    %521 = vector.broadcast %519 : f32 to vector<16x16xf32>
    %522 = arith.mulf %521, %520 : vector<16x16xf32>
    %523 = arith.addf %518, %522 : vector<16x16xf32>
    %c89 = arith.constant 89 : index
    %524 = memref.load %arg1[%c89] : memref<98xf32, #tpu.memory_space<smem>>
    %525 = vector.extract_strided_slice %498 {offsets = [5, 0], sizes = [16, 16], strides = [1, 1]} : vector<22x16xf32> to vector<16x16xf32>
    %526 = vector.broadcast %524 : f32 to vector<16x16xf32>
    %527 = arith.mulf %526, %525 : vector<16x16xf32>
    %528 = arith.addf %523, %527 : vector<16x16xf32>
    %c96 = arith.constant 96 : index
    %529 = memref.load %arg1[%c96] : memref<98xf32, #tpu.memory_space<smem>>
    %530 = vector.extract_strided_slice %498 {offsets = [6, 0], sizes = [16, 16], strides = [1, 1]} : vector<22x16xf32> to vector<16x16xf32>
    %531 = vector.broadcast %529 : f32 to vector<16x16xf32>
    %532 = arith.mulf %531, %530 : vector<16x16xf32>
    %533 = arith.addf %528, %532 : vector<16x16xf32>
    %534 = vector.extract_strided_slice %64 {offsets = [0, 6], sizes = [22, 16], strides = [1, 1]} : vector<22x22xf32> to vector<22x16xf32>
    %c55 = arith.constant 55 : index
    %535 = memref.load %arg1[%c55] : memref<98xf32, #tpu.memory_space<smem>>
    %536 = vector.extract_strided_slice %534 {offsets = [0, 0], sizes = [16, 16], strides = [1, 1]} : vector<22x16xf32> to vector<16x16xf32>
    %537 = vector.broadcast %535 : f32 to vector<16x16xf32>
    %538 = arith.mulf %537, %536 : vector<16x16xf32>
    %539 = arith.addf %533, %538 : vector<16x16xf32>
    %c62 = arith.constant 62 : index
    %540 = memref.load %arg1[%c62] : memref<98xf32, #tpu.memory_space<smem>>
    %541 = vector.extract_strided_slice %534 {offsets = [1, 0], sizes = [16, 16], strides = [1, 1]} : vector<22x16xf32> to vector<16x16xf32>
    %542 = vector.broadcast %540 : f32 to vector<16x16xf32>
    %543 = arith.mulf %542, %541 : vector<16x16xf32>
    %544 = arith.addf %539, %543 : vector<16x16xf32>
    %c69 = arith.constant 69 : index
    %545 = memref.load %arg1[%c69] : memref<98xf32, #tpu.memory_space<smem>>
    %546 = vector.extract_strided_slice %534 {offsets = [2, 0], sizes = [16, 16], strides = [1, 1]} : vector<22x16xf32> to vector<16x16xf32>
    %547 = vector.broadcast %545 : f32 to vector<16x16xf32>
    %548 = arith.mulf %547, %546 : vector<16x16xf32>
    %549 = arith.addf %544, %548 : vector<16x16xf32>
    %c76 = arith.constant 76 : index
    %550 = memref.load %arg1[%c76] : memref<98xf32, #tpu.memory_space<smem>>
    %551 = vector.extract_strided_slice %534 {offsets = [3, 0], sizes = [16, 16], strides = [1, 1]} : vector<22x16xf32> to vector<16x16xf32>
    %552 = vector.broadcast %550 : f32 to vector<16x16xf32>
    %553 = arith.mulf %552, %551 : vector<16x16xf32>
    %554 = arith.addf %549, %553 : vector<16x16xf32>
    %c83 = arith.constant 83 : index
    %555 = memref.load %arg1[%c83] : memref<98xf32, #tpu.memory_space<smem>>
    %556 = vector.extract_strided_slice %534 {offsets = [4, 0], sizes = [16, 16], strides = [1, 1]} : vector<22x16xf32> to vector<16x16xf32>
    %557 = vector.broadcast %555 : f32 to vector<16x16xf32>
    %558 = arith.mulf %557, %556 : vector<16x16xf32>
    %559 = arith.addf %554, %558 : vector<16x16xf32>
    %c90 = arith.constant 90 : index
    %560 = memref.load %arg1[%c90] : memref<98xf32, #tpu.memory_space<smem>>
    %561 = vector.extract_strided_slice %534 {offsets = [5, 0], sizes = [16, 16], strides = [1, 1]} : vector<22x16xf32> to vector<16x16xf32>
    %562 = vector.broadcast %560 : f32 to vector<16x16xf32>
    %563 = arith.mulf %562, %561 : vector<16x16xf32>
    %564 = arith.addf %559, %563 : vector<16x16xf32>
    %c97 = arith.constant 97 : index
    %565 = memref.load %arg1[%c97] : memref<98xf32, #tpu.memory_space<smem>>
    %566 = vector.extract_strided_slice %534 {offsets = [6, 0], sizes = [16, 16], strides = [1, 1]} : vector<22x16xf32> to vector<16x16xf32>
    %567 = vector.broadcast %565 : f32 to vector<16x16xf32>
    %568 = arith.mulf %567, %566 : vector<16x16xf32>
    %569 = arith.addf %564, %568 : vector<16x16xf32>
    %cst_19 = arith.constant 0.000000e+00 : f32
    %570 = vector.broadcast %cst_19 : f32 to vector<16x16xf32>
    %571 = arith.subf %570, %569 : vector<16x16xf32>
    %572 = math.exp %571 : vector<16x16xf32>
    %cst_20 = arith.constant 1.000000e+00 : f32
    %573 = vector.broadcast %cst_20 : f32 to vector<16x16xf32>
    %574 = arith.addf %573, %572 : vector<16x16xf32>
    %575 = tpu.reciprocal %574 {approx = true} : vector<16x16xf32> -> vector<16x16xf32>
    %576 = vector.extract_strided_slice %575 {offsets = [0, 0], sizes = [1, 16], strides = [1, 1]} : vector<16x16xf32> to vector<1x16xf32>
    %577 = vector.extract_strided_slice %575 {offsets = [1, 0], sizes = [1, 16], strides = [1, 1]} : vector<16x16xf32> to vector<1x16xf32>
    %578 = vector.extract_strided_slice %575 {offsets = [2, 0], sizes = [1, 16], strides = [1, 1]} : vector<16x16xf32> to vector<1x16xf32>
    %579 = vector.extract_strided_slice %575 {offsets = [3, 0], sizes = [1, 16], strides = [1, 1]} : vector<16x16xf32> to vector<1x16xf32>
    %580 = vector.extract_strided_slice %575 {offsets = [4, 0], sizes = [1, 16], strides = [1, 1]} : vector<16x16xf32> to vector<1x16xf32>
    %581 = vector.extract_strided_slice %575 {offsets = [5, 0], sizes = [1, 16], strides = [1, 1]} : vector<16x16xf32> to vector<1x16xf32>
    %582 = vector.extract_strided_slice %575 {offsets = [6, 0], sizes = [1, 16], strides = [1, 1]} : vector<16x16xf32> to vector<1x16xf32>
    %583 = vector.extract_strided_slice %575 {offsets = [7, 0], sizes = [1, 16], strides = [1, 1]} : vector<16x16xf32> to vector<1x16xf32>
    %584 = vector.extract_strided_slice %575 {offsets = [8, 0], sizes = [1, 16], strides = [1, 1]} : vector<16x16xf32> to vector<1x16xf32>
    %585 = vector.extract_strided_slice %575 {offsets = [9, 0], sizes = [1, 16], strides = [1, 1]} : vector<16x16xf32> to vector<1x16xf32>
    %586 = vector.extract_strided_slice %575 {offsets = [10, 0], sizes = [1, 16], strides = [1, 1]} : vector<16x16xf32> to vector<1x16xf32>
    %587 = vector.extract_strided_slice %575 {offsets = [11, 0], sizes = [1, 16], strides = [1, 1]} : vector<16x16xf32> to vector<1x16xf32>
    %588 = vector.extract_strided_slice %575 {offsets = [12, 0], sizes = [1, 16], strides = [1, 1]} : vector<16x16xf32> to vector<1x16xf32>
    %589 = vector.extract_strided_slice %575 {offsets = [13, 0], sizes = [1, 16], strides = [1, 1]} : vector<16x16xf32> to vector<1x16xf32>
    %590 = vector.extract_strided_slice %575 {offsets = [14, 0], sizes = [1, 16], strides = [1, 1]} : vector<16x16xf32> to vector<1x16xf32>
    %591 = vector.extract_strided_slice %575 {offsets = [15, 0], sizes = [1, 16], strides = [1, 1]} : vector<16x16xf32> to vector<1x16xf32>
    %592 = tpu.concatenate %576, %577, %578, %579, %580, %581, %582, %583, %584, %585, %586, %587, %588, %589, %590, %591 in 1 : vector<1x16xf32>, vector<1x16xf32>, vector<1x16xf32>, vector<1x16xf32>, vector<1x16xf32>, vector<1x16xf32>, vector<1x16xf32>, vector<1x16xf32>, vector<1x16xf32>, vector<1x16xf32>, vector<1x16xf32>, vector<1x16xf32>, vector<1x16xf32>, vector<1x16xf32>, vector<1x16xf32>, vector<1x16xf32> -> vector<1x256xf32>
    %c0_21 = arith.constant 0 : index
    %c0_22 = arith.constant 0 : index
    %593 = vector.load %arg6[%c0_21, %c0_22] : memref<4x256xf32, #tpu.memory_space<vmem>>, vector<4x256xf32>
    %594 = vector.broadcast %592 : vector<1x256xf32> to vector<4x256xf32>
    %595 = arith.mulf %593, %594 : vector<4x256xf32>
    %c0_23 = arith.constant 0 : index
    %c0_24 = arith.constant 0 : index
    %c0_25 = arith.constant 0 : index
    %596 = vector.load %arg5[%c0_23, %c0_24, %c0_25] : memref<1x4x256xf32, #tpu.memory_space<vmem>>, vector<1x4x256xf32>
    %597 = vector.shape_cast %596 : vector<1x4x256xf32> to vector<4x256xf32>
    %598 = vector.shape_cast %595 : vector<4x256xf32> to vector<1x4x256xf32>
    tpu.vector_store %arg5[%c0_23, %c0_24, %c0_25], %598 {strides = array<i32>} : memref<1x4x256xf32, #tpu.memory_space<vmem>>, vector<1x4x256xf32>,
    return
  }
  func.func @transform_0(%arg0: i32, %arg1: memref<98xf32, #tpu.memory_space<smem>>) -> (i32, i32, i32) {
    %c0_i32 = arith.constant 0 : i32
    %c0_i32_0 = arith.constant 0 : i32
    %c0_i32_1 = arith.constant 0 : i32
    return %arg0, %c0_i32, %c0_i32_0 : i32, i32, i32
  }
  func.func @transform_1(%arg0: i32, %arg1: memref<98xf32, #tpu.memory_space<smem>>) -> (i32, i32) {
    %c0_i32 = arith.constant 0 : i32
    %c0_i32_0 = arith.constant 0 : i32
    %c0_i32_1 = arith.constant 0 : i32
    return %c0_i32, %c0_i32_0 : i32, i32
  }
  func.func @transform_2(%arg0: i32, %arg1: memref<98xf32, #tpu.memory_space<smem>>) -> (i32, i32) {
    %c0_i32 = arith.constant 0 : i32
    %c0_i32_0 = arith.constant 0 : i32
    %c0_i32_1 = arith.constant 0 : i32
    return %c0_i32, %c0_i32_0 : i32, i32
  }
  func.func @transform_3(%arg0: i32, %arg1: memref<98xf32, #tpu.memory_space<smem>>) -> (i32, i32, i32) {
    %c0_i32 = arith.constant 0 : i32
    %c0_i32_0 = arith.constant 0 : i32
    %c0_i32_1 = arith.constant 0 : i32
    return %arg0, %c0_i32, %c0_i32_0 : i32, i32, i32
  }
}

</mosaic_0001>

<bundles_post_ra>
// kernel: cbam_forward.1
= control target key start
LH: loop header
LB: loop body
LE: loop exit
PB: predicated region body
PF: predicated region fallthrough
CT: control target
= control target key end

     0   :  { %s5080_s0 = inlined_call_operand.vmem [shape: f32[98], index: 0, kind: input, shape index: {}]   ;;  %s5081_s1 = inlined_call_operand.vmem [shape: f32[2,4,256], index: 1, kind: input, shape index: {}]   ;;  %s5082_s2 = inlined_call_operand.vmem [shape: f32[4,4], index: 2, kind: input, shape index: {}]   ;;  %s5083_s3 = inlined_call_operand.vmem [shape: f32[4,1], index: 3, kind: input, shape index: {}]   ;;  %s5084_s4 = inlined_call_operand.vmem [shape: f32[2,4,256], index: 4, kind: output, shape index: {}]  }
   0x1   :  { %s9_s17 = sshll.u32 %s5080_s0, 4  ;;  %s10_s17 = int_to_ptr.vmem [resolvable:$true] %s9_s17 }
   0x2   :  { %s2712_s18 = scalar_lea.vmem %s10_s17, 16  ;;  %p2717_p1 = scmp.lt.s32.totalorder %s10_s17, %s10_s17 }
   0x3   :  { %p2713_p0 = scmp.ne.s32.totalorder %s10_s17, %s2712_s18  ;;  %p2718_p2 = scmp.lt.s32.totalorder %s2712_s18, %s2712_s18 }
   0x5   :  { %p2719_p3 = por %p2718_p2, %p2717_p1 }
   0x7   :  { %p2720_p4 = pnand %p2719_p3, %p2713_p0 }
   0x9   :  { %2723 = shalt.err (!%p2720_p4)  }
   0xa   :  { %s2734_s19 = smov [#allocation4]  }
   0xb   :  { %12 = dma.vmem_to_smem %s10_s17, 16, %s2734_s19, [#allocation3] }
   0xc   :  { %2728 = dma.done.wait [#allocation3], 16 }
   0xd   :  { %2729 = vsyncadd [#allocation3], 4294967280 }
   0xe   :  { %14 = sfence }
   0xf   :  { %s2781_s20 = smov 0  }
  0x10 LB: > { %s2552_s0 = sadd.s32 4294967295, %s2732_s20   ;;  %p2556_p5 = scmp.ge.s32.totalorder %s2732_s20, 1  ;;  %s2732_s20 = sphi %s2781_s20, %s20_s20  }
  0x11   : > { %p144_p6 = scmp.lt.s32.totalorder %s2732_s20, 3 }
  0x13   : > { %p145_p7 = pnand %p2556_p5, %p144_p6 }
  0x15   : > { %148 = sbr.rel (%p145_p7) target bundleno = 1500 (0x5dc), region = 32 }
  0x1c   : > { %p168_p8 = scmp.lt.s32.totalorder %s2552_s0, 1  ;;  %vm182_vm0 = vcmask 1043456   ;;  %v2735_v5 = vmov 0.0   ;;  %vm2736_vm1 = vmmov 0   ;;  %v189_v8 = vld [vmem:[%s5082_s2] sm:$0xf]  ;;  %v280_v21 = vlaneseq }
  0x1d   : > { %2666 = vmatprep.subr.mxu0 %v2735_v5  ;;  %2668 = vmatprep.mubr.msk.f32.mxu0 %vm2736_vm1, %v2735_v5  ;;  %vm191_vm2 = vcmask 31744   ;;  %v2737_v9 = vmov 0   ;;  %v190_v10 = vld [vmem:[%s5083_s3] sm:$0xf]  ;;  %v2738_v19 = vmov 839922192  }
  0x1e   : > { %s5267_s0 = smov (!%p168_p8, %s2552_s0), 1  ;;  %2698 = vset.pattern.permute.xlu0 %v2737_v9  ;;  %v278_v20 = vunpack.c.l.s4 %v2738_v19  ;;  %v2806_v23 = vshrl.u32 %v280_v21, 7  ;;  %s2739_s29 = smov 96   ;;  %vm365_vm3 = vcmask 1040384   ;;  %vm367_vm4 = vcmask 1041408  }
  0x1f   : > { %s2662_s21 = sshll.u32 %s5267_s0, 3  ;;  %s2740_s30 = smov 112   ;;  %vm369_vm5 = vcmask 1042432   ;;  %vm372_vm6 = vcmask 1044480   ;;  %vm374_vm7 = vcmask 1045504   ;;  %vm376_vm8 = vcmask 1046528  }
  0x20   : > { %s172_s24 = scalar_lea.vmem %s5081_s1, %s2662_s21  ;;  %v279_v22 = vunpack.c.0.s8 %v278_v20  ;;  %5107 = vst [vmem:[#allocation6_spill] sm:$0xff] %v2806_v23  ;;  %s2741_s5 = smov 64   ;;  %vm405_vm9 = vcmask 23552   ;;  %vm409_vm10 = vcmask 154624   ;;  %vm2461_vm11 = vcmask 130048  }
  0x21   : > { %v178_v0 = vld [vmem:[%s172_s24] sm:$0xff]  ;;  %s2742_s6 = smov 80   ;;  %s2743_s7 = smov 32   ;;  %vm2463_vm12 = vcmask 261120   ;;  %vm2465_vm13 = vcmask 392192   ;;  %vm2467_vm14 = vcmask 523264  }
  0x22   : > { %v180_v1 = vcombine.high %v178_v0, %v178_v0  ;;  %v183_v2 = vsel %vm182_vm0, %v178_v0, 0.0  ;;  %v282_v24 = vsub.s32 %v279_v22, %v2806_v23  ;;  %s2744_s8 = smov 48   ;;  %s2745_s9 = smov 16   ;;  %vm2469_vm15 = vcmask 654336  }
  0x23   : > { %s2746_s10 = smov 3   ;;  %s2917_s11 = sld [smem:[#allocation4 + $0x32]]  ;;  %vm2473_vm1 = vcmask 916480  }
  0x24   : > { %v184_v3 = vsel %vm182_vm0, %v180_v1, 0.0  ;;  %s2919_s12 = sld [smem:[#allocation4 + $0x33]]  ;;  %s2922_s13 = sld [smem:[#allocation4 + $0x34]] }
  0x25   : > { %v185_v4 = vadd.f32 %v184_v3, %v183_v2  ;;  %s2747_s14 = smov 127   ;;  %s2748_s15 = smov 126  }
  0x26   : > { %s2749_s16 = smov 125   ;;  %s2936_s17 = sld [smem:[#allocation4 + $0x1]] }
  0x27   : > { %186 = vadd.xlane.f32.xlu0 %v185_v4  ;;  %s2938_s18 = sld [smem:[#allocation4 + $0x2]]  ;;  %s2941_s19 = sld [smem:[#allocation4 + $0x3]] }
  0x28   : > { %s2951_s22 = sld [smem:[#allocation4 + $0x4]]  ;;  %s2958_s23 = sld [smem:[#allocation4 + $0x5]] }
  0x29   : > { %s2619_s24 = sld [smem:[#allocation4 + $0x39]]  ;;  %s2965_s25 = sld [smem:[#allocation4 + $0x6]] }
  0x2a   : > { %s2620_s26 = sld [smem:[#allocation4 + $0x40]]  ;;  %s2750_s27 = smov 124  }
  0x2b   : > { %s2621_s28 = sld [smem:[#allocation4 + $0x47]] }
  0xb4   : > { %v187_v6 = vpop.xlane.xlu0 %186 }
  0xb5   : > { %v188_v7 = vmul.f32 0.00390625, %v187_v6 }
  0xb7   : > { %2667 = vmatpush3.msk.msra.mxu0 %vm182_vm0, %v188_v7 }
  0xb8   : > { %2669 = vmatmul.mubr.msk.f32.vlgmr.msra.gmra.mrb[0].mxu0 %vm191_vm2, %v189_v8 }
 0x18b   : > { %v264_v11 = vpop.f32.mrb[0].mxu0 }
 0x18c   : > { %v265_v12 = vadd.f32 %v264_v11, %v190_v10  ;;  %v2670_v13 = vpop.f32.mrb[1].mxu0 }
 0x18e   : > { %v268_v14 = vsub.f32 0.0, %v265_v12 }
 0x190   : > { %v269_v15 = vmul.f32 1.442695, %v268_v14 }
 0x192   : > { %2700 = vpow2.f32 %v269_v15 }
 0x19c   : > { %v2701_v16 = vpop.eup %2700 }
 0x19d   : > { %v271_v17 = vadd.f32 1.0, %v2701_v16 }
 0x19f   : > { %2702 = vrcp.f32 %v271_v17 }
 0x1a9   : > { %v2703_v18 = vpop.eup %2702 }
 0x1aa   : > { %275 = vperm.xlu0 %2698, %v2703_v18  }
 0x229   : > { %v276_v25 = vpop.permute.xlu0 %275 }
 0x22a   : > { %v283_v26 = vrot.slane %v276_v25, %v282_v24 }
 0x22c   : > { %v2809_v27 = vmul.f32 %v283_v26, %v178_v0 }
 0x22e   : > { %5108 = vst [vmem:[#allocation7_spill] sm:$0xff] %v2809_v27  ;;  %v288_v28 = vcombine.high %v2809_v27, %v2809_v27  ;;  %v290_v29 = vsel %vm182_vm0, %v2809_v27, 0.0  ;;  %v307_v30 = vsel %vm182_vm0, %v2809_v27, -inf }
 0x22f   : > { %v291_v31 = vrot.slane %v290_v29, 4  ;;  %v308_v32 = vrot.slane %v307_v30, 4 }
 0x230   : > { %v314_v35 = vsel %vm182_vm0, %v288_v28, -inf  ;;  %v297_v51 = vsel %vm182_vm0, %v288_v28, 0.0 }
 0x231   : > { %v292_v33 = vadd.f32 %v291_v31, %v290_v29  ;;  %v309_v34 = vmax.f32 %v307_v30, %v308_v32  ;;  %v315_v39 = vrot.slane %v314_v35, 4  ;;  %v298_v52 = vrot.slane %v297_v51, 4 }
 0x233   : > { %v310_v36 = vrot.slane %v309_v34, 2  ;;  %v293_v37 = vrot.slane %v292_v33, 2  ;;  %v316_v43 = vmax.f32 %v314_v35, %v315_v39  ;;  %v299_v53 = vadd.f32 %v298_v52, %v297_v51 }
 0x235   : > { %v311_v38 = vmax.f32 %v309_v34, %v310_v36  ;;  %v294_v41 = vadd.f32 %v293_v37, %v292_v33  ;;  %v317_v45 = vrot.slane %v316_v43, 2  ;;  %v300_v54 = vrot.slane %v299_v53, 2 }
 0x237   : > { %v312_v40 = vrot.slane %v311_v38, 1  ;;  %v295_v44 = vrot.slane %v294_v41, 1  ;;  %v318_v47 = vmax.f32 %v316_v43, %v317_v45  ;;  %v301_v55 = vadd.f32 %v300_v54, %v299_v53 }
 0x239   : > { %v313_v42 = vmax.f32 %v311_v38, %v312_v40  ;;  %v296_v46 = vadd.f32 %v295_v44, %v294_v41  ;;  %v319_v49 = vrot.slane %v318_v47, 1  ;;  %v302_v56 = vrot.slane %v301_v55, 1 }
 0x23b   : > { %417 = vrot.lane.b32.xlu0 %v313_v42, %s2739_s29  ;;  %414 = vrot.lane.b32.xlu1 %v313_v42, %s2740_s30  ;;  %v2824_v48 = vmul.f32 0.25, %v296_v46  ;;  %v2829_v50 = vmax.f32 %v318_v47, %v319_v49  ;;  %v303_v57 = vadd.f32 %v302_v56, %v301_v55 }
 0x23d   : > { %v2858_v58 = vmul.f32 0.25, %v303_v57 }
 0x23f   : > { %423 = vrot.lane.b32.xlu0 %v313_v42, %s2741_s5  ;;  %420 = vrot.lane.b32.xlu1 %v313_v42, %s2742_s6 }
 0x243   : > { %429 = vrot.lane.b32.xlu0 %v313_v42, %s2743_s7  ;;  %426 = vrot.lane.b32.xlu1 %v313_v42, %s2744_s8 }
 0x247   : > { %432 = vrot.lane.b32.xlu1 %v313_v42, %s2745_s9  ;;  %340 = vrot.lane.b32.xlu0 %v2824_v48, %s2745_s9 }
 0x24b   : > { %322 = vrot.lane.b32.xlu1 %v2824_v48, %s2740_s30  ;;  %436 = vrot.lane.b32.xlu0 %v2829_v50, %s2740_s30 }
 0x24f   : > { %325 = vrot.lane.b32.xlu1 %v2824_v48, %s2739_s29  ;;  %442 = vrot.lane.b32.xlu0 %v2829_v50, %s2742_s6 }
 0x253   : > { %328 = vrot.lane.b32.xlu1 %v2824_v48, %s2742_s6  ;;  %448 = vrot.lane.b32.xlu0 %v2829_v50, %s2744_s8 }
 0x257   : > { %331 = vrot.lane.b32.xlu1 %v2824_v48, %s2741_s5  ;;  %454 = vrot.lane.b32.xlu0 %v2829_v50, %s2745_s9 }
 0x25b   : > { %334 = vrot.lane.b32.xlu1 %v2824_v48, %s2744_s8 }
 0x25f   : > { %337 = vrot.lane.b32.xlu1 %v2824_v48, %s2743_s7 }
 0x263   : > { %439 = vrot.lane.b32.xlu1 %v2829_v50, %s2739_s29 }
 0x267   : > { %445 = vrot.lane.b32.xlu1 %v2829_v50, %s2741_s5 }
 0x26b   : > { %451 = vrot.lane.b32.xlu1 %v2829_v50, %s2743_s7 }
 0x26f   : > { %344 = vrot.lane.b32.xlu1 %v2858_v58, %s2740_s30 }
 0x273   : > { %347 = vrot.lane.b32.xlu1 %v2858_v58, %s2739_s29 }
 0x277   : > { %350 = vrot.lane.b32.xlu1 %v2858_v58, %s2742_s6 }
 0x27b   : > { %353 = vrot.lane.b32.xlu1 %v2858_v58, %s2741_s5 }
 0x27f   : > { %356 = vrot.lane.b32.xlu1 %v2858_v58, %s2744_s8 }
 0x283   : > { %359 = vrot.lane.b32.xlu1 %v2858_v58, %s2743_s7 }
 0x287   : > { %362 = vrot.lane.b32.xlu1 %v2858_v58, %s2745_s9 }
 0x2ad   : > { %v418_v59 = vpop.permute.xlu0 %417  ;;  %v415_v60 = vpop.permute.xlu1 %414 }
 0x2ae   : > { %v457_v61 = vsel %vm365_vm3, %v313_v42, %v415_v60 }
 0x2af   : > { %v458_v63 = vsel %vm367_vm4, %v457_v61, %v418_v59 }
 0x2b1   : > { %v424_v62 = vpop.permute.xlu0 %423  ;;  %v421_v0 = vpop.permute.xlu1 %420 }
 0x2b2   : > { %v459_v1 = vsel %vm369_vm5, %v458_v63, %v421_v0  ;;  %v1554_v0 = vstv %s2917_s11  ;;  %s2622_s11 = sld [smem:[#allocation4 + $0x4e]] }
 0x2b3   : > { %v460_v2 = vsel %vm182_vm0, %v459_v1, %v424_v62 }
 0x2b5   : > { %v427_v3 = vpop.permute.xlu1 %426  ;;  %v430_v4 = vpop.permute.xlu0 %429 }
 0x2b6   : > { %v461_v5 = vsel %vm372_vm6, %v460_v2, %v427_v3 }
 0x2b7   : > { %v462_v6 = vsel %vm374_vm7, %v461_v5, %v430_v4  ;;  %v1694_v4 = vstv %s2919_s12  ;;  %s2752_s12 = smov 122  }
 0x2b9   : > { %v433_v7 = vpop.permute.xlu1 %432  ;;  %v341_v14 = vpop.permute.xlu0 %340 }
 0x2ba   : > { %v463_v8 = vsel %vm376_vm8, %v462_v6, %v433_v7  ;;  %v1834_v6 = vstv %s2922_s13  ;;  %s2623_s13 = sld [smem:[#allocation4 + $0x55]] }
 0x2bb   : > { %v473_v9 = vrot.slane %v463_v8, 5 }
 0x2bd   : > { %v323_v10 = vpop.permute.xlu1 %322  ;;  %v478_v11 = vsel %vm369_vm5, 0.0, %v473_v9  ;;  %v437_v16 = vpop.permute.xlu0 %436 }
 0x2be   : > { %482 = vrot.lane.b32.xlu1 %v478_v11, %s2746_s10  ;;  %v366_v17 = vsel %vm365_vm3, %v2824_v48, %v323_v10  ;;  %v464_v30 = vsel %vm365_vm3, %v2829_v50, %v437_v16 }
 0x2c1   : > { %v326_v12 = vpop.permute.xlu1 %325  ;;  %v443_v25 = vpop.permute.xlu0 %442 }
 0x2c2   : > { %v368_v19 = vsel %vm367_vm4, %v366_v17, %v326_v12 }
 0x2c5   : > { %v329_v13 = vpop.permute.xlu1 %328  ;;  %v449_v34 = vpop.permute.xlu0 %448 }
 0x2c6   : > { %v370_v20 = vsel %vm369_vm5, %v368_v19, %v329_v13  ;;  %v746_v13 = vstv %s2938_s18  ;;  %v1026_v19 = vstv %s2951_s22  ;;  %s2630_s18 = sld [smem:[#allocation4 + $0x56]]  ;;  %s2633_s22 = sld [smem:[#allocation4 + $0x3b]] }
 0x2c9   : > { %v332_v15 = vpop.permute.xlu1 %331  ;;  %v455_v40 = vpop.permute.xlu0 %454 }
 0x2ca   : > { %v371_v21 = vsel %vm182_vm0, %v370_v20, %v332_v15  ;;  %v886_v15 = vstv %s2941_s19  ;;  %s2631_s19 = sld [smem:[#allocation4 + $0x5d]] }
 0x2cd   : > { %v335_v18 = vpop.permute.xlu1 %334 }
 0x2ce   : > { %v373_v22 = vsel %vm372_vm6, %v371_v21, %v335_v18 }
 0x2d1   : > { %v338_v24 = vpop.permute.xlu1 %337 }
 0x2d2   : > { %v375_v26 = vsel %vm374_vm7, %v373_v22, %v338_v24 }
 0x2d3   : > { %v377_v28 = vsel %vm376_vm8, %v375_v26, %v341_v14 }
 0x2d4   : > { %v387_v29 = vrot.slane %v377_v28, 5  ;;  %v1166_v28 = vstv %s2958_s23  ;;  %s2634_s23 = sld [smem:[#allocation4 + $0x42]] }
 0x2d5   : > { %v440_v31 = vpop.permute.xlu1 %439 }
 0x2d6   : > { %v465_v32 = vsel %vm367_vm4, %v464_v30, %v440_v31  ;;  %v392_v33 = vsel %vm369_vm5, 0.0, %v387_v29  ;;  %v2987_v31 = vstv %s2619_s24  ;;  %s2624_s24 = sld [smem:[#allocation4 + $0x5c]] }
 0x2d7   : > { %396 = vrot.lane.b32.xlu0 %v392_v33, %s2746_s10  ;;  %v466_v36 = vsel %vm369_vm5, %v465_v32, %v443_v25  ;;  %v1306_v32 = vstv %s2965_s25  ;;  %s2570_s25 = sld [smem:[#allocation4 + $0x8]] }
 0x2d9   : > { %v446_v35 = vpop.permute.xlu1 %445 }
 0x2da   : > { %v467_v37 = vsel %vm182_vm0, %v466_v36, %v446_v35 }
 0x2db   : > { %v468_v39 = vsel %vm372_vm6, %v467_v37, %v449_v34  ;;  %v3002_v37 = vstv %s2620_s26  ;;  %s2626_s26 = sld [smem:[#allocation4 + $0x3a]] }
 0x2dd   : > { %v452_v38 = vpop.permute.xlu1 %451 }
 0x2de   : > { %v469_v41 = vsel %vm374_vm7, %v468_v39, %v452_v38 }
 0x2df   : > { %v470_v42 = vsel %vm376_vm8, %v469_v41, %v455_v40 }
 0x2e0   : > { %v474_v43 = vrot.slane %v470_v42, 5  ;;  %v3013_v42 = vstv %s2621_s28  ;;  %s2627_s28 = sld [smem:[#allocation4 + $0x41]] }
 0x2e1   : > { %v345_v44 = vpop.permute.xlu1 %344 }
 0x2e2   : > { %v475_v45 = vsel %vm369_vm5, %v473_v9, %v474_v43  ;;  %v479_v46 = vsel %vm369_vm5, %v474_v43, 0.0  ;;  %v378_v51 = vsel %vm365_vm3, %v2858_v58, %v345_v44  ;;  %v606_v9 = vstv %s2936_s17  ;;  %s2629_s17 = sld [smem:[#allocation4 + $0x4f]] }
 0x2e3   : > { %484 = vrot.lane.b32.xlu0 %v475_v45, %s2746_s10  ;;  %486 = vrot.lane.b32.xlu1 %v479_v46, %s2746_s10 }
 0x2e5   : > { %v348_v47 = vpop.permute.xlu1 %347 }
 0x2e6   : > { %v379_v52 = vsel %vm367_vm4, %v378_v51, %v348_v47 }
 0x2e9   : > { %v351_v48 = vpop.permute.xlu1 %350 }
 0x2ea   : > { %v380_v54 = vsel %vm369_vm5, %v379_v52, %v351_v48  ;;  %v3026_v48 = vstv %s2622_s11  ;;  %s2628_s11 = sld [smem:[#allocation4 + $0x48]] }
 0x2ed   : > { %v354_v49 = vpop.permute.xlu1 %353 }
 0x2ee   : > { %v381_v55 = vsel %vm182_vm0, %v380_v54, %v354_v49  ;;  %v3039_v54 = vstv %s2623_s13  ;;  %s2571_s13 = sld [smem:[#allocation4 + $0xf]] }
 0x2f1   : > { %v357_v50 = vpop.permute.xlu1 %356 }
 0x2f2   : > { %v382_v56 = vsel %vm372_vm6, %v381_v55, %v357_v50 }
 0x2f5   : > { %v360_v53 = vpop.permute.xlu1 %359 }
 0x2f6   : > { %v383_v57 = vsel %vm374_vm7, %v382_v56, %v360_v53 }
 0x2f9   : > { %v363_v59 = vpop.permute.xlu1 %362 }
 0x2fa   : > { %v384_v60 = vsel %vm376_vm8, %v383_v57, %v363_v59 }
 0x2fb   : > { %v388_v61 = vrot.slane %v384_v60, 5 }
 0x2fd   : > { %v393_v62 = vsel %vm369_vm5, %v388_v61, 0.0  ;;  %v389_v63 = vsel %vm369_vm5, %v387_v29, %v388_v61  ;;  %v3052_v61 = vstv %s2624_s24  ;;  %s2572_s24 = sld [smem:[#allocation4 + $0x16]] }
 0x2fe   : > { %400 = vrot.lane.b32.xlu0 %v393_v62, %s2746_s10  ;;  %398 = vrot.lane.b32.xlu1 %v389_v63, %s2746_s10  ;;  %s2751_s10 = smov 123  }
 0x330   : > { %v483_v58 = vpop.permute.xlu1 %482 }
 0x331   : > { %v491_v1 = vsel %vm405_vm9, 0.0, %v483_v58 }
 0x332   : > { %v2926_v2 = vsel %vm409_vm10, %v491_v1, 0.0 }
 0x333   : > { %v1555_v3 = vmul.f32 %v1554_v0, %v2926_v2  ;;  %v1695_v5 = vmul.f32 %v1694_v4, %v2926_v2  ;;  %v1835_v7 = vmul.f32 %v1834_v6, %v2926_v2  ;;  %v1569_v34 = vmul.f32 %v2987_v31, %v2926_v2 }
 0x334   : > { %v1590_v41 = vmul.f32 %v3002_v37, %v2926_v2  ;;  %v1611_v47 = vmul.f32 %v3013_v42, %v2926_v2  ;;  %v1632_v53 = vmul.f32 %v3026_v48, %v2926_v2  ;;  %v1653_v60 = vmul.f32 %v3039_v54, %v2926_v2 }
 0x335   : > { %1559 = vrot.lane.b32.xlu0 %v1555_v3, %s2747_s14  ;;  %v1575_v40 = vrot.slane %v1569_v34, 1 }
 0x336   : > { %v1596_v46 = vrot.slane %v1590_v41, 2  ;;  %v1617_v52 = vrot.slane %v1611_v47, 3  ;;  %v1638_v59 = vrot.slane %v1632_v53, 4  ;;  %v3127_v47 = vstv %s2629_s17  ;;  %s2577_s17 = sld [smem:[#allocation4 + $0x9]] }
 0x339   : > { %1699 = vrot.lane.b32.xlu0 %v1695_v5, %s2748_s15 }
 0x33d   : > { %1839 = vrot.lane.b32.xlu0 %v1835_v7, %s2749_s16 }
 0x349   : > { %v397_v8 = vpop.permute.xlu0 %396 }
 0x34a   : > { %v406_v10 = vsel %vm405_vm9, 0.0, %v397_v8  ;;  %v1659_v8 = vrot.slane %v1653_v60, 5 }
 0x34b   : > { %v2945_v11 = vsel %vm409_vm10, %v406_v10, 0.0  ;;  %v1674_v10 = vmul.f32 %v3052_v61, %v2926_v2 }
 0x34c   : > { %v607_v12 = vmul.f32 %v606_v9, %v2945_v11  ;;  %v747_v14 = vmul.f32 %v746_v13, %v2945_v11  ;;  %v887_v16 = vmul.f32 %v886_v15, %v2945_v11  ;;  %v1027_v26 = vmul.f32 %v1026_v19, %v2945_v11 }
 0x34d   : > { %v1167_v30 = vmul.f32 %v1166_v28, %v2945_v11  ;;  %v1307_v36 = vmul.f32 %v1306_v32, %v2945_v11 }
 0x34e   : > { %611 = vrot.lane.b32.xlu0 %v607_v12, %s2747_s14  ;;  %v3076_v12 = vstv %s2626_s26  ;;  %s2573_s26 = sld [smem:[#allocation4 + $0x1d]] }
 0x352   : > { %751 = vrot.lane.b32.xlu0 %v747_v14, %s2748_s15 }
 0x355   : > { %v485_v17 = vpop.permute.xlu0 %484  ;;  %v487_v18 = vpop.permute.xlu1 %486 }
 0x356   : > { %v492_v20 = vsel %vm405_vm9, 0.0, %v485_v17  ;;  %v493_v21 = vsel %vm405_vm9, 0.0, %v487_v18  ;;  %891 = vrot.lane.b32.xlu0 %v887_v16, %s2749_s16  ;;  %v1680_v18 = vrot.slane %v1674_v10, 6  ;;  %v3165_v10 = vstv %s2631_s19  ;;  %s2579_s19 = sld [smem:[#allocation4 + $0x17]] }
 0x357   : > { %v2971_v22 = vsel %vm409_vm10, %v492_v20, 0.0  ;;  %v2974_v24 = vsel %vm409_vm10, %v493_v21, 0.0  ;;  %v1709_v20 = vmul.f32 %v3076_v12, %v2926_v2  ;;  %v3093_v21 = vstv %s2627_s28  ;;  %s2574_s28 = sld [smem:[#allocation4 + $0x24]] }
 0x358   : > { %v1556_v25 = vmul.f32 %v1554_v0, %v2971_v22  ;;  %v1696_v29 = vmul.f32 %v1694_v4, %v2971_v22  ;;  %v2992_v33 = vmul.f32 %v2987_v31, %v2971_v22  ;;  %v1836_v35 = vmul.f32 %v1834_v6, %v2971_v22 }
 0x359   : > { %v3007_v39 = vmul.f32 %v3002_v37, %v2971_v22  ;;  %v3021_v45 = vmul.f32 %v3013_v42, %v2971_v22  ;;  %v3034_v51 = vmul.f32 %v3026_v48, %v2971_v22  ;;  %v3047_v57 = vmul.f32 %v3039_v54, %v2971_v22 }
 0x35a   : > { %1561 = vrot.lane.b32.xlu1 %v1556_v25, %s2747_s14  ;;  %1031 = vrot.lane.b32.xlu0 %v1027_v26, %s2750_s27  ;;  %v1576_v38 = vrot.slane %v2992_v33, 1  ;;  %v3056_v58 = vmul.f32 %v3052_v61, %v2971_v22  ;;  %v3085_v17 = vmul.f32 %v3076_v12, %v2971_v22  ;;  %v1730_v34 = vmul.f32 %v3093_v21, %v2926_v2 }
 0x35b   : > { %v1597_v44 = vrot.slane %v3007_v39, 2  ;;  %v1618_v50 = vrot.slane %v3021_v45, 3  ;;  %v1639_v56 = vrot.slane %v3034_v51, 4  ;;  %v1660_v4 = vrot.slane %v3047_v57, 5 }
 0x35c   : > { %v1577_v43 = vsel %vm376_vm8, %v1575_v40, %v1576_v38  ;;  %v1681_v16 = vrot.slane %v3056_v58, 6  ;;  %v1716_v26 = vrot.slane %v3085_v17, 1  ;;  %v3136_v53 = vmul.f32 %v3127_v47, %v2971_v22 }
 0x35d   : > { %v1598_v49 = vsel %vm374_vm7, %v1596_v46, %v1597_v44  ;;  %v1619_v55 = vsel %vm372_vm6, %v1617_v52, %v1618_v50  ;;  %v1640_v3 = vsel %vm182_vm0, %v1638_v59, %v1639_v56  ;;  %v1661_v14 = vsel %vm369_vm5, %v1659_v8, %v1660_v4 }
 0x35e   : > { %1701 = vrot.lane.b32.xlu1 %v1696_v29, %s2748_s15  ;;  %1171 = vrot.lane.b32.xlu0 %v1167_v30, %s2751_s10  ;;  %v1682_v25 = vsel %vm367_vm4, %v1680_v18, %v1681_v16  ;;  %v3102_v29 = vmul.f32 %v3093_v21, %v2971_v22  ;;  %v1715_v30 = vrot.slane %v1709_v20, 1  ;;  %v1772_v59 = vmul.f32 %v3127_v47, %v2926_v2 }
 0x35f   : > { %v1571_v60 = vmul.f32 %v2987_v31, %v2974_v24  ;;  %v1592_v8 = vmul.f32 %v3002_v37, %v2974_v24  ;;  %v1814_v37 = vmul.f32 %v3165_v10, %v2926_v2 }
 0x360   : > { %v1737_v40 = vrot.slane %v3102_v29, 2 }
 0x362   : > { %1841 = vrot.lane.b32.xlu1 %v1836_v35, %s2749_s16  ;;  %1311 = vrot.lane.b32.xlu0 %v1307_v36, %s2752_s12  ;;  %v3110_v35 = vstv %s2628_s11  ;;  %v1717_v36 = vsel %vm376_vm8, %v1715_v30, %v1716_v26  ;;  %v3184_v30 = vstv %s2633_s22  ;;  %s2575_s11 = sld [smem:[#allocation4 + $0x2b]]  ;;  %s2580_s22 = sld [smem:[#allocation4 + $0x1e]] }
 0x363   : > { %v3119_v41 = vmul.f32 %v3110_v35, %v2971_v22  ;;  %v1751_v46 = vmul.f32 %v3110_v35, %v2926_v2  ;;  %v3193_v33 = vmul.f32 %v3184_v30, %v2971_v22 }
 0x365   : > { %v1758_v52 = vrot.slane %v3119_v41, 3 }
 0x366   : > { %1580 = vrot.lane.b32.xlu0 %v1577_v43, %s2747_s14  ;;  %v1736_v43 = vrot.slane %v1730_v34, 2 }
 0x36a   : > { %1601 = vrot.lane.b32.xlu0 %v1598_v49, %s2747_s14  ;;  %v1738_v49 = vsel %vm374_vm7, %v1736_v43, %v1737_v40 }
 0x36e   : > { %1622 = vrot.lane.b32.xlu0 %v1619_v55, %s2747_s14  ;;  %v1757_v55 = vrot.slane %v1751_v46, 3  ;;  %v1634_v46 = vmul.f32 %v3026_v48, %v2974_v24 }
 0x370   : > { %v401_v62 = vpop.permute.xlu0 %400  ;;  %v399_v63 = vpop.permute.xlu1 %398 }
 0x371   : > { %v408_v0 = vsel %vm405_vm9, 0.0, %v401_v62  ;;  %v407_v1 = vsel %vm405_vm9, 0.0, %v399_v63  ;;  %v3146_v62 = vstv %s2630_s18  ;;  %v1759_v63 = vsel %vm372_vm6, %v1757_v55, %v1758_v52  ;;  %s2578_s18 = sld [smem:[#allocation4 + $0x10]] }
 0x372   : > { %v3065_v5 = vsel %vm409_vm10, %v408_v0, 0.0  ;;  %v3068_v6 = vsel %vm409_vm10, %v407_v1, 0.0  ;;  %1643 = vrot.lane.b32.xlu0 %v1640_v3, %s2747_s14  ;;  %v1779_v0 = vrot.slane %v3136_v53, 4  ;;  %v1778_v1 = vrot.slane %v1772_v59, 4 }
 0x373   : > { %v608_v7 = vmul.f32 %v606_v9, %v3068_v6  ;;  %v748_v9 = vmul.f32 %v746_v13, %v3068_v6  ;;  %v888_v13 = vmul.f32 %v886_v15, %v3068_v6  ;;  %v1028_v15 = vmul.f32 %v1026_v19, %v3068_v6 }
 0x374   : > { %v1168_v19 = vmul.f32 %v1166_v28, %v3068_v6  ;;  %v3155_v28 = vmul.f32 %v3146_v62, %v2971_v22  ;;  %v1308_v31 = vmul.f32 %v1306_v32, %v3068_v6  ;;  %v1793_v3 = vmul.f32 %v3146_v62, %v2926_v2 }
 0x375   : > { %613 = vrot.lane.b32.xlu1 %v608_v7, %s2747_s14  ;;  %v1578_v7 = vrot.slane %v1571_v60, 1  ;;  %v3174_v32 = vmul.f32 %v3165_v10, %v2971_v22  ;;  %v1856_v55 = vrot.slane %v3193_v33, 1  ;;  %v1641_v60 = vrot.slane %v1634_v46, 4 }
 0x376   : > { %1664 = vrot.lane.b32.xlu0 %v1661_v14, %s2747_s14  ;;  %v1780_v14 = vsel %vm182_vm0, %v1778_v1, %v1779_v0  ;;  %v1799_v18 = vrot.slane %v1793_v3, 5 }
 0x377   : > { %v1579_v20 = vsel %vm376_vm8, %v1576_v38, %v1578_v7  ;;  %v1820_v38 = vrot.slane %v1814_v37, 6  ;;  %v1642_v7 = vsel %vm182_vm0, %v1639_v56, %v1641_v60 }
 0x379   : > { %753 = vrot.lane.b32.xlu1 %v748_v9, %s2748_s15  ;;  %v1800_v9 = vrot.slane %v3155_v28, 5 }
 0x37a   : > { %1685 = vrot.lane.b32.xlu0 %v1682_v25, %s2747_s14  ;;  %v1599_v25 = vrot.slane %v1592_v8, 2 }
 0x37b   : > { %v1801_v34 = vsel %vm369_vm5, %v1799_v18, %v1800_v9  ;;  %v3241_v18 = vstv %s2571_s13  ;;  %s2584_s13 = sld [smem:[#allocation4 + $0xa]] }
 0x37c   : > { %v3250_v51 = vmul.f32 %v3241_v18, %v3068_v6 }
 0x37d   : > { %893 = vrot.lane.b32.xlu1 %v888_v13, %s2749_s16  ;;  %v1613_v13 = vmul.f32 %v3013_v42, %v2974_v24  ;;  %v1849_v42 = vmul.f32 %v3184_v30, %v2926_v2 }
 0x37e   : > { %1720 = vrot.lane.b32.xlu0 %v1717_v36, %s2748_s15  ;;  %v1821_v36 = vrot.slane %v3174_v32, 6 }
 0x37f   : > { %v1620_v43 = vrot.slane %v1613_v13, 3 }
 0x381   : > { %1033 = vrot.lane.b32.xlu1 %v1028_v15, %s2750_s27  ;;  %v1600_v15 = vsel %vm374_vm7, %v1597_v44, %v1599_v25  ;;  %v1855_v44 = vrot.slane %v1849_v42, 1  ;;  %v1621_v59 = vsel %vm372_vm6, %v1618_v50, %v1620_v43 }
 0x382   : > { %1741 = vrot.lane.b32.xlu0 %v1738_v49, %s2748_s15  ;;  %v3203_v49 = vstv %s2634_s23  ;;  %s2581_s23 = sld [smem:[#allocation4 + $0x25]] }
 0x383   : > { %v3212_v39 = vmul.f32 %v3203_v49, %v2971_v22  ;;  %v1870_v48 = vmul.f32 %v3203_v49, %v2926_v2  ;;  %v1857_v1 = vsel %vm376_vm8, %v1855_v44, %v1856_v55  ;;  %v3279_v44 = vstv %s2573_s26  ;;  %s2586_s26 = sld [smem:[#allocation4 + $0x18]] }
 0x384   : > { %v3288_v58 = vmul.f32 %v3279_v44, %v3068_v6 }
 0x385   : > { %1173 = vrot.lane.b32.xlu1 %v1168_v19, %s2751_s10  ;;  %v1822_v19 = vsel %vm367_vm4, %v1820_v38, %v1821_v36  ;;  %v1877_v3 = vrot.slane %v3212_v39, 2  ;;  %v1876_v50 = vrot.slane %v1870_v48, 2  ;;  %v3260_v38 = vstv %s2572_s24  ;;  %s2585_s24 = sld [smem:[#allocation4 + $0x11]] }
 0x386   : > { %1762 = vrot.lane.b32.xlu0 %v1759_v63, %s2748_s15  ;;  %v1655_v63 = vmul.f32 %v3039_v54, %v2974_v24  ;;  %v3269_v57 = vmul.f32 %v3260_v38, %v3068_v6 }
 0x387   : > { %v1878_v37 = vsel %vm374_vm7, %v1876_v50, %v1877_v3  ;;  %v3298_v50 = vstv %s2574_s28  ;;  %s2587_s28 = sld [smem:[#allocation4 + $0x1f]] }
 0x388   : > { %v1662_v8 = vrot.slane %v1655_v63, 5  ;;  %v3307_v17 = vmul.f32 %v3298_v50, %v3068_v6 }
 0x389   : > { %1313 = vrot.lane.b32.xlu1 %v1308_v31, %s2752_s12  ;;  %v3222_v31 = vstv %s2570_s25  ;;  %s2582_s25 = sld [smem:[#allocation4 + $0x2c]] }
 0x38a   : > { %1783 = vrot.lane.b32.xlu0 %v1780_v14, %s2748_s15  ;;  %v3231_v45 = vmul.f32 %v3222_v31, %v3068_v6  ;;  %v621_v54 = vmul.f32 %v3222_v31, %v2945_v11  ;;  %v1676_v14 = vmul.f32 %v3052_v61, %v2974_v24  ;;  %v642_v61 = vmul.f32 %v3241_v18, %v2945_v11 }
 0x38b   : > { %v1663_v25 = vsel %vm369_vm5, %v1660_v4, %v1662_v8 }
 0x38c   : > { %v627_v56 = vrot.slane %v621_v54, 1  ;;  %v1683_v13 = vrot.slane %v1676_v14, 6  ;;  %v648_v4 = vrot.slane %v642_v61, 2 }
 0x38d   : > { %1582 = vrot.lane.b32.xlu1 %v1579_v20, %s2747_s14  ;;  %v628_v20 = vrot.slane %v3231_v45, 1 }
 0x38e   : > { %1804 = vrot.lane.b32.xlu0 %v1801_v34, %s2748_s15  ;;  %v1711_v34 = vmul.f32 %v3076_v12, %v2974_v24  ;;  %v663_v12 = vmul.f32 %v3260_v38, %v2945_v11  ;;  %v1684_v43 = vsel %vm367_vm4, %v1681_v16, %v1683_v13 }
 0x38f   : > { %v629_v42 = vsel %vm376_vm8, %v627_v56, %v628_v20  ;;  %v3317_v56 = vstv %s2575_s11  ;;  %s2588_s11 = sld [smem:[#allocation4 + $0x26]] }
 0x390   : > { %v1718_v46 = vrot.slane %v1711_v34, 1  ;;  %v669_v16 = vrot.slane %v663_v12, 3  ;;  %v3326_v29 = vmul.f32 %v3317_v56, %v3068_v6 }
 0x391   : > { %1603 = vrot.lane.b32.xlu1 %v1600_v15, %s2747_s14  ;;  %v649_v15 = vrot.slane %v3250_v51, 2 }
 0x392   : > { %1825 = vrot.lane.b32.xlu0 %v1822_v19, %s2748_s15  ;;  %v1732_v19 = vmul.f32 %v3093_v21, %v2974_v24  ;;  %v684_v21 = vmul.f32 %v3279_v44, %v2945_v11  ;;  %v1719_v60 = vsel %vm376_vm8, %v1716_v26, %v1718_v46 }
 0x393   : > { %v650_v48 = vsel %vm374_vm7, %v648_v4, %v649_v15  ;;  %v3336_v4 = vstv %s2577_s17  ;;  %s2589_s17 = sld [smem:[#allocation4 + $0x2d]] }
 0x394   : > { %v1739_v63 = vrot.slane %v1732_v19, 2  ;;  %v690_v26 = vrot.slane %v684_v21, 4  ;;  %v3345_v41 = vmul.f32 %v3336_v4, %v3068_v6  ;;  %v3357_v21 = vstv %s2578_s18  ;;  %s2591_s18 = sld [smem:[#allocation4 + $0xb]] }
 0x395   : > { %1624 = vrot.lane.b32.xlu1 %v1621_v59, %s2747_s14  ;;  %v670_v59 = vrot.slane %v3269_v57, 3  ;;  %v3366_v53 = vmul.f32 %v3357_v21, %v3068_v6 }
 0x396   : > { %1860 = vrot.lane.b32.xlu0 %v1857_v1, %s2749_s16  ;;  %v1753_v1 = vmul.f32 %v3110_v35, %v2974_v24  ;;  %v705_v35 = vmul.f32 %v3298_v50, %v2945_v11  ;;  %v1740_v8 = vsel %vm374_vm7, %v1737_v40, %v1739_v63  ;;  %v768_v63 = vrot.slane %v3345_v41, 1 }
 0x397   : > { %v671_v54 = vsel %vm372_vm6, %v669_v16, %v670_v59  ;;  %v1816_v16 = vmul.f32 %v3165_v10, %v2974_v24  ;;  %v782_v10 = vmul.f32 %v3357_v21, %v2945_v11 }
 0x398   : > { %v1760_v14 = vrot.slane %v1753_v1, 3  ;;  %v711_v40 = vrot.slane %v705_v35, 5  ;;  %v3376_v35 = vstv %s2579_s19  ;;  %s2592_s19 = sld [smem:[#allocation4 + $0x12]] }
 0x399   : > { %1645 = vrot.lane.b32.xlu1 %v1642_v7, %s2747_s14  ;;  %v691_v7 = vrot.slane %v3288_v58, 4  ;;  %v3385_v28 = vmul.f32 %v3376_v35, %v3068_v6 }
 0x39a   : > { %1881 = vrot.lane.b32.xlu0 %v1878_v37, %s2749_s16  ;;  %v1774_v37 = vmul.f32 %v3127_v47, %v2974_v24  ;;  %v726_v47 = vmul.f32 %v3317_v56, %v2945_v11  ;;  %v1761_v13 = vsel %vm372_vm6, %v1758_v52, %v1760_v14  ;;  %v789_v14 = vrot.slane %v3366_v53, 2 }
 0x39b   : > { %v692_v61 = vsel %vm182_vm0, %v690_v26, %v691_v7  ;;  %v1851_v26 = vmul.f32 %v3184_v30, %v2974_v24  ;;  %v788_v30 = vrot.slane %v782_v10, 2 }
 0x39c   : > { %v1781_v34 = vrot.slane %v1774_v37, 4  ;;  %v732_v52 = vrot.slane %v726_v47, 6  ;;  %v803_v37 = vmul.f32 %v3376_v35, %v2945_v11  ;;  %v1872_v47 = vmul.f32 %v3203_v49, %v2974_v24 }
 0x39d   : > { %1666 = vrot.lane.b32.xlu1 %v1663_v25, %s2747_s14  ;;  %v712_v25 = vrot.slane %v3307_v17, 5 }
 0x39e   : > { %632 = vrot.lane.b32.xlu0 %v629_v42, %s2747_s14  ;;  %v1795_v42 = vmul.f32 %v3146_v62, %v2974_v24  ;;  %v761_v62 = vmul.f32 %v3336_v4, %v2945_v11  ;;  %v1782_v19 = vsel %vm182_vm0, %v1779_v0, %v1781_v34  ;;  %v790_v34 = vsel %vm374_vm7, %v788_v30, %v789_v14 }
 0x39f   : > { %v713_v12 = vsel %vm369_vm5, %v711_v40, %v712_v25  ;;  %v1858_v40 = vrot.slane %v1851_v26, 1  ;;  %v3439_v26 = vstv %s2582_s25  ;;  %s2596_s25 = sld [smem:[#allocation4 + $0x2e]] }
 0x3a0   : > { %v767_v0 = vrot.slane %v761_v62, 1  ;;  %v1879_v62 = vrot.slane %v1872_v47, 2  ;;  %v3448_v39 = vmul.f32 %v3439_v26, %v3068_v6  ;;  %v665_v47 = vmul.f32 %v3260_v38, %v3065_v5 }
 0x3a1   : > { %1687 = vrot.lane.b32.xlu1 %v1684_v43, %s2747_s14  ;;  %v733_v43 = vrot.slane %v3326_v29, 6 }
 0x3a2   : > { %653 = vrot.lane.b32.xlu0 %v650_v48, %s2747_s14  ;;  %v1802_v48 = vrot.slane %v1795_v42, 5  ;;  %v810_v42 = vrot.slane %v3385_v28, 3  ;;  %v1880_v10 = vsel %vm374_vm7, %v1877_v3, %v1879_v62 }
 0x3a4   : > { %v1803_v1 = vsel %vm369_vm5, %v1800_v9, %v1802_v48  ;;  %v3418_v48 = vstv %s2581_s23  ;;  %s2595_s23 = sld [smem:[#allocation4 + $0x27]] }
 0x3a5   : > { %1722 = vrot.lane.b32.xlu1 %v1719_v60, %s2748_s15  ;;  %v734_v60 = vsel %vm367_vm4, %v732_v52, %v733_v43  ;;  %v1859_v52 = vsel %vm376_vm8, %v1856_v55, %v1858_v40  ;;  %v3427_v33 = vmul.f32 %v3418_v48, %v3068_v6 }
 0x3a6   : > { %674 = vrot.lane.b32.xlu0 %v671_v54, %s2747_s14  ;;  %v1823_v54 = vrot.slane %v1816_v16, 6 }
 0x3a7   : > { %v3350_v46 = vpop.permute.xlu0 %1559  ;;  %v852_v30 = vrot.slane %v3427_v33, 5 }
 0x3a8   : > { %5109 = vst [vmem:[#allocation8_spill] sm:$0xff] %v3350_v46 }
 0x3a9   : > { %1743 = vrot.lane.b32.xlu1 %v1740_v8, %s2748_s15  ;;  %v769_v8 = vsel %vm376_vm8, %v767_v0, %v768_v63 }
 0x3aa   : > { %695 = vrot.lane.b32.xlu0 %v692_v61, %s2747_s14  ;;  %v1824_v61 = vsel %vm367_vm4, %v1821_v36, %v1823_v54  ;;  %v809_v36 = vrot.slane %v803_v37, 3  ;;  %v644_v54 = vmul.f32 %v3241_v18, %v3065_v5  ;;  %v866_v18 = vmul.f32 %v3439_v26, %v2945_v11 }
 0x3ab   : > { %v3387_v9 = vpop.permute.xlu0 %1699 }
 0x3ac   : > { %5110 = vst [vmem:[#allocation9_spill] sm:$0xff] %v3387_v9  ;;  %v811_v16 = vsel %vm372_vm6, %v809_v36, %v810_v42  ;;  %v651_v40 = vrot.slane %v644_v54, 2 }
 0x3ad   : > { %1764 = vrot.lane.b32.xlu1 %v1761_v13, %s2748_s15  ;;  %v3397_v13 = vstv %s2580_s22  ;;  %s2594_s22 = sld [smem:[#allocation4 + $0x20]] }
 0x3ae   : > { %716 = vrot.lane.b32.xlu0 %v713_v12, %s2747_s14  ;;  %v3406_v32 = vmul.f32 %v3397_v13, %v3068_v6  ;;  %v824_v49 = vmul.f32 %v3397_v13, %v2945_v11  ;;  %v652_v62 = vsel %vm374_vm7, %v649_v15, %v651_v40 }
 0x3af   : > { %v3411_v12 = vpop.permute.xlu0 %1839 }
 0x3b0   : > { %5111 = vst [vmem:[#allocation10_spill] sm:$0xff] %v3411_v12  ;;  %v830_v55 = vrot.slane %v824_v49, 4  ;;  %v873_v49 = vrot.slane %v3448_v39, 6 }
 0x3b1   : > { %1785 = vrot.lane.b32.xlu1 %v1782_v19, %s2748_s15  ;;  %v623_v19 = vmul.f32 %v3222_v31, %v3065_v5  ;;  %v845_v31 = vmul.f32 %v3418_v48, %v2945_v11 }
 0x3b2   : > { %737 = vrot.lane.b32.xlu0 %v734_v60, %s2747_s14  ;;  %v831_v60 = vrot.slane %v3406_v32, 4 }
 0x3b3   : > { %v851_v3 = vrot.slane %v845_v31, 5 }
 0x3b5   : > { %1806 = vrot.lane.b32.xlu1 %v1803_v1, %s2748_s15  ;;  %v630_v1 = vrot.slane %v623_v19, 1  ;;  %v853_v36 = vsel %vm369_vm5, %v851_v3, %v852_v30  ;;  %v672_v19 = vrot.slane %v665_v47, 3  ;;  %v707_v3 = vmul.f32 %v3298_v50, %v3065_v5 }
 0x3b6   : > { %772 = vrot.lane.b32.xlu0 %v769_v8, %s2748_s15  ;;  %v832_v8 = vsel %vm182_vm0, %v830_v55, %v831_v60  ;;  %v3481_v55 = vstv %s2585_s24  ;;  %s2599_s24 = sld [smem:[#allocation4 + $0x13]] }
 0x3b7   : > { %v3490_v51 = vmul.f32 %v3481_v55, %v3068_v6  ;;  %v673_v54 = vsel %vm372_vm6, %v670_v59, %v672_v19 }
 0x3b9   : > { %1827 = vrot.lane.b32.xlu1 %v1824_v61, %s2748_s15  ;;  %v631_v61 = vsel %vm376_vm8, %v628_v20, %v630_v1  ;;  %v872_v20 = vrot.slane %v866_v18, 6  ;;  %v3502_v18 = vstv %s2586_s26  ;;  %v5091_v40 = vrot.slane %v3490_v51, 2  ;;  %s2601_s26 = sld [smem:[#allocation4 + $0x21]] }
 0x3ba   : > { %793 = vrot.lane.b32.xlu0 %v790_v34, %s2748_s15  ;;  %v3460_v34 = vstv %s2584_s13  ;;  %v3511_v57 = vmul.f32 %v3502_v18, %v3068_v6  ;;  %v943_v50 = vmul.f32 %v3502_v18, %v2945_v11  ;;  %s2598_s13 = sld [smem:[#allocation4 + $0xc]] }
 0x3bb   : > { %v3469_v45 = vmul.f32 %v3460_v34, %v3068_v6  ;;  %v901_v38 = vmul.f32 %v3460_v34, %v2945_v11  ;;  %v874_v31 = vsel %vm367_vm4, %v872_v20, %v873_v49  ;;  %v714_v20 = vrot.slane %v707_v3, 5 }
 0x3bd   : > { %1862 = vrot.lane.b32.xlu1 %v1859_v52, %s2749_s16  ;;  %v907_v15 = vrot.slane %v901_v38, 1  ;;  %v728_v38 = vmul.f32 %v3317_v56, %v3065_v5 }
 0x3be   : > { %814 = vrot.lane.b32.xlu0 %v811_v16, %s2748_s15  ;;  %v686_v16 = vmul.f32 %v3279_v44, %v3065_v5  ;;  %v922_v44 = vmul.f32 %v3481_v55, %v2945_v11 }
 0x3c0   : > { %v3432_v0 = vpop.permute.xlu0 %611  ;;  %v928_v59 = vrot.slane %v922_v44, 2  ;;  %v735_v44 = vrot.slane %v728_v38, 6  ;;  %v784_v38 = vmul.f32 %v3357_v21, %v3065_v5  ;;  %v3726_v27 = vstv %s2598_s13  ;;  %s3916_s13 = sld [smem:[#allocation4 + $0x29]] }
 0x3c1   : > { %1883 = vrot.lane.b32.xlu1 %v1880_v10, %s2749_s16  ;;  %v5093_v10 = vrot.slane %v3469_v45, 1 }
 0x3c2   : > { %835 = vrot.lane.b32.xlu0 %v832_v8, %s2748_s15  ;;  %v693_v8 = vrot.slane %v686_v16, 4  ;;  %v930_v19 = vsel %vm374_vm7, %v928_v59, %v5091_v40  ;;  %v5089_v16 = vrot.slane %v3511_v57, 3  ;;  %v3680_v40 = vstv %s2595_s23  ;;  %s3904_s23 = sld [smem:[#allocation4]] }
 0x3c3   : > { %v3689_v33 = vmul.f32 %v3680_v40, %v3068_v6 }
 0x3c4   : > { %v3453_v37 = vpop.permute.xlu0 %751 }
 0x3c5   : > { %634 = vrot.lane.b32.xlu1 %v631_v61, %s2747_s14  ;;  %v909_v61 = vsel %vm376_vm8, %v907_v15, %v5093_v10  ;;  %v715_v15 = vsel %vm369_vm5, %v712_v25, %v714_v20  ;;  %v3703_v10 = vstv %s2596_s25  ;;  %s3906_s25 = sld [smem:[#allocation4 + $0xe]] }
 0x3c6   : > { %856 = vrot.lane.b32.xlu0 %v853_v36, %s2748_s15  ;;  %v694_v36 = vsel %vm182_vm0, %v691_v7, %v693_v8  ;;  %v949_v7 = vrot.slane %v943_v50, 3  ;;  %v3544_v8 = vstv %s2588_s11  ;;  %v3712_v39 = vmul.f32 %v3703_v10, %v3068_v6  ;;  %s2603_s11 = sld [smem:[#allocation4 + $0x2f]] }
 0x3c7   : > { %v3553_v17 = vmul.f32 %v3544_v8, %v3068_v6  ;;  %v985_v59 = vmul.f32 %v3544_v8, %v2945_v11 }
 0x3c8   : > { %v3474_v52 = vpop.permute.xlu0 %891  ;;  %v951_v3 = vsel %vm372_vm6, %v949_v7, %v5089_v16  ;;  %v3657_v16 = vstv %s2594_s22  ;;  %s3893_s22 = sld [smem:[#allocation4 + $0x22]] }
 0x3c9   : > { %5112 = vst [vmem:[#allocation11_spill] sm:$0xff] %v3474_v52  ;;  %655 = vrot.lane.b32.xlu1 %v652_v62, %s2747_s14  ;;  %v3523_v62 = vstv %s2587_s28  ;;  %v3666_v32 = vmul.f32 %v3657_v16, %v3068_v6  ;;  %s2602_s28 = sld [smem:[#allocation4 + $0x28]] }
 0x3ca   : > { %877 = vrot.lane.b32.xlu0 %v874_v31, %s2748_s15  ;;  %v3532_v58 = vmul.f32 %v3523_v62, %v3068_v6  ;;  %v964_v56 = vmul.f32 %v3523_v62, %v2945_v11  ;;  %v966_v23 = vmul.f32 %v3523_v62, %v3065_v5 }
 0x3cc   : > { %v3495_v1 = vpop.permute.xlu0 %1031  ;;  %v3556_v25 = vpop.permute.xlu1 %1561 }
 0x3cd   : > { %5113 = vst [vmem:[#allocation12_spill] sm:$0xff] %v3495_v1  ;;  %676 = vrot.lane.b32.xlu1 %v673_v54, %s2747_s14  ;;  %v763_v54 = vmul.f32 %v3336_v4, %v3065_v5  ;;  %5116 = vst [vmem:[#allocation15_spill] sm:$0xff] %v3556_v25  ;;  %v970_v4 = vrot.slane %v964_v56, 4  ;;  %v5085_v56 = vrot.slane %v3553_v17, 5 }
 0x3ce   : > { %912 = vrot.lane.b32.xlu0 %v909_v61, %s2749_s16  ;;  %v5087_v61 = vrot.slane %v3532_v58, 4  ;;  %v3960_v9 = vstv %s3893_s22  ;;  %s4180_s22 = sld [smem:[#allocation4 + $0x35]] }
 0x3cf   : > { %v770_v20 = vrot.slane %v763_v54, 1  ;;  %v791_v54 = vrot.slane %v784_v38, 2 }
 0x3d0   : > { %v3516_v47 = vpop.permute.xlu0 %1171  ;;  %v972_v7 = vsel %vm182_vm0, %v970_v4, %v5087_v61  ;;  %v3588_v4 = vstv %s2591_s18  ;;  %s2606_s18 = sld [smem:[#allocation4 + $0x14]] }
 0x3d1   : > { %5114 = vst [vmem:[#allocation13_spill] sm:$0xff] %v3516_v47  ;;  %697 = vrot.lane.b32.xlu1 %v694_v36, %s2747_s14  ;;  %v736_v36 = vsel %vm367_vm4, %v733_v43, %v735_v44  ;;  %v991_v43 = vrot.slane %v985_v59, 5  ;;  %v771_v44 = vsel %vm376_vm8, %v768_v63, %v770_v20  ;;  %v3599_v41 = vmul.f32 %v3588_v4, %v3068_v6 }
 0x3d2   : > { %933 = vrot.lane.b32.xlu0 %v930_v19, %s2749_s16  ;;  %v3567_v19 = vstv %s2589_s17  ;;  %v792_v38 = vsel %vm374_vm7, %v789_v14, %v791_v54  ;;  %s2605_s17 = sld [smem:[#allocation4 + $0xd]] }
 0x3d3   : > { %v3576_v29 = vmul.f32 %v3567_v19, %v3068_v6  ;;  %v1006_v21 = vmul.f32 %v3567_v19, %v2945_v11  ;;  %v993_v59 = vsel %vm369_vm5, %v991_v43, %v5085_v56  ;;  %v826_v43 = vmul.f32 %v3397_v13, %v3065_v5 }
 0x3d4   : > { %v3537_v31 = vpop.permute.xlu0 %1311  ;;  %v3611_v56 = vstv %s2592_s19  ;;  %v1008_v12 = vmul.f32 %v3567_v19, %v3065_v5  ;;  %s3853_s19 = sld [smem:[#allocation4 + $0x7]] }
 0x3d5   : > { %5115 = vst [vmem:[#allocation14_spill] sm:$0xff] %v3537_v31  ;;  %718 = vrot.lane.b32.xlu1 %v715_v15, %s2747_s14  ;;  %v1012_v63 = vrot.slane %v1006_v21, 6  ;;  %v3620_v53 = vmul.f32 %v3611_v56, %v3068_v6  ;;  %v1062_v54 = vmul.f32 %v3611_v56, %v2945_v11 }
 0x3d6   : > { %954 = vrot.lane.b32.xlu0 %v951_v3, %s2749_s16  ;;  %v805_v3 = vmul.f32 %v3376_v35, %v3065_v5  ;;  %v1041_v35 = vmul.f32 %v3588_v4, %v2945_v11 }
 0x3d8   : > { %v3560_v50 = vpop.permute.xlu0 %1580  ;;  %v1047_v13 = vrot.slane %v1041_v35, 1 }
 0x3d9   : > { %5117 = vst [vmem:[#allocation16_spill] sm:$0xff] %v3560_v50  ;;  %739 = vrot.lane.b32.xlu1 %v736_v36, %s2747_s14  ;;  %s2593_s14 = sld [smem:[#allocation4 + $0x19]]  ;;  %v3590_v36 = vpop.permute.xlu1 %1701  ;;  %v5173_v50 = vrot.slane %v3712_v39, 6 }
 0x3da   : > { %975 = vrot.lane.b32.xlu0 %v972_v7, %s2749_s16  ;;  %5119 = vst [vmem:[#allocation18_spill] sm:$0xff] %v3590_v36  ;;  %v5086_v7 = vrot.slane %v3576_v29, 6  ;;  %v987_v36 = vmul.f32 %v3544_v8, %v3065_v5 }
 0x3dc   : > { %v3581_v15 = vpop.permute.xlu0 %1601  ;;  %v1014_v21 = vsel %vm367_vm4, %v1012_v63, %v5086_v7  ;;  %v847_v7 = vmul.f32 %v3418_v48, %v3065_v5  ;;  %v1068_v48 = vrot.slane %v1062_v54, 2 }
 0x3dd   : > { %5118 = vst [vmem:[#allocation17_spill] sm:$0xff] %v3581_v15  ;;  %774 = vrot.lane.b32.xlu1 %v771_v44, %s2748_s15  ;;  %v812_v44 = vrot.slane %v805_v3, 3  ;;  %v3623_v14 = vpop.permute.xlu1 %1841 }
 0x3de   : > { %996 = vrot.lane.b32.xlu0 %v993_v59, %s2749_s16  ;;  %v5088_v59 = vrot.slane %v3599_v41, 1  ;;  %5121 = vst [vmem:[#allocation20_spill] sm:$0xff] %v3623_v14  ;;  %v3749_v14 = vstv %s2599_s24  ;;  %s3937_s24 = sld [smem:[#allocation4 + $0x15]] }
 0x3df   : > { %v813_v63 = vsel %vm372_vm6, %v810_v42, %v812_v44  ;;  %v3634_v61 = vstv %s2593_s14  ;;  %s3868_s14 = sld [smem:[#allocation4 + $0x1b]] }
 0x3e0   : > { %v3604_v20 = vpop.permute.xlu0 %1622  ;;  %v1049_v35 = vsel %vm376_vm8, %v1047_v13, %v5088_v59  ;;  %v3643_v28 = vmul.f32 %v3634_v61, %v3068_v6  ;;  %v1083_v44 = vmul.f32 %v3634_v61, %v2945_v11  ;;  %v868_v59 = vmul.f32 %v3439_v26, %v3065_v5 }
 0x3e1   : > { %5120 = vst [vmem:[#allocation19_spill] sm:$0xff] %v3604_v20  ;;  %795 = vrot.lane.b32.xlu1 %v792_v38, %s2748_s15  ;;  %v833_v38 = vrot.slane %v826_v43, 4 }
 0x3e2   : > { %1017 = vrot.lane.b32.xlu0 %v1014_v21, %s2749_s16  ;;  %v5090_v21 = vrot.slane %v3620_v53, 2  ;;  %v1089_v26 = vrot.slane %v1083_v44, 3 }
 0x3e3   : > { %v834_v13 = vsel %vm182_vm0, %v831_v60, %v833_v38 }
 0x3e4   : > { %v3627_v3 = vpop.permute.xlu0 %1643  ;;  %v1070_v54 = vsel %vm374_vm7, %v1068_v48, %v5090_v21  ;;  %v903_v21 = vmul.f32 %v3460_v34, %v3065_v5 }
 0x3e5   : > { %5122 = vst [vmem:[#allocation21_spill] sm:$0xff] %v3627_v3  ;;  %816 = vrot.lane.b32.xlu1 %v813_v63, %s2748_s15  ;;  %v854_v63 = vrot.slane %v847_v7, 5  ;;  %v1104_v7 = vmul.f32 %v3657_v16, %v2945_v11 }
 0x3e6   : > { %1052 = vrot.lane.b32.xlu0 %v1049_v35, %s2750_s27  ;;  %v5092_v35 = vrot.slane %v3643_v28, 3 }
 0x3e7   : > { %v3646_v42 = vpop.permute.xlu1 %613  ;;  %v855_v48 = vsel %vm369_vm5, %v852_v30, %v854_v63  ;;  %v1110_v34 = vrot.slane %v1104_v7, 4 }
 0x3e8   : > { %5123 = vst [vmem:[#allocation22_spill] sm:$0xff] %v3646_v42  ;;  %v3650_v43 = vpop.permute.xlu0 %1664  ;;  %v1091_v44 = vsel %vm372_vm6, %v1089_v26, %v5092_v35  ;;  %v924_v35 = vmul.f32 %v3481_v55, %v3065_v5 }
 0x3e9   : > { %5124 = vst [vmem:[#allocation23_spill] sm:$0xff] %v3650_v43  ;;  %837 = vrot.lane.b32.xlu1 %v834_v13, %s2748_s15  ;;  %v875_v13 = vrot.slane %v868_v59, 6  ;;  %v1125_v59 = vmul.f32 %v3680_v40, %v2945_v11 }
 0x3ea   : > { %1073 = vrot.lane.b32.xlu0 %v1070_v54, %s2750_s27  ;;  %v5094_v54 = vrot.slane %v3666_v32, 4 }
 0x3eb   : > { %v3669_v60 = vpop.permute.xlu1 %753  ;;  %v876_v26 = vsel %vm367_vm4, %v873_v49, %v875_v13  ;;  %v1131_v55 = vrot.slane %v1125_v59, 5  ;;  %v5132_v59 = vrot.slane %v3689_v33, 5 }
 0x3ec   : > { %5125 = vst [vmem:[#allocation24_spill] sm:$0xff] %v3669_v60  ;;  %v3673_v38 = vpop.permute.xlu0 %1685  ;;  %v1112_v7 = vsel %vm182_vm0, %v1110_v34, %v5094_v54  ;;  %v931_v54 = vrot.slane %v924_v35, 2 }
 0x3ed   : > { %5126 = vst [vmem:[#allocation25_spill] sm:$0xff] %v3673_v38  ;;  %858 = vrot.lane.b32.xlu1 %v855_v48, %s2748_s15  ;;  %v910_v48 = vrot.slane %v903_v21, 1  ;;  %v1146_v21 = vmul.f32 %v3703_v10, %v2945_v11 }
 0x3ee   : > { %1094 = vrot.lane.b32.xlu0 %v1091_v44, %s2750_s27  ;;  %v945_v44 = vmul.f32 %v3502_v18, %v3065_v5 }
 0x3ef   : > { %v3692_v30 = vpop.permute.xlu1 %893  ;;  %v1152_v18 = vrot.slane %v1146_v21, 6  ;;  %v5136_v21 = vrot.slane %v3712_v39, 6 }
 0x3f0   : > { %5127 = vst [vmem:[#allocation26_spill] sm:$0xff] %v3692_v30  ;;  %v3696_v63 = vpop.permute.xlu0 %1720 }
 0x3f1   : > { %5128 = vst [vmem:[#allocation27_spill] sm:$0xff] %v3696_v63  ;;  %879 = vrot.lane.b32.xlu1 %v876_v26, %s2748_s15  ;;  %v5131_v26 = vrot.slane %v3469_v45, 1  ;;  %s2600_s15 = sld [smem:[#allocation4 + $0x1a]]  ;;  %v3735_v45 = vmul.f32 %v3726_v27, %v3068_v6 }
 0x3f2   : > { %1115 = vrot.lane.b32.xlu0 %v1112_v7, %s2750_s27  ;;  %v1133_v7 = vsel %vm369_vm5, %v1131_v55, %v5132_v59  ;;  %v952_v59 = vrot.slane %v945_v44, 3  ;;  %v1202_v44 = vmul.f32 %v3749_v14, %v2945_v11 }
 0x3f3   : > { %v3715_v49 = vpop.permute.xlu1 %1033  ;;  %v911_v34 = vsel %vm376_vm8, %v5131_v26, %v910_v48  ;;  %v1181_v48 = vmul.f32 %v3726_v27, %v2945_v11 }
 0x3f4   : > { %5129 = vst [vmem:[#allocation28_spill] sm:$0xff] %v3715_v49  ;;  %v3719_v13 = vpop.permute.xlu0 %1741  ;;  %v1208_v8 = vrot.slane %v1202_v44, 2 }
 0x3f5   : > { %5130 = vst [vmem:[#allocation29_spill] sm:$0xff] %v3719_v13  ;;  %914 = vrot.lane.b32.xlu1 %v911_v34, %s2749_s16  ;;  %v5135_v34 = vrot.slane %v3490_v51, 2  ;;  %v3758_v51 = vmul.f32 %v3749_v14, %v3068_v6  ;;  %v1187_v62 = vrot.slane %v1181_v48, 1  ;;  %v5140_v48 = vrot.slane %v3735_v45, 1 }
 0x3f6   : > { %1136 = vrot.lane.b32.xlu0 %v1133_v7, %s2750_s27  ;;  %v1154_v7 = vsel %vm367_vm4, %v1152_v18, %v5136_v21  ;;  %v973_v21 = vrot.slane %v966_v23, 4 }
 0x3f7   : > { %v3738_v35 = vpop.permute.xlu1 %1173  ;;  %v932_v55 = vsel %vm374_vm7, %v5135_v34, %v931_v54  ;;  %v3772_v25 = vstv %s2600_s15  ;;  %v5144_v44 = vrot.slane %v3758_v51, 2  ;;  %s3944_s15 = sld [smem:[#allocation4 + $0x30]] }
 0x3f8   : > { %5133 = vst [vmem:[#allocation30_spill] sm:$0xff] %v3738_v35  ;;  %v3742_v26 = vpop.permute.xlu0 %1762  ;;  %v1204_v35 = vmul.f32 %v3749_v14, %v3065_v5  ;;  %v1225_v47 = vmul.f32 %v3772_v25, %v3065_v5 }
 0x3f9   : > { %5134 = vst [vmem:[#allocation31_spill] sm:$0xff] %v3742_v26  ;;  %935 = vrot.lane.b32.xlu1 %v932_v55, %s2749_s16  ;;  %v5139_v55 = vrot.slane %v3511_v57, 3  ;;  %v3781_v57 = vmul.f32 %v3772_v25, %v3068_v6  ;;  %v3926_v26 = vstv %s3868_s14  ;;  %s4111_s14 = sld [smem:[#allocation4 + $0x5e]] }
 0x3fa   : > { %1157 = vrot.lane.b32.xlu0 %v1154_v7, %s2750_s27  ;;  %v1189_v7 = vsel %vm376_vm8, %v1187_v62, %v5140_v48  ;;  %v994_v48 = vrot.slane %v987_v36, 5  ;;  %v1211_v30 = vrot.slane %v1204_v35, 2  ;;  %v1232_v1 = vrot.slane %v1225_v47, 3 }
 0x3fb   : > { %v3761_v54 = vpop.permute.xlu1 %1313  ;;  %v953_v18 = vsel %vm372_vm6, %v5139_v55, %v952_v59  ;;  %v1223_v59 = vmul.f32 %v3772_v25, %v2945_v11 }
 0x3fc   : > { %5137 = vst [vmem:[#allocation32_spill] sm:$0xff] %v3761_v54  ;;  %v3765_v34 = vpop.permute.xlu0 %1783 }
 0x3fd   : > { %5138 = vst [vmem:[#allocation33_spill] sm:$0xff] %v3765_v34  ;;  %956 = vrot.lane.b32.xlu1 %v953_v18, %s2749_s16  ;;  %v5143_v18 = vrot.slane %v3532_v58, 4  ;;  %v3795_v34 = vstv %s2601_s26  ;;  %v1229_v19 = vrot.slane %v1223_v59, 3  ;;  %v5148_v59 = vrot.slane %v3781_v57, 3  ;;  %s3975_s26 = sld [smem:[#allocation4 + $0x1c]] }
 0x3fe   : > { %1192 = vrot.lane.b32.xlu0 %v1189_v7, %s2751_s10  ;;  %v1210_v7 = vsel %vm374_vm7, %v1208_v8, %v5144_v44  ;;  %v3804_v58 = vmul.f32 %v3795_v34, %v3068_v6  ;;  %v1015_v44 = vrot.slane %v1008_v12, 6 }
 0x3ff   : > { %v3784_v23 = vpop.permute.xlu1 %1582  ;;  %v974_v62 = vsel %vm182_vm0, %v5143_v18, %v973_v21  ;;  %v1244_v21 = vmul.f32 %v3795_v34, %v2945_v11 }
 0x400   : > { %5141 = vst [vmem:[#allocation34_spill] sm:$0xff] %v3784_v23  ;;  %v3788_v55 = vpop.permute.xlu0 %1804  ;;  %v1043_v23 = vmul.f32 %v3588_v4, %v3065_v5 }
 0x401   : > { %5142 = vst [vmem:[#allocation35_spill] sm:$0xff] %v3788_v55  ;;  %977 = vrot.lane.b32.xlu1 %v974_v62, %s2749_s16  ;;  %v5147_v62 = vrot.slane %v3553_v17, 5  ;;  %v3818_v55 = vstv %s2602_s28  ;;  %v1250_v4 = vrot.slane %v1244_v21, 4  ;;  %v5152_v21 = vrot.slane %v3804_v58, 4  ;;  %s3979_s28 = sld [smem:[#allocation4 + $0x49]] }
 0x402   : > { %1213 = vrot.lane.b32.xlu0 %v1210_v7, %s2751_s10  ;;  %v1231_v7 = vsel %vm372_vm6, %v1229_v19, %v5148_v59  ;;  %v3827_v17 = vmul.f32 %v3818_v55, %v3068_v6  ;;  %v1050_v59 = vrot.slane %v1043_v23, 1 }
 0x403   : > { %v3807_v36 = vpop.permute.xlu1 %1603  ;;  %v995_v8 = vsel %vm369_vm5, %v5147_v62, %v994_v48  ;;  %v1265_v48 = vmul.f32 %v3818_v55, %v2945_v11 }
 0x404   : > { %5145 = vst [vmem:[#allocation36_spill] sm:$0xff] %v3807_v36  ;;  %v3811_v18 = vpop.permute.xlu0 %1825  ;;  %v1064_v36 = vmul.f32 %v3611_v56, %v3065_v5 }
 0x405   : > { %5146 = vst [vmem:[#allocation37_spill] sm:$0xff] %v3811_v18  ;;  %998 = vrot.lane.b32.xlu1 %v995_v8, %s2749_s16  ;;  %v5151_v8 = vrot.slane %v3576_v29, 6  ;;  %v3841_v18 = vstv %s2603_s11  ;;  %v1271_v23 = vrot.slane %v1265_v48, 5  ;;  %v5156_v48 = vrot.slane %v3827_v17, 5  ;;  %s4013_s11 = sld [smem:[#allocation4 + $0x23]] }
 0x406   : > { %1234 = vrot.lane.b32.xlu0 %v1231_v7, %s2751_s10  ;;  %v1252_v7 = vsel %vm182_vm0, %v1250_v4, %v5152_v21  ;;  %v3850_v29 = vmul.f32 %v3841_v18, %v3068_v6  ;;  %v5155_v4 = vrot.slane %v3599_v41, 1  ;;  %v1071_v21 = vrot.slane %v1064_v36, 2 }
 0x407   : > { %v3830_v12 = vpop.permute.xlu1 %1624  ;;  %v1016_v19 = vsel %vm367_vm4, %v5151_v8, %v1015_v44  ;;  %v1286_v44 = vmul.f32 %v3841_v18, %v2945_v11  ;;  %v4061_v14 = vstv %s3979_s28  ;;  %s4313_s28 = sld [smem:[#allocation4 + $0x5f]] }
 0x408   : > { %5149 = vst [vmem:[#allocation38_spill] sm:$0xff] %v3830_v12  ;;  %v3834_v62 = vpop.permute.xlu0 %1860  ;;  %v1085_v12 = vmul.f32 %v3634_v61, %v3065_v5 }
 0x409   : > { %5150 = vst [vmem:[#allocation39_spill] sm:$0xff] %v3834_v62  ;;  %1019 = vrot.lane.b32.xlu1 %v1016_v19, %s2749_s16  ;;  %v1051_v19 = vsel %vm376_vm8, %v5155_v4, %v1050_v59  ;;  %v3866_v62 = vstv %s2605_s17  ;;  %v1292_v61 = vrot.slane %v1286_v44, 6  ;;  %v5159_v44 = vrot.slane %v3850_v29, 6  ;;  %s4022_s17 = sld [smem:[#allocation4 + $0x50]] }
 0x40a   : > { %1255 = vrot.lane.b32.xlu0 %v1252_v7, %s2751_s10  ;;  %v1273_v7 = vsel %vm369_vm5, %v1271_v23, %v5156_v48  ;;  %v3877_v41 = vmul.f32 %v3866_v62, %v3068_v6  ;;  %v1321_v59 = vmul.f32 %v3866_v62, %v2945_v11  ;;  %v1092_v48 = vrot.slane %v1085_v12, 3 }
 0x40b   : > { %v3855_v56 = vpop.permute.xlu1 %1645  ;;  %v4096_v35 = vstv %s4013_s11  ;;  %s4379_s11 = sld [smem:[#allocation4 + $0x3d]] }
 0x40c   : > { %5153 = vst [vmem:[#allocation40_spill] sm:$0xff] %v3855_v56  ;;  %v3859_v8 = vpop.permute.xlu0 %1881  ;;  %v1106_v56 = vmul.f32 %v3657_v16, %v3065_v5  ;;  %v3910_v16 = vstv %s3853_s19  ;;  %s4063_s19 = sld [smem:[#allocation4 + $0x57]]  ;;  %v573_v47 = vmul.f32 %v4096_v35, %v2945_v11 }
 0x40d   : > { %5154 = vst [vmem:[#allocation41_spill] sm:$0xff] %v3859_v8  ;;  %1054 = vrot.lane.b32.xlu1 %v1051_v19, %s2750_s27  ;;  %v5158_v19 = vrot.slane %v3620_v53, 2  ;;  %v3891_v8 = vstv %s2606_s18  ;;  %s4057_s18 = sld [smem:[#allocation4 + $0x2a]] }
 0x40e   : > { %1276 = vrot.lane.b32.xlu0 %v1273_v7, %s2751_s10  ;;  %v1294_v7 = vsel %vm367_vm4, %v1292_v61, %v5159_v44  ;;  %v3902_v53 = vmul.f32 %v3891_v8, %v3068_v6  ;;  %v1342_v61 = vmul.f32 %v3891_v8, %v2945_v11 }
 0x40f   : > { %v3880_v36 = vpop.permute.xlu1 %1666  ;;  %v1072_v23 = vsel %vm374_vm7, %v5158_v19, %v1071_v21  ;;  %v1327_v21 = vrot.slane %v1321_v59, 1  ;;  %v5162_v59 = vrot.slane %v3877_v41, 1  ;;  %v4100_v25 = vstv %s4022_s17  ;;  %s4409_s17 = sld [smem:[#allocation4 + $0x44]] }
 0x410   : > { %5157 = vst [vmem:[#allocation42_spill] sm:$0xff] %v3880_v36  ;;  %v3884_v4 = vpop.permute.xlu0 %632  ;;  %v1113_v36 = vrot.slane %v1106_v56, 4  ;;  %v505_v56 = vmul.f32 %v3910_v16, %v2945_v11 }
 0x411   : > { %1075 = vrot.lane.b32.xlu1 %v1072_v23, %s2750_s27  ;;  %v5161_v23 = vrot.slane %v3643_v28, 3  ;;  %v3935_v28 = vmul.f32 %v3926_v26, %v3068_v6 }
 0x412   : > { %1297 = vrot.lane.b32.xlu0 %v1294_v7, %s2751_s10  ;;  %v1127_v7 = vmul.f32 %v3680_v40, %v3065_v5  ;;  %v3941_v40 = vmul.f32 %v3910_v16, %v3068_v6 }
 0x413   : > { %v3912_v12 = vpop.permute.xlu1 %1687  ;;  %v1093_v44 = vsel %vm372_vm6, %v5161_v23, %v1092_v48  ;;  %v1363_v23 = vmul.f32 %v3926_v26, %v2945_v11 }
 0x414   : > { %5160 = vst [vmem:[#allocation43_spill] sm:$0xff] %v3912_v12  ;;  %v3918_v19 = vpop.permute.xlu0 %653  ;;  %v1329_v12 = vsel %vm376_vm8, %v1327_v21, %v5162_v59  ;;  %v1348_v21 = vrot.slane %v1342_v61, 2  ;;  %v5164_v59 = vrot.slane %v3666_v32, 4  ;;  %v1134_v63 = vrot.slane %v1127_v7, 5 }
 0x415   : > { %1096 = vrot.lane.b32.xlu1 %v1093_v44, %s2750_s27  ;;  %v5165_v61 = vrot.slane %v3902_v53, 2  ;;  %v3969_v32 = vmul.f32 %v3960_v9, %v3068_v6  ;;  %v3973_v7 = vstv %s3906_s25  ;;  %s4192_s25 = sld [smem:[#allocation4 + $0x3c]] }
 0x416   : > { %1332 = vrot.lane.b32.xlu0 %v1329_v12, %s2752_s12  ;;  %v1114_v13 = vsel %vm182_vm0, %v5164_v59, %v1113_v36  ;;  %v1148_v12 = vmul.f32 %v3703_v10, %v3065_v5  ;;  %v1369_v59 = vrot.slane %v1363_v23, 3  ;;  %v3986_v36 = vstv %s3916_s13  ;;  %s4208_s13 = sld [smem:[#allocation4 + $0x43]] }
 0x417   : > { %v3948_v48 = vpop.permute.xlu1 %1722  ;;  %v3990_v38 = vmul.f32 %v3973_v7, %v3068_v6  ;;  %v1183_v23 = vmul.f32 %v3726_v27, %v3065_v5  ;;  %v4006_v20 = vmul.f32 %v3986_v36, %v3068_v6  ;;  %v5169_v27 = vrot.slane %v3941_v40, 1 }
 0x418   : > { %5163 = vst [vmem:[#allocation44_spill] sm:$0xff] %v3948_v48  ;;  %v3952_v44 = vpop.permute.xlu0 %674  ;;  %v1350_v48 = vsel %vm374_vm7, %v1348_v21, %v5165_v61  ;;  %v1384_v61 = vmul.f32 %v3960_v9, %v2945_v11  ;;  %v1155_v43 = vrot.slane %v1148_v12, 6 }
 0x419   : > { %1117 = vrot.lane.b32.xlu1 %v1114_v13, %s2750_s27  ;;  %v511_v13 = vrot.slane %v505_v56, 1  ;;  %v1190_v46 = vrot.slane %v1183_v23, 1 }
 0x41a   : > { %1353 = vrot.lane.b32.xlu0 %v1350_v48, %s2752_s12  ;;  %v5167_v48 = vrot.slane %v3689_v33, 5  ;;  %v522_v33 = vmul.f32 %v3973_v7, %v2945_v11  ;;  %v1390_v15 = vrot.slane %v1384_v61, 4  ;;  %v5174_v61 = vrot.slane %v3969_v32, 4 }
 0x41b   : > { %v3981_v21 = vpop.permute.xlu1 %1743  ;;  %v513_v12 = vsel %vm376_vm8, %v511_v13, %v5169_v27  ;;  %v1405_v13 = vmul.f32 %v3986_v36, %v2945_v11 }
 0x41c   : > { %5166 = vst [vmem:[#allocation45_spill] sm:$0xff] %v3981_v21  ;;  %v3992_v10 = vpop.permute.xlu0 %695  ;;  %v1135_v56 = vsel %vm369_vm5, %v5167_v48, %v1134_v63  ;;  %v5168_v21 = vrot.slane %v3935_v28, 3  ;;  %v4011_v63 = vstv %s3937_s24  ;;  %v528_v39 = vrot.slane %v522_v33, 2  ;;  %s4230_s24 = sld [smem:[#allocation4 + $0x4a]] }
 0x41d   : > { %1138 = vrot.lane.b32.xlu1 %v1135_v56, %s2750_s27  ;;  %v4029_v56 = vmul.f32 %v4011_v63, %v3068_v6 }
 0x41e   : > { %v1371_v54 = vsel %vm372_vm6, %v1369_v59, %v5168_v21  ;;  %v4020_v21 = vstv %s3944_s15  ;;  %v5170_v59 = vstv %s3904_s23  ;;  %s4252_s15 = sld [smem:[#allocation4 + $0x51]] }
 0x41f   : > { %1374 = vrot.lane.b32.xlu0 %v1371_v54, %s2752_s12  ;;  %v499_v48 = vmul.f32 %v5170_v59, %v2945_v11  ;;  %5171 = vst [vmem:[#allocation46_spill] sm:$0xff] %v4029_v56  ;;  %v4031_v3 = vpop.permute.xlu1 %1764  ;;  %v1156_v59 = vsel %vm367_vm4, %v5173_v50, %v1155_v43  ;;  %v4050_v54 = vmul.f32 %v4020_v21, %v3068_v6  ;;  %v4055_v43 = vstv %s3975_s26  ;;  %s4282_s26 = sld [smem:[#allocation4 + $0x58]] }
 0x420   : > { %5172 = vst [vmem:[#allocation47_spill] sm:$0xff] %v4031_v3  ;;  %v4036_v27 = vpop.permute.xlu0 %716  ;;  %v1392_v3 = vsel %vm182_vm0, %v1390_v15, %v5174_v61  ;;  %v539_v50 = vmul.f32 %v4011_v63, %v2945_v11  ;;  %v4068_v23 = vmul.f32 %v4055_v43, %v3068_v6  ;;  %v5179_v15 = vrot.slane %v3735_v45, 1 }
 0x421   : > { %v518_v49 = vadd.f32 %v513_v12, %v499_v48  ;;  %1159 = vrot.lane.b32.xlu1 %v1156_v59, %s2750_s27  ;;  %5175 = vst [vmem:[#allocation48_spill] sm:$0xff] %v4050_v54  ;;  %v1411_v12 = vrot.slane %v1405_v13, 5  ;;  %v1426_v48 = vmul.f32 %v4020_v21, %v2945_v11  ;;  %v5180_v13 = vrot.slane %v4006_v20, 5 }
 0x422   : > { %5176 = vst [vmem:[#allocation49_spill] sm:$0xff] %v4068_v23  ;;  %v1191_v31 = vsel %vm376_vm8, %v5179_v15, %v1190_v46  ;;  %v545_v45 = vrot.slane %v539_v50, 3  ;;  %v556_v46 = vmul.f32 %v4055_v43, %v2945_v11  ;;  %v1891_v50 = vmul.f32 %v4061_v14, %v2926_v2 }
 0x423   : > { %1395 = vrot.lane.b32.xlu0 %v1392_v3, %s2752_s12  ;;  %v4070_v33 = vpop.permute.xlu1 %1785  ;;  %v5178_v3 = vrot.slane %v3990_v38, 2  ;;  %v1413_v60 = vsel %vm369_vm5, %v1411_v12, %v5180_v13  ;;  %v1432_v12 = vrot.slane %v1426_v48, 6  ;;  %v5183_v13 = vrot.slane %v3758_v51, 2 }
 0x424   : > { %5177 = vst [vmem:[#allocation50_spill] sm:$0xff] %v4070_v33  ;;  %v4077_v61 = vpop.permute.xlu0 %737  ;;  %v1246_v48 = vmul.f32 %v3795_v34, %v3065_v5  ;;  %v5184_v42 = vrot.slane %v4050_v54, 6  ;;  %v562_v51 = vrot.slane %v556_v46, 4  ;;  %v4139_v34 = vstv %s4063_s19  ;;  %s4484_s19 = sld [smem:[#allocation4 + $0x52]] }
 0x425   : > { %v530_v59 = vsel %vm374_vm7, %v528_v39, %v5178_v3  ;;  %1194 = vrot.lane.b32.xlu1 %v1191_v31, %s2751_s10  ;;  %v4091_v39 = vmul.f32 %v4061_v14, %v2971_v22  ;;  %v1212_v31 = vsel %vm374_vm7, %v5183_v13, %v1211_v30  ;;  %v4135_v30 = vstv %s4057_s18  ;;  %s4452_s18 = sld [smem:[#allocation4 + $0x4b]] }
 0x426   : > { %v535_v33 = vadd.f32 %v530_v59, %v518_v49  ;;  %v4105_v49 = vmul.f32 %v4096_v35, %v3068_v6  ;;  %v1434_v52 = vsel %vm367_vm4, %v1432_v12, %v5184_v42  ;;  %v4144_v42 = vmul.f32 %v4135_v30, %v3068_v6 }
 0x427   : > { %1416 = vrot.lane.b32.xlu0 %v1413_v60, %s2752_s12  ;;  %v4107_v15 = vpop.permute.xlu1 %1806  ;;  %v5182_v60 = vrot.slane %v4029_v56, 3  ;;  %v1897_v12 = vrot.slane %v1891_v50, 3  ;;  %v1912_v46 = vmul.f32 %v4100_v25, %v2926_v2  ;;  %v1253_v56 = vrot.slane %v1246_v48, 4 }
 0x428   : > { %5181 = vst [vmem:[#allocation51_spill] sm:$0xff] %v4107_v15  ;;  %v4116_v59 = vpop.permute.xlu0 %772  ;;  %v1267_v54 = vmul.f32 %v3818_v55, %v3065_v5  ;;  %v5188_v50 = vrot.slane %v4091_v39, 3 }
 0x429   : > { %v547_v3 = vsel %vm372_vm6, %v545_v45, %v5182_v60  ;;  %1215 = vrot.lane.b32.xlu1 %v1212_v31, %s2751_s10  ;;  %v4130_v45 = vmul.f32 %v4100_v25, %v2971_v22  ;;  %v5186_v60 = vrot.slane %v4068_v23, 4  ;;  %v1918_v48 = vrot.slane %v1912_v46, 4 }
 0x42a   : > { %v552_v15 = vadd.f32 %v547_v3, %v535_v33  ;;  %v1899_v23 = vsel %vm372_vm6, %v1897_v12, %v5188_v50  ;;  %v4178_v12 = vstv %s4111_s14  ;;  %v1274_v50 = vrot.slane %v1267_v54, 5  ;;  %s4509_s14 = sld [smem:[#allocation4 + $0x59]] }
 0x42b   : > { %1437 = vrot.lane.b32.xlu0 %v1434_v52, %s2752_s12  ;;  %v4146_v31 = vpop.permute.xlu1 %1827  ;;  %v564_v3 = vsel %vm182_vm0, %v562_v51, %v5186_v60  ;;  %v5187_v52 = vrot.slane %v3781_v57, 3  ;;  %v5100_v51 = vrot.slane %v4130_v45, 4  ;;  %v4167_v60 = vmul.f32 %v4139_v34, %v2971_v22 }
 0x42c   : > { %5185 = vst [vmem:[#allocation52_spill] sm:$0xff] %v4146_v31  ;;  %v4153_v13 = vpop.permute.xlu0 %793  ;;  %v569_v31 = vadd.f32 %v564_v3, %v552_v15  ;;  %v579_v57 = vrot.slane %v573_v47, 5  ;;  %v5190_v3 = vrot.slane %v4105_v49, 5  ;;  %v1288_v46 = vmul.f32 %v3841_v18, %v3065_v5 }
 0x42d   : > { %v1233_v33 = vsel %vm372_vm6, %v5187_v52, %v1232_v1  ;;  %v590_v1 = vmul.f32 %v4135_v30, %v2945_v11  ;;  %v5191_v11 = vrot.slane %v3804_v58, 4  ;;  %v4201_v58 = vmul.f32 %v4178_v12, %v2971_v22 }
 0x42e   : > { %1236 = vrot.lane.b32.xlu1 %v1233_v33, %s2751_s10  ;;  %v1933_v33 = vmul.f32 %v4139_v34, %v2926_v2  ;;  %v581_v47 = vsel %vm369_vm5, %v579_v57, %v5190_v3  ;;  %v5105_v57 = vrot.slane %v4167_v60, 5 }
 0x42f   : > { %1902 = vrot.lane.b32.xlu0 %v1899_v23, %s2749_s16  ;;  %v4173_v15 = vpop.permute.xlu1 %1862  ;;  %v1254_v23 = vsel %vm182_vm0, %v5191_v11, %v1253_v56  ;;  %v586_v55 = vadd.f32 %v581_v47, %v569_v31  ;;  %v596_v56 = vrot.slane %v590_v1, 6  ;;  %v1954_v31 = vmul.f32 %v4178_v12, %v2926_v2 }
 0x430   : > { %5189 = vst [vmem:[#allocation53_spill] sm:$0xff] %v4173_v15  ;;  %v4185_v52 = vpop.permute.xlu0 %814  ;;  %v1920_v15 = vsel %vm182_vm0, %v1918_v48, %v5100_v51  ;;  %v1939_v18 = vrot.slane %v1933_v33, 5  ;;  %v5192_v48 = vrot.slane %v4144_v42, 6  ;;  %v5193_v11 = vrot.slane %v3827_v17, 5 }
 0x431   : > { %v1323_v33 = vmul.f32 %v3866_v62, %v3065_v5 }
 0x432   : > { %1257 = vrot.lane.b32.xlu1 %v1254_v23, %s2751_s10  ;;  %v598_v3 = vsel %vm367_vm4, %v596_v56, %v5192_v48  ;;  %v1275_v1 = vsel %vm369_vm5, %v5193_v11, %v1274_v50  ;;  %v1941_v51 = vsel %vm369_vm5, %v1939_v18, %v5105_v57  ;;  %v5102_v56 = vrot.slane %v4201_v58, 6 }
 0x433   : > { %1923 = vrot.lane.b32.xlu0 %v1920_v15, %s2749_s16  ;;  %v4204_v54 = vpop.permute.xlu1 %1883  ;;  %v1295_v15 = vrot.slane %v1288_v46, 6  ;;  %v603_v23 = vadd.f32 %v598_v3, %v586_v55  ;;  %v1960_v50 = vrot.slane %v1954_v31, 6  ;;  %v5101_v46 = vstv %s4180_s22 }
 0x434   : > { %v4213_v47 = vpop.permute.xlu0 %835  ;;  %v5194_v55 = vrot.slane %v3850_v29, 6  ;;  %v1330_v3 = vrot.slane %v1323_v33, 1  ;;  %v4240_v11 = vstv %s4192_s25  ;;  %v4263_v33 = vstv %s4208_s13  ;;  %s4528_s25 = sld [smem:[#allocation4 + $0x60]]  ;;  %s2655_s13 = sld [smem:[#allocation4 + $0x45]] }
 0x435   : > { %v617_v17 = vadd.f32 %v3432_v0, %v603_v23  ;;  %v1962_v31 = vsel %vm367_vm4, %v1960_v50, %v5102_v56  ;;  %v507_v23 = vmul.f32 %v3910_v16, %v3065_v5  ;;  %v5195_v50 = vrot.slane %v3877_v41, 1 }
 0x436   : > { %1278 = vrot.lane.b32.xlu1 %v1275_v1, %s2751_s10  ;;  %v1296_v18 = vsel %vm367_vm4, %v5194_v55, %v1295_v15  ;;  %v4249_v1 = vmul.f32 %v4240_v11, %v2971_v22  ;;  %v1989_v15 = vmul.f32 %v4240_v11, %v2926_v2 }
 0x437   : > { %1944 = vrot.lane.b32.xlu0 %v1941_v51, %s2749_s16  ;;  %v4227_v48 = vpop.permute.xlu1 %634  ;;  %v1344_v51 = vmul.f32 %v3891_v8, %v3065_v5  ;;  %v638_v0 = vadd.f32 %v3884_v4, %v617_v17  ;;  %v1975_v4 = vmul.f32 %v5101_v46, %v2926_v2  ;;  %v4279_v46 = vmul.f32 %v4263_v33, %v2971_v22 }
 0x438   : > { %v4232_v62 = vpop.permute.xlu0 %856 }
 0x439   : > { %v659_v29 = vadd.f32 %v3918_v19, %v638_v0  ;;  %v1331_v19 = vsel %vm376_vm8, %v5195_v50, %v1330_v3  ;;  %v1351_v55 = vrot.slane %v1344_v51, 2  ;;  %v4290_v3 = vstv %s4230_s24  ;;  %s4638_s24 = sld [smem:[#allocation4 + $0x4c]] }
 0x43a   : > { %1299 = vrot.lane.b32.xlu1 %v1296_v18, %s2751_s10  ;;  %v1365_v18 = vmul.f32 %v3926_v26, %v3065_v5  ;;  %v1995_v26 = vrot.slane %v1989_v15, 1  ;;  %v514_v51 = vrot.slane %v507_v23, 1  ;;  %v5196_v50 = vrot.slane %v3902_v53, 2 }
 0x43b   : > { %1965 = vrot.lane.b32.xlu0 %v1962_v31, %s2749_s16  ;;  %v4255_v8 = vpop.permute.xlu1 %655  ;;  %v680_v0 = vadd.f32 %v3952_v44, %v659_v29  ;;  %v5103_v31 = vrot.slane %v4249_v1, 1  ;;  %v2010_v44 = vmul.f32 %v4263_v33, %v2926_v2  ;;  %v5104_v23 = vrot.slane %v4279_v46, 2 }
 0x43c   : > { %v4267_v17 = vpop.permute.xlu0 %877  ;;  %v4307_v56 = vmul.f32 %v4290_v3, %v2971_v22  ;;  %v4311_v53 = vstv %s4252_s15  ;;  %s4667_s15 = sld [smem:[#allocation4 + $0x53]] }
 0x43d   : > { %v701_v41 = vadd.f32 %v3992_v10, %v680_v0  ;;  %v1386_v10 = vmul.f32 %v3960_v9, %v3065_v5  ;;  %v1997_v15 = vsel %vm376_vm8, %v1995_v26, %v5103_v31  ;;  %v524_v9 = vmul.f32 %v3973_v7, %v3065_v5 }
 0x43e   : > { %1334 = vrot.lane.b32.xlu1 %v1331_v19, %s2752_s12  ;;  %v1372_v19 = vrot.slane %v1365_v18, 3  ;;  %v2016_v18 = vrot.slane %v2010_v44, 2  ;;  %v1407_v31 = vmul.f32 %v3986_v36, %v3065_v5  ;;  %v5198_v7 = vrot.slane %v3941_v40, 1 }
 0x43f   : > { %1979 = vrot.lane.b32.xlu0 %v1975_v4, %s2750_s27  ;;  %v4285_v16 = vpop.permute.xlu1 %676  ;;  %v1352_v4 = vsel %vm374_vm7, %v5196_v50, %v1351_v55  ;;  %v722_v0 = vadd.f32 %v4036_v27, %v701_v41  ;;  %v2031_v41 = vmul.f32 %v4290_v3, %v2926_v2  ;;  %v5197_v50 = vrot.slane %v3935_v28, 3 }
 0x440   : > { %v4292_v29 = vpop.permute.xlu0 %912  ;;  %v2018_v44 = vsel %vm374_vm7, %v2016_v18, %v5104_v23  ;;  %v4339_v28 = vmul.f32 %v4311_v53, %v2971_v22  ;;  %v2052_v40 = vmul.f32 %v4311_v53, %v2926_v2  ;;  %v4348_v36 = vstv %s4282_s26  ;;  %s4689_s26 = sld [smem:[#allocation4 + $0x5a]] }
 0x441   : > { %v743_v27 = vadd.f32 %v4077_v61, %v722_v0  ;;  %v515_v61 = vsel %vm376_vm8, %v5198_v7, %v514_v51  ;;  %v5106_v0 = vrot.slane %v4307_v56, 3  ;;  %v531_v51 = vrot.slane %v524_v9, 2 }
 0x442   : > { %1355 = vrot.lane.b32.xlu1 %v1352_v4, %s2752_s12  ;;  %v1373_v4 = vsel %vm372_vm6, %v5197_v50, %v1372_v19  ;;  %v5199_v19 = vstv %s3904_s23  ;;  %v541_v18 = vmul.f32 %v4011_v63, %v3065_v5  ;;  %v2037_v7 = vrot.slane %v2031_v41, 3  ;;  %s4377_s23 = sld [smem:[#allocation4 + $0x36]] }
 0x443   : > { %2000 = vrot.lane.b32.xlu0 %v1997_v15, %s2750_s27  ;;  %v4318_v55 = vpop.permute.xlu1 %697  ;;  %v1393_v15 = vrot.slane %v1386_v10, 4  ;;  %v500_v10 = vmul.f32 %v5199_v19, %v3068_v6  ;;  %v757_v50 = vadd.f32 %v3453_v37, %v743_v27  ;;  %v5200_v6 = vrot.slane %v3969_v32, 4 }
 0x444   : > { %v4322_v26 = vpop.permute.xlu0 %933  ;;  %v1414_v19 = vrot.slane %v1407_v31, 5  ;;  %v1428_v9 = vmul.f32 %v4020_v21, %v3065_v5  ;;  %v2039_v37 = vsel %vm372_vm6, %v2037_v7, %v5106_v0  ;;  %v4369_v27 = vmul.f32 %v4348_v36, %v2971_v22 }
 0x445   : > { %v519_v23 = vadd.f32 %v515_v61, %v500_v10  ;;  %v2058_v32 = vrot.slane %v2052_v40, 4  ;;  %v2073_v31 = vmul.f32 %v4348_v36, %v2926_v2  ;;  %v4375_v41 = vstv %s4313_s28  ;;  %s4706_s28 = sld [smem:[#allocation4 + $0x61]] }
 0x446   : > { %1376 = vrot.lane.b32.xlu1 %v1373_v4, %s2752_s12  ;;  %v5201_v21 = vrot.slane %v3990_v38, 2  ;;  %v548_v61 = vrot.slane %v541_v18, 3  ;;  %v558_v10 = vmul.f32 %v4055_v43, %v3065_v5  ;;  %v778_v7 = vadd.f32 %v4116_v59, %v757_v50 }
 0x447   : > { %2021 = vrot.lane.b32.xlu0 %v2018_v44, %s2750_s27  ;;  %v4353_v4 = vpop.permute.xlu1 %718  ;;  %v1394_v44 = vsel %vm182_vm0, %v5200_v6, %v1393_v15  ;;  %v1435_v63 = vrot.slane %v1428_v9, 6  ;;  %v1893_v38 = vmul.f32 %v4061_v14, %v2974_v24  ;;  %v5203_v43 = vrot.slane %v4339_v28, 4 }
 0x448   : > { %v4355_v57 = vpop.permute.xlu0 %954  ;;  %v532_v15 = vsel %vm374_vm7, %v5201_v21, %v531_v51  ;;  %v799_v51 = vadd.f32 %v4153_v13, %v778_v7  ;;  %v4404_v18 = vmul.f32 %v4375_v41, %v2971_v22  ;;  %v2094_v14 = vmul.f32 %v4375_v41, %v2926_v2  ;;  %v5204_v13 = vld [vmem:[#allocation46_spill] sm:$0xff]  ;;  %v5206_v7 = vld [vmem:[#allocation48_spill] sm:$0xff] }
 0x449   : > { %v536_v6 = vadd.f32 %v532_v15, %v519_v23  ;;  %v2060_v59 = vsel %vm182_vm0, %v2058_v32, %v5203_v43  ;;  %v2080_v23 = vrot.slane %v4369_v27, 5  ;;  %v575_v9 = vmul.f32 %v4096_v35, %v3065_v5 }
 0x44a   : > { %1397 = vrot.lane.b32.xlu1 %v1394_v44, %s2752_s12  ;;  %v820_v32 = vadd.f32 %v4185_v52, %v799_v51  ;;  %v2101_v52 = vrot.slane %v4404_v18, 6  ;;  %v2114_v51 = vstv %s4377_s23  ;;  %s2612_s23 = sld [smem:[#allocation4 + $0x38]] }
 0x44b   : > { %2042 = vrot.lane.b32.xlu0 %v2039_v37, %s2750_s27  ;;  %v4387_v40 = vpop.permute.xlu1 %739  ;;  %v5202_v37 = vrot.slane %v4006_v20, 5  ;;  %v2079_v20 = vrot.slane %v2073_v31, 5 }
 0x44c   : > { %v4389_v44 = vpop.permute.xlu0 %975 }
 0x44d   : > { %v1415_v0 = vsel %vm369_vm5, %v5202_v37, %v1414_v19  ;;  %v565_v19 = vrot.slane %v558_v10, 4  ;;  %v5207_v37 = vrot.slane %v5206_v7, 6  ;;  %v841_v10 = vadd.f32 %v4213_v47, %v820_v32 }
 0x44e   : > { %1418 = vrot.lane.b32.xlu1 %v1415_v0, %s2752_s12  ;;  %v5205_v0 = vrot.slane %v5204_v13, 3  ;;  %v2081_v35 = vsel %vm369_vm5, %v2079_v20, %v2080_v23  ;;  %v4435_v13 = vstv %s4379_s11  ;;  %v582_v47 = vrot.slane %v575_v9, 5  ;;  %s2613_s11 = sld [smem:[#allocation4 + $0x3f]] }
 0x44f   : > { %2063 = vrot.lane.b32.xlu0 %v2060_v59, %s2750_s27  ;;  %v4417_v21 = vpop.permute.xlu1 %774  ;;  %v1436_v43 = vsel %vm367_vm4, %v5207_v37, %v1435_v63  ;;  %v1900_v59 = vrot.slane %v1893_v38, 3  ;;  %v5208_v63 = vld [vmem:[#allocation49_spill] sm:$0xff] }
 0x450   : > { %v549_v50 = vsel %vm372_vm6, %v5205_v0, %v548_v61  ;;  %v4419_v15 = vpop.permute.xlu0 %996  ;;  %v1914_v61 = vmul.f32 %v4100_v25, %v2974_v24  ;;  %v5209_v38 = vrot.slane %v5208_v63, 4  ;;  %v592_v0 = vmul.f32 %v4135_v30, %v3065_v5 }
 0x451   : > { %v553_v31 = vadd.f32 %v549_v50, %v536_v6  ;;  %v2100_v6 = vrot.slane %v2094_v14, 6  ;;  %v862_v50 = vadd.f32 %v4232_v62, %v841_v10  ;;  %v5210_v14 = vrot.slane %v4091_v39, 3 }
 0x452   : > { %1439 = vrot.lane.b32.xlu1 %v1436_v43, %s2752_s12  ;;  %v566_v25 = vsel %vm182_vm0, %v5209_v38, %v565_v19  ;;  %v1921_v43 = vrot.slane %v1914_v61, 4  ;;  %v1935_v19 = vmul.f32 %v4139_v34, %v2974_v24  ;;  %v4461_v62 = vmul.f32 %v4435_v13, %v2971_v22 }
 0x453   : > { %2084 = vrot.lane.b32.xlu0 %v2081_v35, %s2750_s27  ;;  %v4443_v20 = vpop.permute.xlu1 %795  ;;  %v570_v32 = vadd.f32 %v566_v25, %v553_v31  ;;  %v1901_v37 = vsel %vm372_vm6, %v5210_v14, %v1900_v59  ;;  %v883_v5 = vadd.f32 %v4267_v17, %v862_v50  ;;  %v2102_v30 = vsel %vm367_vm4, %v2100_v6, %v2101_v52  ;;  %v5213_v25 = vld [vmem:[#allocation11_spill] sm:$0xff] }
 0x454   : > { %v4445_v7 = vpop.permute.xlu0 %1017  ;;  %v4465_v39 = vstv %s4409_s17  ;;  %v5211_v34 = vrot.slane %v4105_v49, 5  ;;  %v599_v31 = vrot.slane %v592_v0, 6  ;;  %v2115_v59 = vmul.f32 %v2114_v51, %v2926_v2  ;;  %s2614_s17 = sld [smem:[#allocation4 + $0x46]] }
 0x455   : > { %v2129_v61 = vmul.f32 %v4435_v13, %v2926_v2  ;;  %v5212_v6 = vrot.slane %v4130_v45, 4  ;;  %v1942_v38 = vrot.slane %v1935_v19, 5  ;;  %v1956_v49 = vmul.f32 %v4178_v12, %v2974_v24 }
 0x456   : > { %1904 = vrot.lane.b32.xlu1 %v1901_v37, %s2749_s16  ;;  %v583_v9 = vsel %vm369_vm5, %v5211_v34, %v582_v47  ;;  %v897_v47 = vadd.f32 %v5213_v25, %v883_v5  ;;  %v2136_v0 = vrot.slane %v4461_v62, 1  ;;  %v4491_v50 = vmul.f32 %v4465_v39, %v2971_v22 }
 0x457   : > { %2105 = vrot.lane.b32.xlu0 %v2102_v30, %s2750_s27  ;;  %v4470_v17 = vpop.permute.xlu1 %816  ;;  %v587_v10 = vadd.f32 %v583_v9, %v570_v32  ;;  %v1922_v63 = vsel %vm182_vm0, %v5212_v6, %v1921_v43  ;;  %v5214_v45 = vrot.slane %v4144_v42, 6  ;;  %v2135_v12 = vrot.slane %v2129_v61, 1  ;;  %v5216_v61 = vld [vmem:[#allocation22_spill] sm:$0xff] }
 0x458   : > { %v4477_v35 = vpop.permute.xlu0 %1052  ;;  %v2150_v37 = vmul.f32 %v4465_v39, %v2926_v2  ;;  %v5215_v5 = vrot.slane %v4167_v60, 5  ;;  %v1963_v34 = vrot.slane %v1956_v49, 6  ;;  %v4507_v9 = vstv %s4452_s18  ;;  %s2615_s18 = sld [smem:[#allocation4 + $0x4d]] }
 0x459   : > { %v600_v32 = vsel %vm367_vm4, %v5214_v45, %v599_v31  ;;  %v918_v42 = vadd.f32 %v4292_v29, %v897_v47  ;;  %v2137_v31 = vsel %vm376_vm8, %v2135_v12, %v2136_v0  ;;  %v4519_v60 = vmul.f32 %v4507_v9, %v2971_v22 }
 0x45a   : > { %1925 = vrot.lane.b32.xlu1 %v1922_v63, %s2749_s16  ;;  %v604_v43 = vadd.f32 %v600_v32, %v587_v10  ;;  %v1943_v30 = vsel %vm369_vm5, %v5215_v5, %v1942_v38  ;;  %v2156_v63 = vrot.slane %v2150_v37, 2  ;;  %v2171_v38 = vmul.f32 %v4507_v9, %v2926_v2 }
 0x45b   : > { %2119 = vrot.lane.b32.xlu0 %v2115_v59, %s2751_s10  ;;  %v4497_v14 = vpop.permute.xlu1 %837  ;;  %v2157_v59 = vrot.slane %v4491_v50, 2  ;;  %v939_v6 = vadd.f32 %v4322_v26, %v918_v42  ;;  %v5217_v47 = vrot.slane %v4201_v58, 6  ;;  %v1991_v26 = vmul.f32 %v4240_v11, %v2974_v24 }
 0x45c   : > { %v4501_v19 = vpop.permute.xlu0 %1073  ;;  %v618_v10 = vadd.f32 %v5216_v61, %v604_v43  ;;  %v4539_v32 = vstv %s4484_s19  ;;  %v2178_v37 = vrot.slane %v4519_v60, 3  ;;  %v5218_v5 = vstv %s4180_s22  ;;  %s2654_s22 = sld [smem:[#allocation4 + $0x3e]]  ;;  %v5227_v60 = vld [vmem:[#allocation14_spill] sm:$0xff]  ;;  %s4818_s19 = sld [smem:[#allocation4 + $0x54]] }
 0x45d   : > { %v1964_v45 = vsel %vm367_vm4, %v5217_v47, %v1963_v34  ;;  %v960_v12 = vadd.f32 %v4355_v57, %v939_v6  ;;  %v4549_v58 = vmul.f32 %v4539_v32, %v2971_v22  ;;  %v2177_v34 = vrot.slane %v2171_v38, 3 }
 0x45e   : > { %1946 = vrot.lane.b32.xlu1 %v1943_v30, %s2749_s16  ;;  %v639_v49 = vadd.f32 %v4227_v48, %v618_v10  ;;  %v2158_v48 = vsel %vm374_vm7, %v2156_v63, %v2157_v59  ;;  %v1976_v30 = vmul.f32 %v5218_v5, %v2971_v22  ;;  %v2192_v42 = vmul.f32 %v4539_v32, %v2926_v2 }
 0x45f   : > { %2140 = vrot.lane.b32.xlu0 %v2137_v31, %s2751_s10  ;;  %v4524_v29 = vpop.permute.xlu1 %858  ;;  %v981_v11 = vadd.f32 %v4389_v44, %v960_v12  ;;  %v1998_v10 = vrot.slane %v1991_v26, 1  ;;  %v4567_v6 = vstv %s4509_s14  ;;  %v2179_v63 = vsel %vm372_vm6, %v2177_v34, %v2178_v37  ;;  %v5220_v34 = vld [vmem:[#allocation12_spill] sm:$0xff]  ;;  %s4821_s14 = sld [smem:[#allocation4 + $0x5b]] }
 0x460   : > { %v4531_v25 = vpop.permute.xlu0 %1094  ;;  %v660_v43 = vadd.f32 %v4255_v8, %v639_v49  ;;  %v2012_v8 = vmul.f32 %v4263_v33, %v2974_v24  ;;  %v2199_v38 = vrot.slane %v4549_v58, 4  ;;  %v4587_v26 = vstv %s4528_s25 }
 0x461   : > { %v1002_v44 = vadd.f32 %v4419_v15, %v981_v11  ;;  %v2198_v15 = vrot.slane %v2192_v42, 4 }
 0x462   : > { %1967 = vrot.lane.b32.xlu1 %v1964_v45, %s2749_s16  ;;  %v681_v31 = vadd.f32 %v4285_v16, %v660_v43  ;;  %v4577_v16 = vmul.f32 %v4567_v6, %v2971_v22  ;;  %v2213_v45 = vmul.f32 %v4567_v6, %v2926_v2  ;;  %s4589_s16 = sld [smem:[#allocation4 + $0x37]]  ;;  %v5219_v43 = vrot.slane %v4249_v1, 1 }
 0x463   : > { %2161 = vrot.lane.b32.xlu0 %v2158_v48, %s2751_s10  ;;  %v4554_v57 = vpop.permute.xlu1 %879  ;;  %v1023_v33 = vadd.f32 %v4445_v7, %v1002_v44  ;;  %v2019_v11 = vrot.slane %v2012_v8, 2  ;;  %v2033_v7 = vmul.f32 %v4290_v3, %v2974_v24  ;;  %v2200_v5 = vsel %vm182_vm0, %v2198_v15, %v2199_v38 }
 0x464   : > { %v4562_v61 = vpop.permute.xlu0 %1115  ;;  %v702_v49 = vadd.f32 %v4318_v55, %v681_v31  ;;  %v1999_v55 = vsel %vm376_vm8, %v5219_v43, %v1998_v10  ;;  %v2219_v31 = vrot.slane %v2213_v45, 5  ;;  %v2234_v10 = vmul.f32 %v4587_v26, %v2926_v2  ;;  %v5222_v45 = vld [vmem:[#allocation24_spill] sm:$0xff] }
 0x465   : > { %v1037_v42 = vadd.f32 %v5220_v34, %v1023_v33  ;;  %v5221_v44 = vrot.slane %v4279_v46, 2 }
 0x466   : > { %1981 = vrot.lane.b32.xlu1 %v1976_v30, %s2750_s27  ;;  %v723_v12 = vadd.f32 %v4353_v4, %v702_v49  ;;  %v2220_v30 = vrot.slane %v4577_v16, 5  ;;  %v4604_v4 = vmul.f32 %v4587_v26, %v2971_v22  ;;  %v2040_v49 = vrot.slane %v2033_v7, 3 }
 0x467   : > { %2182 = vrot.lane.b32.xlu0 %v2179_v63, %s2751_s10  ;;  %v4582_v47 = vpop.permute.xlu1 %914  ;;  %v2020_v63 = vsel %vm374_vm7, %v5221_v44, %v2019_v11  ;;  %v1058_v46 = vadd.f32 %v4477_v35, %v1037_v42  ;;  %v5223_v7 = vrot.slane %v4307_v56, 3 }
 0x468   : > { %v1137_v48 = vpop.permute.xlu0 %1136  ;;  %v744_v1 = vadd.f32 %v4387_v40, %v723_v12  ;;  %v2054_v40 = vmul.f32 %v4311_v53, %v2974_v24  ;;  %v2221_v33 = vsel %vm369_vm5, %v2219_v31, %v2220_v30  ;;  %v2241_v15 = vrot.slane %v4604_v4, 6 }
 0x469   : > { %v2254_v11 = vstv %s4589_s16  ;;  %v2075_v31 = vmul.f32 %v4348_v36, %v2974_v24  ;;  %v1079_v35 = vadd.f32 %v4501_v19, %v1058_v46 }
 0x46a   : > { %2002 = vrot.lane.b32.xlu1 %v1999_v55, %s2750_s27  ;;  %v758_v12 = vadd.f32 %v5222_v45, %v744_v1  ;;  %v2240_v55 = vrot.slane %v2234_v10, 6  ;;  %v2061_v34 = vrot.slane %v2054_v40, 4  ;;  %v4636_v1 = vstv %s2654_s22 }
 0x46b   : > { %2203 = vrot.lane.b32.xlu0 %v2200_v5, %s2751_s10  ;;  %v4609_v3 = vpop.permute.xlu1 %935  ;;  %v2041_v5 = vsel %vm372_vm6, %v5223_v7, %v2040_v49  ;;  %v4647_v56 = vmul.f32 %v4636_v1, %v2971_v22  ;;  %v1100_v36 = vadd.f32 %v4531_v25, %v1079_v35  ;;  %v2255_v19 = vmul.f32 %v2254_v11, %v2926_v2 }
 0x46c   : > { %v1158_v8 = vpop.permute.xlu0 %1157  ;;  %v2242_v42 = vsel %vm367_vm4, %v2240_v55, %v2241_v15  ;;  %v779_v10 = vadd.f32 %v4417_v21, %v758_v12  ;;  %v4659_v49 = vstv %s2655_s13  ;;  %v5224_v45 = vrot.slane %v4339_v28, 4 }
 0x46d   : > { %v2082_v12 = vrot.slane %v2075_v31, 5  ;;  %v2096_v25 = vmul.f32 %v4375_v41, %v2974_v24  ;;  %v1121_v46 = vadd.f32 %v4562_v61, %v1100_v36  ;;  %v2276_v55 = vrot.slane %v4647_v56, 1 }
 0x46e   : > { %2023 = vrot.lane.b32.xlu1 %v2020_v63, %s2750_s27  ;;  %v2269_v63 = vmul.f32 %v4636_v1, %v2926_v2  ;;  %v800_v40 = vadd.f32 %v4443_v20, %v779_v10  ;;  %v2062_v21 = vsel %vm182_vm0, %v5224_v45, %v2061_v34  ;;  %v4674_v20 = vmul.f32 %v4659_v49, %v2971_v22 }
 0x46f   : > { %2224 = vrot.lane.b32.xlu0 %v2221_v33, %s2751_s10  ;;  %v4626_v43 = vpop.permute.xlu1 %956  ;;  %v1142_v7 = vadd.f32 %v1137_v48, %v1121_v46  ;;  %v2290_v34 = vmul.f32 %v4659_v49, %v2926_v2  ;;  %v2083_v35 = vsel %vm369_vm5, %v2080_v23, %v2082_v12  ;;  %v4687_v10 = vstv %s4638_s24  ;;  %v5225_v12 = vld [vmem:[#allocation13_spill] sm:$0xff] }
 0x470   : > { %v4629_v53 = vpop.permute.xlu0 %1192  ;;  %v821_v28 = vadd.f32 %v4470_v17, %v800_v40  ;;  %v2275_v41 = vrot.slane %v2269_v63, 1  ;;  %v4698_v27 = vmul.f32 %v4687_v10, %v2971_v22 }
 0x471   : > { %v1163_v17 = vadd.f32 %v1158_v8, %v1142_v7  ;;  %v2296_v8 = vrot.slane %v2290_v34, 2 }
 0x472   : > { %2044 = vrot.lane.b32.xlu1 %v2041_v5, %s2750_s27  ;;  %v842_v61 = vadd.f32 %v4497_v14, %v821_v28  ;;  %v2277_v48 = vsel %vm376_vm8, %v2275_v41, %v2276_v55  ;;  %v2297_v14 = vrot.slane %v4674_v20, 2  ;;  %v5226_v41 = vld [vmem:[#allocation26_spill] sm:$0xff] }
 0x473   : > { %2245 = vrot.lane.b32.xlu0 %v2242_v42, %s2751_s10  ;;  %v4652_v44 = vpop.permute.xlu1 %977  ;;  %v2103_v42 = vrot.slane %v2096_v25, 6  ;;  %v1177_v25 = vadd.f32 %v5225_v12, %v1163_v17  ;;  %v4739_v17 = vstv %s4689_s26 }
 0x474   : > { %v1214_v33 = vpop.permute.xlu0 %1213  ;;  %v863_v23 = vadd.f32 %v4524_v29, %v842_v61  ;;  %v2131_v29 = vmul.f32 %v4435_v13, %v2974_v24  ;;  %v2298_v46 = vsel %vm374_vm7, %v2296_v8, %v2297_v14  ;;  %v2116_v13 = vmul.f32 %v2114_v51, %v2971_v22 }
 0x475   : > { %v2104_v45 = vsel %vm367_vm4, %v2101_v52, %v2103_v42  ;;  %v2152_v42 = vmul.f32 %v4465_v39, %v2974_v24  ;;  %v4749_v8 = vmul.f32 %v4739_v17, %v2971_v22 }
 0x476   : > { %2065 = vrot.lane.b32.xlu1 %v2062_v21, %s2750_s27  ;;  %v884_v63 = vadd.f32 %v4554_v57, %v863_v23  ;;  %v4715_v21 = vstv %s4667_s15  ;;  %v2318_v57 = vrot.slane %v4698_v27, 3 }
 0x477   : > { %2259 = vrot.lane.b32.xlu0 %v2255_v19, %s2752_s12  ;;  %v4678_v5 = vpop.permute.xlu1 %998  ;;  %v2311_v19 = vmul.f32 %v4687_v10, %v2926_v2  ;;  %v4725_v18 = vmul.f32 %v4715_v21, %v2971_v22  ;;  %v2332_v7 = vmul.f32 %v4715_v21, %v2926_v2 }
 0x478   : > { %v1235_v31 = vpop.permute.xlu0 %1234  ;;  %v898_v34 = vadd.f32 %v5226_v41, %v884_v63 }
 0x479   : > { %v2317_v28 = vrot.slane %v2311_v19, 3  ;;  %v2339_v23 = vrot.slane %v4725_v18, 4  ;;  %v2338_v63 = vrot.slane %v2332_v7, 4  ;;  %v2360_v7 = vrot.slane %v4749_v8, 5  ;;  %v5235_v8 = vld [vmem:[#allocation32_spill] sm:$0xff] }
 0x47a   : > { %2086 = vrot.lane.b32.xlu1 %v2083_v35, %s2750_s27  ;;  %v2138_v35 = vrot.slane %v2131_v29, 1  ;;  %v919_v29 = vadd.f32 %v4582_v47, %v898_v34 }
 0x47b   : > { %2280 = vrot.lane.b32.xlu0 %v2277_v48, %s2752_s12  ;;  %v4702_v36 = vpop.permute.xlu1 %1019  ;;  %v1198_v48 = vadd.f32 %v4629_v53, %v1177_v25  ;;  %v2319_v51 = vsel %vm372_vm6, %v2317_v28, %v2318_v57  ;;  %v2353_v53 = vmul.f32 %v4739_v17, %v2926_v2  ;;  %v2340_v28 = vsel %vm182_vm0, %v2338_v63, %v2339_v23 }
 0x47c   : > { %v1256_v40 = vpop.permute.xlu0 %1255  ;;  %v2139_v25 = vsel %vm376_vm8, %v2136_v0, %v2138_v35  ;;  %v940_v62 = vadd.f32 %v4609_v3, %v919_v29  ;;  %v2194_v3 = vmul.f32 %v4539_v32, %v2974_v24 }
 0x47d   : > { %v1219_v19 = vadd.f32 %v1214_v33, %v1198_v48 }
 0x47e   : > { %2107 = vrot.lane.b32.xlu1 %v2104_v45, %s2750_s27  ;;  %v4757_v45 = vstv %s4706_s28  ;;  %v961_v34 = vadd.f32 %v4626_v43, %v940_v62  ;;  %s4803_s27 = sld [smem:[#allocation4 + $0x31]] }
 0x47f   : > { %2301 = vrot.lane.b32.xlu0 %v2298_v46, %s2752_s12  ;;  %v4728_v52 = vpop.permute.xlu1 %1054  ;;  %v2159_v46 = vrot.slane %v2152_v42, 2  ;;  %v1240_v33 = vadd.f32 %v1235_v31, %v1219_v19  ;;  %v4772_v47 = vmul.f32 %v4757_v45, %v2971_v22  ;;  %v2374_v31 = vmul.f32 %v4757_v45, %v2926_v2 }
 0x480   : > { %v1277_v61 = vpop.permute.xlu0 %1276  ;;  %v982_v43 = vadd.f32 %v4652_v44, %v961_v34 }
 0x481   : > { %v1261_v0 = vadd.f32 %v1256_v40, %v1240_v33  ;;  %v2160_v42 = vsel %vm374_vm7, %v2157_v59, %v2159_v46  ;;  %v2381_v19 = vrot.slane %v4772_v47, 6  ;;  %v2380_v59 = vrot.slane %v2374_v31, 6 }
 0x482   : > { %2121 = vrot.lane.b32.xlu1 %v2116_v13, %s2751_s10  ;;  %v2173_v13 = vmul.f32 %v4507_v9, %v2974_v24  ;;  %v2359_v9 = vrot.slane %v2353_v53, 5  ;;  %v1003_v53 = vadd.f32 %v4678_v5, %v982_v43  ;;  %v2236_v33 = vmul.f32 %v4587_v26, %v2974_v24 }
 0x483   : > { %2322 = vrot.lane.b32.xlu0 %v2319_v51, %s2752_s12  ;;  %v4752_v39 = vpop.permute.xlu1 %1075  ;;  %v1282_v51 = vadd.f32 %v1277_v61, %v1261_v0  ;;  %v2201_v61 = vrot.slane %v2194_v3, 4  ;;  %v2382_v44 = vsel %vm367_vm4, %v2380_v59, %v2381_v19  ;;  %v4835_v3 = vstv %s2614_s17 }
 0x484   : > { %v1298_v12 = vpop.permute.xlu0 %1297  ;;  %v2180_v48 = vrot.slane %v2173_v13, 3  ;;  %v2361_v40 = vsel %vm369_vm5, %v2359_v9, %v2360_v7  ;;  %v2243_v58 = vrot.slane %v2236_v33, 6  ;;  %v1446_v34 = vstv %s4803_s27 }
 0x485   : > { %v1303_v50 = vadd.f32 %v1298_v12, %v1282_v51  ;;  %v1024_v12 = vadd.f32 %v4702_v36, %v1003_v53  ;;  %v5228_v36 = vld [vmem:[#allocation28_spill] sm:$0xff]  ;;  %v2271_v43 = vmul.f32 %v4636_v1, %v2974_v24  ;;  %v1447_v59 = vmul.f32 %v1446_v34, %v2926_v2 }
 0x486   : > { %2142 = vrot.lane.b32.xlu1 %v2139_v25, %s2751_s10  ;;  %v2181_v32 = vsel %vm372_vm6, %v2178_v37, %v2180_v48  ;;  %v2215_v25 = vmul.f32 %v4567_v6, %v2974_v24  ;;  %v2202_v6 = vsel %vm182_vm0, %v2199_v38, %v2201_v61  ;;  %v1487_v1 = vmul.f32 %v4835_v3, %v2926_v2 }
 0x487   : > { %2343 = vrot.lane.b32.xlu0 %v2340_v28, %s2752_s12  ;;  %v4776_v41 = vpop.permute.xlu1 %1096  ;;  %v1317_v37 = vadd.f32 %v5227_v60, %v1303_v50  ;;  %v1038_v28 = vadd.f32 %v5228_v36, %v1024_v12  ;;  %v4869_v60 = vstv %s4818_s19  ;;  %v4876_v36 = vstv %s4821_s14 }
 0x488   : > { %v1333_v35 = vpop.permute.xlu0 %1332  ;;  %v2222_v13 = vrot.slane %v2215_v25, 5  ;;  %v1538_v56 = vmul.f32 %v4876_v36, %v2926_v2 }
 0x489   : > { %v1338_v62 = vadd.f32 %v1333_v35, %v1317_v37  ;;  %v1059_v26 = vadd.f32 %v4728_v52, %v1038_v28  ;;  %v4827_v35 = vstv %s2613_s11  ;;  %v2244_v52 = vsel %vm367_vm4, %v2241_v15, %v2243_v58 }
 0x48a   : > { %2163 = vrot.lane.b32.xlu1 %v2160_v42, %s2751_s10  ;;  %v2223_v31 = vsel %vm369_vm5, %v2220_v30, %v2222_v13  ;;  %v4825_v42 = vstv %s2612_s23  ;;  %v4854_v15 = vmul.f32 %v4827_v35, %v2971_v22  ;;  %v4890_v58 = vmul.f32 %v4869_v60, %v2971_v22 }
 0x48b   : > { %2364 = vrot.lane.b32.xlu0 %v2361_v40, %s2752_s12  ;;  %v1118_v63 = vpop.permute.xlu1 %1117  ;;  %v4833_v30 = vmul.f32 %v4825_v42, %v2971_v22  ;;  %v1080_v51 = vadd.f32 %v4752_v39, %v1059_v26  ;;  %v1453_v53 = vmul.f32 %v4825_v42, %v2926_v2  ;;  %v1470_v39 = vmul.f32 %v4827_v35, %v2926_v2 }
 0x48c   : > { %v1354_v29 = vpop.permute.xlu0 %1353 }
 0x48d   : > { %v1359_v38 = vadd.f32 %v1354_v29, %v1338_v62  ;;  %v1101_v4 = vadd.f32 %v4776_v41, %v1080_v51  ;;  %v4858_v29 = vstv %s2615_s18  ;;  %v1460_v25 = vrot.slane %v4833_v30, 1 }
 0x48e   : > { %2184 = vrot.lane.b32.xlu1 %v2181_v32, %s2751_s10  ;;  %v2256_v41 = vmul.f32 %v2254_v11, %v2971_v22  ;;  %v1459_v13 = vrot.slane %v1453_v53, 1  ;;  %v1504_v33 = vmul.f32 %v4858_v29, %v2926_v2  ;;  %v1477_v11 = vrot.slane %v4854_v15, 2 }
 0x48f   : > { %2385 = vrot.lane.b32.xlu0 %v2382_v44, %s2752_s12  ;;  %v1139_v5 = vpop.permute.xlu1 %1138  ;;  %v4863_v44 = vmul.f32 %v4835_v3, %v2971_v22  ;;  %v1122_v12 = vadd.f32 %v1118_v63, %v1101_v4  ;;  %v4882_v63 = vmul.f32 %v4858_v29, %v2971_v22  ;;  %v1528_v4 = vrot.slane %v4890_v58, 5 }
 0x490   : > { %v1540_v30 = vmul.f32 %v4876_v36, %v2974_v24 }
 0x491   : > { %v1375_v46 = vpop.permute.xlu0 %1374  ;;  %v1143_v62 = vadd.f32 %v1139_v5, %v1122_v12 }
 0x492   : > { %2205 = vrot.lane.b32.xlu1 %v2202_v6, %s2751_s10  ;;  %v1380_v48 = vadd.f32 %v1375_v46, %v1359_v38  ;;  %v2278_v46 = vrot.slane %v2271_v43, 1  ;;  %v2292_v6 = vmul.f32 %v4659_v49, %v2974_v24  ;;  %v1461_v49 = vsel %vm376_vm8, %v1459_v13, %v1460_v25 }
 0x493   : > { %v1160_v0 = vpop.permute.xlu1 %1159  ;;  %v1493_v43 = vrot.slane %v1487_v1, 3 }
 0x494   : > { %v1164_v5 = vadd.f32 %v1160_v0, %v1143_v62  ;;  %v2279_v51 = vsel %vm376_vm8, %v2276_v55, %v2278_v46  ;;  %v4910_v55 = vmul.f32 %v4876_v36, %v2971_v22 }
 0x495   : > { %v1396_v9 = vpop.permute.xlu0 %1395 }
 0x496   : > { %2226 = vrot.lane.b32.xlu1 %v2223_v31, %s2751_s10  ;;  %v1401_v50 = vadd.f32 %v1396_v9, %v1380_v48  ;;  %v1476_v9 = vrot.slane %v1470_v39, 2  ;;  %v1494_v31 = vrot.slane %v4863_v44, 3  ;;  %v1510_v39 = vrot.slane %v1504_v33, 4 }
 0x497   : > { %v4829_v16 = vpop.permute.xlu1 %1194  ;;  %v1545_v62 = vrot.slane %v4910_v55, 6 }
 0x498   : > { %v1478_v0 = vsel %vm374_vm7, %v1476_v9, %v1477_v11  ;;  %v1544_v9 = vrot.slane %v1538_v56, 6 }
 0x499   : > { %v1417_v40 = vpop.permute.xlu0 %1416 }
 0x49a   : > { %2247 = vrot.lane.b32.xlu1 %v2244_v52, %s2751_s10  ;;  %v1422_v32 = vadd.f32 %v1417_v40, %v1401_v50  ;;  %v2299_v40 = vrot.slane %v2292_v6, 2  ;;  %v2313_v52 = vmul.f32 %v4687_v10, %v2974_v24  ;;  %v1521_v50 = vmul.f32 %v4869_v60, %v2926_v2 }
 0x49b   : > { %v1216_v61 = vpop.permute.xlu1 %1215  ;;  %v1495_v10 = vsel %vm372_vm6, %v1493_v43, %v1494_v31  ;;  %v2334_v6 = vmul.f32 %v4715_v21, %v2974_v24 }
 0x49c   : > { %v2300_v2 = vsel %vm374_vm7, %v2297_v14, %v2299_v40  ;;  %v2320_v46 = vrot.slane %v2313_v52, 3  ;;  %v1527_v13 = vrot.slane %v1521_v50, 5  ;;  %v2355_v40 = vmul.f32 %v4739_v17, %v2974_v24 }
 0x49d   : > { %v1438_v37 = vpop.permute.xlu0 %1437  ;;  %v1546_v50 = vsel %vm367_vm4, %v1544_v9, %v1545_v62  ;;  %v2376_v17 = vmul.f32 %v4757_v45, %v2974_v24  ;;  %v5234_v9 = vld [vmem:[#allocation21_spill] sm:$0xff] }
 0x49e   : > { %v1443_v28 = vadd.f32 %v1438_v37, %v1422_v32  ;;  %2261 = vrot.lane.b32.xlu1 %v2256_v41, %s2752_s12  ;;  %v5229_v41 = vld [vmem:[#allocation30_spill] sm:$0xff]  ;;  %v1529_v20 = vsel %vm369_vm5, %v1527_v13, %v1528_v4  ;;  %v5233_v13 = vld [vmem:[#allocation19_spill] sm:$0xff] }
 0x49f   : > { %v1178_v12 = vadd.f32 %v5229_v41, %v1164_v5  ;;  %v2321_v5 = vsel %vm372_vm6, %v2318_v57, %v2320_v46  ;;  %v2362_v57 = vrot.slane %v2355_v40, 5  ;;  %v5232_v46 = vld [vmem:[#allocation17_spill] sm:$0xff] }
 0x4a0   : > { %v1449_v38 = vadd.f32 %v1447_v59, %v1443_v28  ;;  %v1237_v26 = vpop.permute.xlu1 %1236  ;;  %v1511_v59 = vrot.slane %v4882_v63, 4  ;;  %v5237_v40 = vld [vmem:[#allocation25_spill] sm:$0xff] }
 0x4a1   : > { %v4892_v48 = vpop.permute.xlu0 %1902  ;;  %v2363_v18 = vsel %vm369_vm5, %v2360_v7, %v2362_v57 }
 0x4a2   : > { %v1466_v53 = vadd.f32 %v1461_v49, %v1449_v38  ;;  %2282 = vrot.lane.b32.xlu1 %v2279_v51, %s2752_s12  ;;  %v1512_v33 = vsel %vm182_vm0, %v1510_v39, %v1511_v59  ;;  %v1199_v38 = vadd.f32 %v4829_v16, %v1178_v12  ;;  %v2341_v51 = vrot.slane %v2334_v6, 4 }
 0x4a4   : > { %v1483_v1 = vadd.f32 %v1478_v0, %v1466_v53  ;;  %v1258_v32 = vpop.permute.xlu1 %1257  ;;  %v1220_v43 = vadd.f32 %v1216_v61, %v1199_v38  ;;  %v2342_v27 = vsel %vm182_vm0, %v2339_v23, %v2341_v51  ;;  %v2383_v23 = vrot.slane %v2376_v17, 6  ;;  %v5240_v17 = vld [vmem:[#allocation29_spill] sm:$0xff] }
 0x4a5   : > { %v4917_v37 = vpop.permute.xlu0 %1923 }
 0x4a6   : > { %v1500_v28 = vadd.f32 %v1495_v10, %v1483_v1  ;;  %2303 = vrot.lane.b32.xlu1 %v2300_v2, %s2752_s12  ;;  %v1241_v0 = vadd.f32 %v1237_v26, %v1220_v43  ;;  %v5230_v10 = vld [vmem:[#allocation8_spill] sm:$0xff] }
 0x4a7   : > { %v5231_v1 = vld [vmem:[#allocation16_spill] sm:$0xff] }
 0x4a8   : > { %v1517_v14 = vadd.f32 %v1512_v33, %v1500_v28  ;;  %v1279_v49 = vpop.permute.xlu1 %1278  ;;  %v1262_v61 = vadd.f32 %v1258_v32, %v1241_v0  ;;  %v5239_v0 = vld [vmem:[#allocation27_spill] sm:$0xff] }
 0x4a9   : > { %v4933_v21 = vpop.permute.xlu0 %1944 }
 0x4aa   : > { %v1534_v52 = vadd.f32 %v1529_v20, %v1517_v14  ;;  %2324 = vrot.lane.b32.xlu1 %v2321_v5, %s2752_s12  ;;  %v1283_v2 = vadd.f32 %v1279_v49, %v1262_v61  ;;  %v2384_v20 = vsel %vm367_vm4, %v2381_v19, %v2383_v23  ;;  %v5236_v49 = vld [vmem:[#allocation23_spill] sm:$0xff]  ;;  %v1455_v61 = vmul.f32 %v4825_v42, %v2974_v24 }
 0x4ac   : > { %v1551_v53 = vadd.f32 %v1546_v50, %v1534_v52  ;;  %v1300_v16 = vpop.permute.xlu1 %1299  ;;  %v5238_v50 = vld [vmem:[#allocation9_spill] sm:$0xff] }
 0x4ad   : > { %v4944_v56 = vpop.permute.xlu0 %1965  ;;  %v1304_v45 = vadd.f32 %v1300_v16, %v1283_v2 }
 0x4ae   : > { %v1565_v39 = vadd.f32 %v5230_v10, %v1551_v53  ;;  %2345 = vrot.lane.b32.xlu1 %v2342_v27, %s2752_s12 }
 0x4af   : > { %v1318_v7 = vadd.f32 %v5235_v8, %v1304_v45  ;;  %v1462_v45 = vrot.slane %v1455_v61, 1 }
 0x4b0   : > { %v1586_v41 = vadd.f32 %v5231_v1, %v1565_v39  ;;  %v1335_v12 = vpop.permute.xlu1 %1334 }
 0x4b1   : > { %v4954_v26 = vpop.permute.xlu0 %1979  ;;  %v1339_v43 = vadd.f32 %v1335_v12, %v1318_v7  ;;  %v5241_v12 = vld [vmem:[#allocation31_spill] sm:$0xff]  ;;  %v1506_v7 = vmul.f32 %v4858_v29, %v2974_v24 }
 0x4b2   : > { %v1607_v6 = vadd.f32 %v5232_v46, %v1586_v41  ;;  %2366 = vrot.lane.b32.xlu1 %v2363_v18, %s2752_s12  ;;  %v1472_v18 = vmul.f32 %v4827_v35, %v2974_v24  ;;  %v5242_v46 = vld [vmem:[#allocation33_spill] sm:$0xff] }
 0x4b4   : > { %v1628_v28 = vadd.f32 %v5233_v13, %v1607_v6  ;;  %v1356_v33 = vpop.permute.xlu1 %1355  ;;  %v1489_v13 = vmul.f32 %v4835_v3, %v2974_v24  ;;  %v1479_v8 = vrot.slane %v1472_v18, 2 }
 0x4b5   : > { %v4962_v32 = vpop.permute.xlu0 %2000  ;;  %v1360_v47 = vadd.f32 %v1356_v33, %v1339_v43  ;;  %v1448_v33 = vmul.f32 %v1446_v34, %v2971_v22  ;;  %v5245_v43 = vld [vmem:[#allocation10_spill] sm:$0xff] }
 0x4b6   : > { %v1649_v14 = vadd.f32 %v5234_v9, %v1628_v28  ;;  %2387 = vrot.lane.b32.xlu1 %v2384_v20, %s2752_s12  ;;  %v5243_v9 = vld [vmem:[#allocation35_spill] sm:$0xff]  ;;  %v1496_v3 = vrot.slane %v1489_v13, 3  ;;  %v1480_v29 = vsel %vm374_vm7, %v1477_v11, %v1479_v8 }
 0x4b8   : > { %v1670_v38 = vadd.f32 %v5236_v49, %v1649_v14  ;;  %v1377_v5 = vpop.permute.xlu1 %1376  ;;  %v5244_v49 = vld [vmem:[#allocation37_spill] sm:$0xff] }
 0x4b9   : > { %v4971_v51 = vpop.permute.xlu0 %2021  ;;  %v1381_v57 = vadd.f32 %v1377_v5, %v1360_v47  ;;  %v1463_v5 = vsel %vm376_vm8, %v1460_v25, %v1462_v45  ;;  %v5246_v25 = vld [vmem:[#allocation39_spill] sm:$0xff] }
 0x4ba   : > { %v1691_v52 = vadd.f32 %v5237_v40, %v1670_v38  ;;  %v1523_v40 = vmul.f32 %v4869_v60, %v2974_v24  ;;  %v1497_v60 = vsel %vm372_vm6, %v1494_v31, %v1496_v3 }
 0x4bc   : > { %v1705_v53 = vadd.f32 %v5238_v50, %v1691_v52  ;;  %v1398_v16 = vpop.permute.xlu1 %1397 }
 0x4bd   : > { %v4975_v19 = vpop.permute.xlu0 %2042  ;;  %v1402_v1 = vadd.f32 %v1398_v16, %v1381_v57 }
 0x4be   : > { %v1726_v27 = vadd.f32 %v5239_v0, %v1705_v53  ;;  %v1513_v53 = vrot.slane %v1506_v7, 4  ;;  %v1530_v0 = vrot.slane %v1523_v40, 5 }
 0x4c0   : > { %v1747_v10 = vadd.f32 %v5240_v17, %v1726_v27  ;;  %v1419_v39 = vpop.permute.xlu1 %1418  ;;  %v1514_v11 = vsel %vm182_vm0, %v1511_v59, %v1513_v53  ;;  %v1531_v44 = vsel %vm369_vm5, %v1528_v4, %v1530_v0  ;;  %v5249_v4 = vld [vmem:[#allocation34_spill] sm:$0xff]  ;;  %v5258_v0 = vld [vmem:[#allocation47_spill] sm:$0xff]  ;;  %vm2471_vm0 = vcmask 785408  }
 0x4c1   : > { %v4981_v41 = vpop.permute.xlu0 %2063  ;;  %v1423_v23 = vadd.f32 %v1419_v39, %v1402_v1  ;;  %v1547_v39 = vrot.slane %v1540_v30, 6 }
 0x4c2   : > { %v1768_v2 = vadd.f32 %v5241_v12, %v1747_v10  ;;  %v5247_v10 = vld [vmem:[#allocation41_spill] sm:$0xff] }
 0x4c3   : > { %v1548_v63 = vsel %vm367_vm4, %v1545_v62, %v1547_v39  ;;  %v5251_v62 = vld [vmem:[#allocation38_spill] sm:$0xff] }
 0x4c4   : > { %v1789_v6 = vadd.f32 %v5242_v46, %v1768_v2  ;;  %v1440_v28 = vpop.permute.xlu1 %1439 }
 0x4c5   : > { %v1444_v42 = vadd.f32 %v1440_v28, %v1423_v23  ;;  %v2085_v20 = vpop.permute.xlu0 %2084  ;;  %v5248_v23 = vld [vmem:[#allocation15_spill] sm:$0xff]  ;;  %v5250_v28 = vld [vmem:[#allocation36_spill] sm:$0xff] }
 0x4c6   : > { %v1810_v14 = vadd.f32 %v5243_v9, %v1789_v6 }
 0x4c7   : > { %v1450_v35 = vadd.f32 %v1448_v33, %v1444_v42 }
 0x4c8   : > { %v1831_v38 = vadd.f32 %v5244_v49, %v1810_v14  ;;  %v5001_v22 = vpop.permute.xlu1 %1904  ;;  %v5252_v14 = vld [vmem:[#allocation40_spill] sm:$0xff] }
 0x4c9   : > { %v1467_v34 = vadd.f32 %v1463_v5, %v1450_v35  ;;  %v2106_v52 = vpop.permute.xlu0 %2105  ;;  %v5253_v35 = vld [vmem:[#allocation42_spill] sm:$0xff]  ;;  %v5254_v5 = vld [vmem:[#allocation43_spill] sm:$0xff] }
 0x4ca   : > { %v1845_v50 = vadd.f32 %v5245_v43, %v1831_v38 }
 0x4cb   : > { %v1484_v16 = vadd.f32 %v1480_v29, %v1467_v34 }
 0x4cc   : > { %v1866_v47 = vadd.f32 %v5246_v25, %v1845_v50  ;;  %v5013_v27 = vpop.permute.xlu1 %1925  ;;  %v5257_v25 = vld [vmem:[#allocation45_spill] sm:$0xff] }
 0x4cd   : > { %v1501_v57 = vadd.f32 %v1497_v60, %v1484_v16  ;;  %v2120_v17 = vpop.permute.xlu0 %2119 }
 0x4ce   : > { %v1887_v15 = vadd.f32 %v5247_v10, %v1866_v47 }
 0x4cf   : > { %v1518_v24 = vadd.f32 %v1514_v11, %v1501_v57 }
 0x4d0   : > { %v1908_v36 = vadd.f32 %v4892_v48, %v1887_v15  ;;  %v5023_v31 = vpop.permute.xlu1 %1946  ;;  %v5259_v15 = vld [vmem:[#allocation50_spill] sm:$0xff] }
 0x4d1   : > { %v1535_v61 = vadd.f32 %v1531_v44, %v1518_v24  ;;  %v2141_v1 = vpop.permute.xlu0 %2140  ;;  %v5260_v24 = vld [vmem:[#allocation51_spill] sm:$0xff] }
 0x4d2   : > { %v1929_v12 = vadd.f32 %v4917_v37, %v1908_v36 }
 0x4d3   : > { %v1552_v2 = vadd.f32 %v1548_v63, %v1535_v61  ;;  %v5261_v61 = vld [vmem:[#allocation52_spill] sm:$0xff] }
 0x4d4   : > { %v1950_v59 = vadd.f32 %v4933_v21, %v1929_v12  ;;  %v1968_v18 = vpop.permute.xlu1 %1967 }
 0x4d5   : > { %v1566_v48 = vadd.f32 %v5248_v23, %v1552_v2  ;;  %v2162_v46 = vpop.permute.xlu0 %2161  ;;  %v5262_v2 = vld [vmem:[#allocation20_spill] sm:$0xff] }
 0x4d6   : > { %v1971_v58 = vadd.f32 %v4944_v56, %v1950_v59 }
 0x4d7   : > { %v1587_v6 = vadd.f32 %v5249_v4, %v1566_v48  ;;  %v5263_v48 = vld [vmem:[#allocation53_spill] sm:$0xff] }
 0x4d8   : > { %v1985_v45 = vadd.f32 %v4954_v26, %v1971_v58  ;;  %v1982_v13 = vpop.permute.xlu1 %1981 }
 0x4d9   : > { %v1608_v37 = vadd.f32 %v5250_v28, %v1587_v6  ;;  %v2183_v33 = vpop.permute.xlu0 %2182 }
 0x4da   : > { %v2006_v55 = vadd.f32 %v4962_v32, %v1985_v45  ;;  %v5255_v32 = vld [vmem:[#allocation18_spill] sm:$0xff] }
 0x4db   : > { %v1629_v42 = vadd.f32 %v5251_v62, %v1608_v37 }
 0x4dc   : > { %v2027_v21 = vadd.f32 %v4971_v51, %v2006_v55  ;;  %v2003_v9 = vpop.permute.xlu1 %2002  ;;  %v5256_v51 = vld [vmem:[#allocation44_spill] sm:$0xff] }
 0x4dd   : > { %v1650_v8 = vadd.f32 %v5252_v14, %v1629_v42  ;;  %v2204_v7 = vpop.permute.xlu0 %2203 }
 0x4de   : > { %v2048_v56 = vadd.f32 %v4975_v19, %v2027_v21 }
 0x4df   : > { %v1671_v49 = vadd.f32 %v5253_v35, %v1650_v8 }
 0x4e0   : > { %v2069_v26 = vadd.f32 %v4981_v41, %v2048_v56  ;;  %v2024_v38 = vpop.permute.xlu1 %2023 }
 0x4e1   : > { %v1692_v3 = vadd.f32 %v5254_v5, %v1671_v49  ;;  %v2225_v40 = vpop.permute.xlu0 %2224 }
 0x4e2   : > { %v2090_v34 = vadd.f32 %v2085_v20, %v2069_v26 }
 0x4e3   : > { %v1706_v43 = vadd.f32 %v5255_v32, %v1692_v3 }
 0x4e4   : > { %v2111_v50 = vadd.f32 %v2106_v52, %v2090_v34  ;;  %v2045_v29 = vpop.permute.xlu1 %2044 }
 0x4e5   : > { %v1727_v53 = vadd.f32 %v5256_v51, %v1706_v43  ;;  %v2246_v30 = vpop.permute.xlu0 %2245 }
 0x4e6   : > { %v2125_v16 = vadd.f32 %v2120_v17, %v2111_v50 }
 0x4e7   : > { %v1748_v47 = vadd.f32 %v5257_v25, %v1727_v53 }
 0x4e8   : > { %v2146_v19 = vadd.f32 %v2141_v1, %v2125_v16  ;;  %v2066_v60 = vpop.permute.xlu1 %2065 }
 0x4e9   : > { %v1769_v57 = vadd.f32 %v5258_v0, %v1748_v47  ;;  %v2260_v41 = vpop.permute.xlu0 %2259 }
 0x4ea   : > { %v2167_v10 = vadd.f32 %v2162_v46, %v2146_v19 }
 0x4eb   : > { %v1790_v11 = vadd.f32 %v5259_v15, %v1769_v57 }
 0x4ec   : > { %v2188_v39 = vadd.f32 %v2183_v33, %v2167_v10  ;;  %v2087_v20 = vpop.permute.xlu1 %2086 }
 0x4ed   : > { %v1811_v36 = vadd.f32 %v5260_v24, %v1790_v11  ;;  %v2281_v52 = vpop.permute.xlu0 %2280 }
 0x4ee   : > { %v2209_v44 = vadd.f32 %v2204_v7, %v2188_v39 }
 0x4ef   : > { %v1832_v12 = vadd.f32 %v5261_v61, %v1811_v36 }
 0x4f0   : > { %v2230_v63 = vadd.f32 %v2225_v40, %v2209_v44  ;;  %v2108_v17 = vpop.permute.xlu1 %2107 }
 0x4f1   : > { %v1846_v59 = vadd.f32 %v5262_v2, %v1832_v12  ;;  %v2302_v1 = vpop.permute.xlu0 %2301 }
 0x4f2   : > { %v2251_v23 = vadd.f32 %v2246_v30, %v2230_v63 }
 0x4f3   : > { %v1867_v58 = vadd.f32 %v5263_v48, %v1846_v59 }
 0x4f4   : > { %v2265_v4 = vadd.f32 %v2260_v41, %v2251_v23  ;;  %v2122_v46 = vpop.permute.xlu1 %2121 }
 0x4f5   : > { %v1888_v6 = vadd.f32 %v4204_v54, %v1867_v58  ;;  %v2323_v45 = vpop.permute.xlu0 %2322 }
 0x4f6   : > { %v2286_v28 = vadd.f32 %v2281_v52, %v2265_v4 }
 0x4f7   : > { %v1909_v37 = vadd.f32 %v5001_v22, %v1888_v6 }
 0x4f8   : > { %v2307_v33 = vadd.f32 %v2302_v1, %v2286_v28  ;;  %v2143_v55 = vpop.permute.xlu1 %2142 }
 0x4f9   : > { %v1930_v62 = vadd.f32 %v5013_v27, %v1909_v37  ;;  %v2344_v42 = vpop.permute.xlu0 %2343 }
 0x4fa   : > { %v2328_v21 = vadd.f32 %v2323_v45, %v2307_v33 }
 0x4fb   : > { %v1951_v14 = vadd.f32 %v5023_v31, %v1930_v62 }
 0x4fc   : > { %v2349_v8 = vadd.f32 %v2344_v42, %v2328_v21  ;;  %v2164_v7 = vpop.permute.xlu1 %2163 }
 0x4fd   : > { %v1972_v56 = vadd.f32 %v1968_v18, %v1951_v14  ;;  %v2365_v35 = vpop.permute.xlu0 %2364 }
 0x4fe   : > { %v2370_v26 = vadd.f32 %v2365_v35, %v2349_v8 }
 0x4ff   : > { %v1986_v49 = vadd.f32 %v1982_v13, %v1972_v56 }
 0x500   : > { %v2185_v5 = vpop.permute.xlu1 %2184 }
 0x501   : > { %v2007_v54 = vadd.f32 %v2003_v9, %v1986_v49  ;;  %v2386_v3 = vpop.permute.xlu0 %2385 }
 0x502   : > { %v2391_v40 = vadd.f32 %v2386_v3, %v2370_v26 }
 0x503   : > { %v2028_v34 = vadd.f32 %v2024_v38, %v2007_v54 }
 0x504   : > { %v2393_v22 = vsub.f32 0.0, %v2391_v40  ;;  %v2206_v32 = vpop.permute.xlu1 %2205 }
 0x505   : > { %v2049_v43 = vadd.f32 %v2045_v29, %v2028_v34 }
 0x506   : > { %v2395_v50 = vmul.f32 1.442695, %v2393_v22 }
 0x507   : > { %v2070_v27 = vadd.f32 %v2066_v60, %v2049_v43 }
 0x508   : > { %2704 = vpow2.f32 %v2395_v50  ;;  %v2227_v51 = vpop.permute.xlu1 %2226 }
 0x509   : > { %v2091_v53 = vadd.f32 %v2087_v20, %v2070_v27 }
 0x50b   : > { %v2112_v31 = vadd.f32 %v2108_v17, %v2091_v53 }
 0x50c   : > { %v2248_v30 = vpop.permute.xlu1 %2247 }
 0x50d   : > { %v2126_v16 = vadd.f32 %v2122_v46, %v2112_v31 }
 0x50f   : > { %v2147_v18 = vadd.f32 %v2143_v55, %v2126_v16 }
 0x510   : > { %v2262_v25 = vpop.permute.xlu1 %2261 }
 0x511   : > { %v2168_v13 = vadd.f32 %v2164_v7, %v2147_v18  ;;  %v5264_v18 = vld [vmem:[#allocation6_spill] sm:$0xff] }
 0x512   : > { %v2705_v47 = vpop.eup %2704 }
 0x513   : > { %v2189_v19 = vadd.f32 %v2185_v5, %v2168_v13  ;;  %v2399_v9 = vadd.f32 1.0, %v2705_v47 }
 0x514   : > { %v2283_v0 = vpop.permute.xlu1 %2282 }
 0x515   : > { %2706 = vrcp.f32 %v2399_v9  ;;  %v2210_v38 = vadd.f32 %v2206_v32, %v2189_v19 }
 0x517   : > { %v2231_v57 = vadd.f32 %v2227_v51, %v2210_v38 }
 0x518   : > { %v2304_v41 = vpop.permute.xlu1 %2303 }
 0x519   : > { %v2252_v29 = vadd.f32 %v2248_v30, %v2231_v57 }
 0x51b   : > { %v2266_v10 = vadd.f32 %v2262_v25, %v2252_v29  ;;  %v2485_v25 = vsub.s32 0, %v5264_v18 }
 0x51c   : > { %v2325_v60 = vpop.permute.xlu1 %2324 }
 0x51d   : > { %v2287_v15 = vadd.f32 %v2283_v0, %v2266_v10  ;;  %v5265_v10 = vld [vmem:[#allocation7_spill] sm:$0xff] }
 0x51f   : > { %v2707_v11 = vpop.eup %2706  ;;  %v2308_v39 = vadd.f32 %v2304_v41, %v2287_v15 }
 0x520   : > { %v2346_v20 = vpop.permute.xlu1 %2345  ;;  %v2404_v24 = vrot.slane %v2707_v11, 1  ;;  %v2408_v61 = vrot.slane %v2707_v11, 2  ;;  %v2412_v17 = vrot.slane %v2707_v11, 3  ;;  %v2416_v1 = vrot.slane %v2707_v11, 4 }
 0x521   : > { %v2329_v36 = vadd.f32 %v2325_v60, %v2308_v39  ;;  %v2420_v48 = vrot.slane %v2707_v11, 5  ;;  %v2424_v58 = vrot.slane %v2707_v11, 6  ;;  %v2428_v4 = vrot.slane %v2707_v11, 7 }
 0x522   : > { %2405 = vrot.lane.b32.xlu0 %v2404_v24, %s2745_s9 }
 0x523   : > { %v2350_v52 = vadd.f32 %v2346_v20, %v2329_v36 }
 0x524   : > { %v2367_v44 = vpop.permute.xlu1 %2366 }
 0x525   : > { %v2371_v12 = vadd.f32 %v2367_v44, %v2350_v52 }
 0x526   : > { %2409 = vrot.lane.b32.xlu0 %v2408_v61, %s2743_s7 }
 0x528   : > { %v2388_v63 = vpop.permute.xlu1 %2387 }
 0x529   : > { %v2392_v2 = vadd.f32 %v2388_v63, %v2371_v12 }
 0x52a   : > { %2413 = vrot.lane.b32.xlu0 %v2412_v17, %s2744_s8 }
 0x52b   : > { %v2394_v59 = vsub.f32 0.0, %v2392_v2 }
 0x52d   : > { %v2397_v23 = vmul.f32 1.442695, %v2394_v59 }
 0x52e   : > { %2417 = vrot.lane.b32.xlu0 %v2416_v1, %s2741_s5 }
 0x52f   : > { %2708 = vpow2.f32 %v2397_v23 }
 0x532   : > { %2421 = vrot.lane.b32.xlu0 %v2420_v48, %s2742_s6 }
 0x536   : > { %2425 = vrot.lane.b32.xlu0 %v2424_v58, %s2739_s29 }
 0x539   : > { %v2709_v46 = vpop.eup %2708 }
 0x53a   : > { %v2400_v6 = vadd.f32 1.0, %v2709_v46  ;;  %2429 = vrot.lane.b32.xlu0 %v2428_v4, %s2740_s30 }
 0x53c   : > { %2710 = vrcp.f32 %v2400_v6 }
 0x546   : > { %v2711_v45 = vpop.eup %2710 }
 0x547   : > { %v2433_v28 = vrot.slane %v2711_v45, 1  ;;  %v2437_v37 = vrot.slane %v2711_v45, 2  ;;  %v2441_v33 = vrot.slane %v2711_v45, 3  ;;  %v2445_v55 = vrot.slane %v2711_v45, 4 }
 0x548   : > { %v2449_v62 = vrot.slane %v2711_v45, 5  ;;  %v2453_v42 = vrot.slane %v2711_v45, 6  ;;  %v2457_v21 = vrot.slane %v2711_v45, 7 }
 0x549   : > { %2434 = vrot.lane.b32.xlu1 %v2433_v28, %s2745_s9 }
 0x54d   : > { %2438 = vrot.lane.b32.xlu1 %v2437_v37, %s2743_s7 }
 0x551   : > { %2442 = vrot.lane.b32.xlu1 %v2441_v33, %s2744_s8 }
 0x555   : > { %2446 = vrot.lane.b32.xlu1 %v2445_v55, %s2741_s5  ;;  %s177_s5 = scalar_lea.vmem %s5084_s4, %s2662_s21 }
 0x559   : > { %2450 = vrot.lane.b32.xlu1 %v2449_v62, %s2742_s6 }
 0x55d   : > { %2454 = vrot.lane.b32.xlu1 %v2453_v42, %s2739_s29 }
 0x561   : > { %2458 = vrot.lane.b32.xlu1 %v2457_v21, %s2740_s30 }
 0x594   : > { %v2406_v14 = vpop.permute.xlu0 %2405 }
 0x595   : > { %v2462_v34 = vsel %vm2461_vm11, %v2707_v11, %v2406_v14 }
 0x598   : > { %v2410_v8 = vpop.permute.xlu0 %2409 }
 0x599   : > { %v2464_v22 = vsel %vm2463_vm12, %v2462_v34, %v2410_v8 }
 0x59c   : > { %v2414_v7 = vpop.permute.xlu0 %2413 }
 0x59d   : > { %v2466_v32 = vsel %vm2465_vm13, %v2464_v22, %v2414_v7 }
 0x5a0   : > { %v2418_v35 = vpop.permute.xlu0 %2417 }
 0x5a1   : > { %v2468_v50 = vsel %vm2467_vm14, %v2466_v32, %v2418_v35 }
 0x5a4   : > { %v2422_v26 = vpop.permute.xlu0 %2421 }
 0x5a5   : > { %v2470_v31 = vsel %vm2469_vm15, %v2468_v50, %v2422_v26 }
 0x5a8   : > { %v2426_v3 = vpop.permute.xlu0 %2425 }
 0x5a9   : > { %v2472_v16 = vsel %vm2471_vm0, %v2470_v31, %v2426_v3 }
 0x5ac   : > { %v2430_v27 = vpop.permute.xlu0 %2429 }
 0x5ad   : > { %v2474_v47 = vsel %vm2473_vm1, %v2472_v16, %v2430_v27 }
 0x5ae   : > { %v2486_v57 = vrot.slane %v2474_v47, %v2485_v25 }
 0x5bb   : > { %v2435_v56 = vpop.permute.xlu1 %2434 }
 0x5bc   : > { %v2475_v43 = vsel %vm2461_vm11, %v2711_v45, %v2435_v56 }
 0x5bf   : > { %v2439_v49 = vpop.permute.xlu1 %2438 }
 0x5c0   : > { %v2476_v51 = vsel %vm2463_vm12, %v2475_v43, %v2439_v49 }
 0x5c3   : > { %v2443_v5 = vpop.permute.xlu1 %2442 }
 0x5c4   : > { %v2477_v30 = vsel %vm2465_vm13, %v2476_v51, %v2443_v5 }
 0x5c7   : > { %v2447_v54 = vpop.permute.xlu1 %2446 }
 0x5c8   : > { %v2478_v13 = vsel %vm2467_vm14, %v2477_v30, %v2447_v54 }
 0x5cb   : > { %v2451_v40 = vpop.permute.xlu1 %2450 }
 0x5cc   : > { %v2479_v19 = vsel %vm2469_vm15, %v2478_v13, %v2451_v40 }
 0x5cf   : > { %v2455_v53 = vpop.permute.xlu1 %2454 }
 0x5d0   : > { %v2480_v9 = vsel %vm2471_vm0, %v2479_v19, %v2455_v53 }
 0x5d3   : > { %v2459_v0 = vpop.permute.xlu1 %2458 }
 0x5d4   : > { %v2481_v38 = vsel %vm2473_vm1, %v2480_v9, %v2459_v0 }
 0x5d5   : > { %v2490_v41 = vrot.slane %v2481_v38, %v2485_v25 }
 0x5d7   : > { %v2493_v29 = vcombine.low %v2486_v57, %v2490_v41 }
 0x5d9   : > { %v2495_v60 = vmul.f32 %v2493_v29, %v5265_v10 }
 0x5db   : > { %2496 = vst [vmem:[%s177_s5] sm:$0xff] %v2495_v60 }
 0x5dc PF: > { %s20_s20 = sadd.s32 1, %s2732_s20  }
 0x5dd   : > { %p17_p9 = scmp.ge.s32.totalorder %s20_s20, 4  }
 0x5df   :  { %19 = sbr.rel (!%p17_p9) target bundleno = 16 (0x10), region = 62 }

</bundles_post_ra>
